<compile_context>
chip_gen: v6e
topology: v6e:2x2x1
jax: 0.10.0
libtpu: 0.0.40
codegen_flags: <defaults>
</compile_context>

<pallas_src>
import functools

import jax
import jax.numpy as jnp
from jax import lax
from jax.experimental import pallas as pl
from jax.experimental.pallas import tpu as pltpu


def _patch_embed_kernel(x_ref, w_ref, shift_ref, out_ref, *,
                        stride: int, band_rows: int, wo: int):
    """One (batch, output-row-band) tile per grid step.

    x_ref:     (H+2, W+2, Cin)          padded NHWC image (bf16), per-batch resident
    w_ref:     (9, Cin, Cout_pad)       fused per-tap weights dw*pw*bn_scale (bf16)
    shift_ref: (1, Cout_pad)            fused BN shift (f32)
    out_ref:   (band_rows*wo, Cout_pad) output tokens for this band
    """
    s = stride
    tr = band_rows
    cin = x_ref.shape[-1]
    cout = out_ref.shape[-1]
    m = tr * wo
    r_in = tr * s + 2                       # input rows needed by this band (incl. halo)

    row0 = pl.program_id(1) * (tr * s)      # first padded input row of the band
    xb = x_ref[pl.ds(row0, r_in), :, :]     # (r_in, W+2, Cin), bf16

    acc = jnp.zeros((m, cout), jnp.float32)
    for kj in range(3):
        # Strided column selection for tap column kj: cols kj, kj+s, kj+2s, ...
        if s == 1:
            xc = xb[:, kj:kj + wo, :]
        else:
            xc = xb[:, kj:kj + wo * s, :].reshape(r_in, wo, s, cin)[:, :, 0, :]
        for ki in range(3):
            # Strided row selection for tap row ki: rows ki, ki+s, ki+2s, ...
            if s == 1:
                xt = xc[ki:ki + tr]
            else:
                xt = xc[ki:ki + tr * s].reshape(tr, s, wo, cin)[:, 0]
            # (m, Cin) x (Cin, Cout_pad) on the MXU, f32 accumulation.
            acc = acc + jnp.dot(xt.reshape(m, cin), w_ref[ki * 3 + kj],
                                preferred_element_type=jnp.float32)

    y = acc + shift_ref[...]
    # Hardswish: y * relu6(y + 3) / 6
    y = y * jnp.clip(y + 3.0, 0.0, 6.0) * (1.0 / 6.0)
    out_ref[...] = y.astype(out_ref.dtype)


def _pick_band_rows(ho: int, wo: int, target_m: int = 256) -> int:
    """Smallest band height that divides Ho, keeps the token block a multiple
    of 8 rows, and yields >= target_m tokens per band (MXU-friendly M)."""
    for tr in range(1, ho + 1):
        if ho % tr == 0 and (tr * wo) % 8 == 0 and tr * wo >= target_m:
            return tr
    return ho


def patch_embed(x_nchw, dw_weight, pw_weight, bn_gamma, bn_beta,
                bn_mean, bn_var, *, stride: int, eps: float = 1e-5,
                out_dtype=None):
    """Pallas PatchEmbed forward.

    x_nchw:    (B, Cin, H, W)          (PyTorch layout)
    dw_weight: (Cin, 1, 3, 3)          depthwise conv weight (torch layout)
    pw_weight: (Cout, Cin, 1, 1)       pointwise conv weight (torch layout)
    bn_*:      (Cout,)                 BatchNorm2d params / running stats (eval mode)
    returns    (tokens (B, Ho*Wo, Cout), (Ho, Wo))
    """
    B, Cin, H, W = x_nchw.shape
    Cout = pw_weight.shape[0]
    if H % stride != 0 or W % stride != 0:
        # PyTorch's conv with pad=1,k=3 gives floor((H-1)/s)+1 for odd H; this
        # kernel only supports the evenly-divisible case used by the model.
        raise ValueError(f"H={H}, W={W} must be divisible by stride={stride}")
    Ho, Wo = H // stride, W // stride
    N = Ho * Wo
    out_dtype = x_nchw.dtype if out_dtype is None else out_dtype
    cout_pad = ((Cout + 127) // 128) * 128      # lane-dense output channels

    # --- glue: one fused NCHW -> padded NHWC bf16 pass ---
    x_nhwc = jnp.transpose(x_nchw, (0, 2, 3, 1)).astype(jnp.bfloat16)
    x_pad = jnp.pad(x_nhwc, ((0, 0), (1, 1), (1, 1), (0, 0)))      # (B, H+2, W+2, Cin)

    # --- fold depthwise * pointwise * BN scale into 9 fused tap weights ---
    scale = bn_gamma.astype(jnp.float32) / jnp.sqrt(bn_var.astype(jnp.float32) + eps)
    shift = bn_beta.astype(jnp.float32) - bn_mean.astype(jnp.float32) * scale
    pw = jnp.transpose(pw_weight[:, :, 0, 0], (1, 0)).astype(jnp.float32)   # (Cin, Cout)
    pw_scaled = pw * scale[None, :]                                         # BN scale folded
    dw = jnp.transpose(dw_weight[:, 0, :, :], (1, 2, 0)).reshape(9, Cin)    # [ki*3+kj, c]
    w_taps = dw[:, :, None].astype(jnp.float32) * pw_scaled[None, :, :]     # (9, Cin, Cout)
    w_taps = jnp.pad(w_taps, ((0, 0), (0, 0), (0, cout_pad - Cout))).astype(jnp.bfloat16)
    shift_pad = jnp.pad(shift, (0, cout_pad - Cout)).reshape(1, cout_pad)

    TR = _pick_band_rows(Ho, Wo)
    num_bands = Ho // TR

    kernel = functools.partial(_patch_embed_kernel, stride=stride,
                               band_rows=TR, wo=Wo)

    tokens = pl.pallas_call(
        kernel,
        out_shape=jax.ShapeDtypeStruct((B, N, cout_pad), out_dtype),
        grid_spec=pltpu.PrefetchScalarGridSpec(
            num_scalar_prefetch=0,
            grid=(B, num_bands),
            in_specs=[
                # Whole padded image; block index ignores the band axis so it
                # stays resident (one DMA per batch element per core) and the
                # kernel slices its band + 1-row halo from it.
                pl.BlockSpec((None, H + 2, W + 2, Cin), lambda b, r: (b, 0, 0, 0)),
                pl.BlockSpec((9, Cin, cout_pad), lambda b, r: (0, 0, 0)),
                pl.BlockSpec((1, cout_pad), lambda b, r: (0, 0)),
            ],
            out_specs=pl.BlockSpec((None, TR * Wo, cout_pad),
                                   lambda b, r: (b, r, 0)),
        ),
        compiler_params=pltpu.CompilerParams(
            dimension_semantics=("parallel", "parallel")),
    )(x_pad, w_taps, shift_pad)

    if cout_pad != Cout:
        tokens = tokens[:, :, :Cout]
    return tokens, (Ho, Wo)


def patch_embed_reference(x_nchw, dw_weight, pw_weight, bn_gamma, bn_beta,
                          bn_mean, bn_var, *, stride: int, eps: float = 1e-5):
    """Pure-JAX reference mirroring the PyTorch forward (BN eval mode)."""
    B, Cin, H, W = x_nchw.shape
    dn = ("NCHW", "OIHW", "NCHW")
    y = lax.conv_general_dilated(
        x_nchw, dw_weight, window_strides=(stride, stride),
        padding=((1, 1), (1, 1)), feature_group_count=Cin,
        dimension_numbers=dn)
    y = lax.conv_general_dilated(
        y, pw_weight, window_strides=(1, 1), padding=((0, 0), (0, 0)),
        dimension_numbers=dn)
    y = (y - bn_mean[None, :, None, None]) / jnp.sqrt(
        bn_var[None, :, None, None] + eps)
    y = y * bn_gamma[None, :, None, None] + bn_beta[None, :, None, None]
    y = y * jnp.clip(y + 3.0, 0.0, 6.0) / 6.0
    B_, C_, Ho, Wo = y.shape
    return y.reshape(B_, C_, Ho * Wo).transpose(0, 2, 1), (Ho, Wo)


if __name__ == "__main__":
    def _check(B, Cin, H, W, Cout, stride, key):
        k = jax.random.split(key, 7)
        x = jax.random.normal(k[0], (B, Cin, H, W), jnp.float32)
        dw_weight = jax.random.normal(k[1], (Cin, 1, 3, 3), jnp.float32) * 0.2
        pw_weight = jax.random.normal(k[2], (Cout, Cin, 1, 1), jnp.float32) * 0.2
        bn_gamma = 1.0 + 0.1 * jax.random.normal(k[3], (Cout,), jnp.float32)
        bn_beta = 0.1 * jax.random.normal(k[4], (Cout,), jnp.float32)
        bn_mean = 0.1 * jax.random.normal(k[5], (Cout,), jnp.float32)
        bn_var = 1.0 + 0.1 * jnp.abs(jax.random.normal(k[6], (Cout,), jnp.float32))

        out, (ho, wo) = patch_embed(x, dw_weight, pw_weight, bn_gamma, bn_beta,
                                    bn_mean, bn_var, stride=stride)
        out = jax.block_until_ready(out)

        ref, (rho, rwo) = patch_embed_reference(
            x, dw_weight, pw_weight, bn_gamma, bn_beta, bn_mean, bn_var,
            stride=stride)
        assert out.shape == (B, (H // stride) * (W // stride), Cout), out.shape
        assert (ho, wo) == (rho, rwo) == (H // stride, W // stride)
        max_err = float(jnp.max(jnp.abs(out - ref)))
        # bf16 MXU feeds -> slightly looser tolerance vs the f32 reference.
        assert jnp.allclose(out, ref, rtol=1e-2, atol=1e-2), max_err

    key = jax.random.PRNGKey(0)
    k1, k2 = jax.random.split(key)
    # Primary small config: stride=2, in_dim=4, embedding_dim=32, 16x16 input.
    _check(B=2, Cin=4, H=16, W=16, Cout=32, stride=2, key=k1)
    # Slightly larger config to exercise the multi-band (row-band tiling) path.
    _check(B=1, Cin=4, H=48, W=48, Cout=32, stride=2, key=k2)

    print("KERNEL_OK")
</pallas_src>

<mosaic_0001>
module attributes {stable_mosaic.version = 11 : i64} {
  func.func @_patch_embed_kernel(%arg0: i32, %arg1: i32, %arg2: memref<1x18x18x4xbf16, #tpu.memory_space<vmem>>, %arg3: memref<9x4x128xbf16, #tpu.memory_space<vmem>>, %arg4: memref<1x128xf32, #tpu.memory_space<vmem>>, %arg5: memref<1x64x128xf32, #tpu.memory_space<vmem>>) attributes {dimension_semantics = [#tpu.dimension_semantics<parallel>, #tpu.dimension_semantics<parallel>], iteration_bounds = array<i64: 2, 1>, scalar_prefetch = 0 : i64, scratch_operands = 0 : i64, tpu.core_type = #tpu.core_type<tc>, window_params = [{transform_indices = @transform_0, window_bounds = array<i64: 1, 18, 18, 4>}, {pipeline_mode = #tpu.pipeline_mode<synchronous>, transform_indices = @transform_1, window_bounds = array<i64: 9, 4, 128>}, {pipeline_mode = #tpu.pipeline_mode<synchronous>, transform_indices = @transform_2, window_bounds = array<i64: 1, 128>}, {transform_indices = @transform_3, window_bounds = array<i64: 1, 64, 128>}]} {
    %c16_i32 = arith.constant 16 : i32
    %0 = arith.muli %arg1, %c16_i32 : i32
    %c0 = arith.constant 0 : index
    %1 = arith.index_cast %0 : i32 to index
    %c0_0 = arith.constant 0 : index
    %c0_1 = arith.constant 0 : index
    %2 = vector.load %arg2[%c0, %1, %c0_0, %c0_1] : memref<1x18x18x4xbf16, #tpu.memory_space<vmem>>, vector<1x18x18x4xbf16>
    %3 = vector.shape_cast %2 : vector<1x18x18x4xbf16> to vector<18x18x4xbf16>
    %cst = arith.constant 0.000000e+00 : f32
    %4 = vector.broadcast %cst : f32 to vector<64x128xf32>
    %5 = vector.extract_strided_slice %3 {offsets = [0, 0, 0], sizes = [18, 16, 4], strides = [1, 1, 1]} : vector<18x18x4xbf16> to vector<18x16x4xbf16>
    %6 = vector.shape_cast %5 : vector<18x16x4xbf16> to vector<18x8x2x4xbf16>
    %7 = vector.extract_strided_slice %6 {offsets = [0, 0, 0, 0], sizes = [18, 8, 1, 4], strides = [1, 1, 1, 1]} : vector<18x8x2x4xbf16> to vector<18x8x1x4xbf16>
    %8 = vector.shape_cast %7 : vector<18x8x1x4xbf16> to vector<18x8x4xbf16>
    %9 = vector.extract_strided_slice %8 {offsets = [0, 0, 0], sizes = [16, 8, 4], strides = [1, 1, 1]} : vector<18x8x4xbf16> to vector<16x8x4xbf16>
    %10 = vector.shape_cast %9 : vector<16x8x4xbf16> to vector<8x2x8x4xbf16>
    %11 = vector.extract_strided_slice %10 {offsets = [0, 0, 0, 0], sizes = [8, 1, 8, 4], strides = [1, 1, 1, 1]} : vector<8x2x8x4xbf16> to vector<8x1x8x4xbf16>
    %12 = vector.shape_cast %11 : vector<8x1x8x4xbf16> to vector<8x8x4xbf16>
    %13 = vector.shape_cast %12 : vector<8x8x4xbf16> to vector<64x4xbf16>
    %c0_2 = arith.constant 0 : index
    %c0_3 = arith.constant 0 : index
    %c0_4 = arith.constant 0 : index
    %14 = vector.load %arg3[%c0_2, %c0_3, %c0_4] : memref<9x4x128xbf16, #tpu.memory_space<vmem>>, vector<1x4x128xbf16>
    %15 = vector.shape_cast %14 : vector<1x4x128xbf16> to vector<4x128xbf16>
    %cst_5 = arith.constant dense<0.000000e+00> : vector<64x128xf32>
    %16 = tpu.matmul %13, %15, %cst_5 {dimension_numbers = #tpu.dot_dimension_numbers<[1], [0], [0], [1], [0, 0, 1, 1], [], []>} : vector<64x4xbf16>, vector<4x128xbf16>, vector<64x128xf32> -> vector<64x128xf32>
    %17 = arith.addf %4, %16 : vector<64x128xf32>
    %18 = vector.extract_strided_slice %8 {offsets = [1, 0, 0], sizes = [16, 8, 4], strides = [1, 1, 1]} : vector<18x8x4xbf16> to vector<16x8x4xbf16>
    %19 = vector.shape_cast %18 : vector<16x8x4xbf16> to vector<8x2x8x4xbf16>
    %20 = vector.extract_strided_slice %19 {offsets = [0, 0, 0, 0], sizes = [8, 1, 8, 4], strides = [1, 1, 1, 1]} : vector<8x2x8x4xbf16> to vector<8x1x8x4xbf16>
    %21 = vector.shape_cast %20 : vector<8x1x8x4xbf16> to vector<8x8x4xbf16>
    %22 = vector.shape_cast %21 : vector<8x8x4xbf16> to vector<64x4xbf16>
    %c3 = arith.constant 3 : index
    %c0_6 = arith.constant 0 : index
    %c0_7 = arith.constant 0 : index
    %23 = vector.load %arg3[%c3, %c0_6, %c0_7] : memref<9x4x128xbf16, #tpu.memory_space<vmem>>, vector<1x4x128xbf16>
    %24 = vector.shape_cast %23 : vector<1x4x128xbf16> to vector<4x128xbf16>
    %cst_8 = arith.constant dense<0.000000e+00> : vector<64x128xf32>
    %25 = tpu.matmul %22, %24, %cst_8 {dimension_numbers = #tpu.dot_dimension_numbers<[1], [0], [0], [1], [0, 0, 1, 1], [], []>} : vector<64x4xbf16>, vector<4x128xbf16>, vector<64x128xf32> -> vector<64x128xf32>
    %26 = arith.addf %17, %25 : vector<64x128xf32>
    %27 = vector.extract_strided_slice %8 {offsets = [2, 0, 0], sizes = [16, 8, 4], strides = [1, 1, 1]} : vector<18x8x4xbf16> to vector<16x8x4xbf16>
    %28 = vector.shape_cast %27 : vector<16x8x4xbf16> to vector<8x2x8x4xbf16>
    %29 = vector.extract_strided_slice %28 {offsets = [0, 0, 0, 0], sizes = [8, 1, 8, 4], strides = [1, 1, 1, 1]} : vector<8x2x8x4xbf16> to vector<8x1x8x4xbf16>
    %30 = vector.shape_cast %29 : vector<8x1x8x4xbf16> to vector<8x8x4xbf16>
    %31 = vector.shape_cast %30 : vector<8x8x4xbf16> to vector<64x4xbf16>
    %c6 = arith.constant 6 : index
    %c0_9 = arith.constant 0 : index
    %c0_10 = arith.constant 0 : index
    %32 = vector.load %arg3[%c6, %c0_9, %c0_10] : memref<9x4x128xbf16, #tpu.memory_space<vmem>>, vector<1x4x128xbf16>
    %33 = vector.shape_cast %32 : vector<1x4x128xbf16> to vector<4x128xbf16>
    %cst_11 = arith.constant dense<0.000000e+00> : vector<64x128xf32>
    %34 = tpu.matmul %31, %33, %cst_11 {dimension_numbers = #tpu.dot_dimension_numbers<[1], [0], [0], [1], [0, 0, 1, 1], [], []>} : vector<64x4xbf16>, vector<4x128xbf16>, vector<64x128xf32> -> vector<64x128xf32>
    %35 = arith.addf %26, %34 : vector<64x128xf32>
    %36 = vector.extract_strided_slice %3 {offsets = [0, 1, 0], sizes = [18, 16, 4], strides = [1, 1, 1]} : vector<18x18x4xbf16> to vector<18x16x4xbf16>
    %37 = vector.shape_cast %36 : vector<18x16x4xbf16> to vector<18x8x2x4xbf16>
    %38 = vector.extract_strided_slice %37 {offsets = [0, 0, 0, 0], sizes = [18, 8, 1, 4], strides = [1, 1, 1, 1]} : vector<18x8x2x4xbf16> to vector<18x8x1x4xbf16>
    %39 = vector.shape_cast %38 : vector<18x8x1x4xbf16> to vector<18x8x4xbf16>
    %40 = vector.extract_strided_slice %39 {offsets = [0, 0, 0], sizes = [16, 8, 4], strides = [1, 1, 1]} : vector<18x8x4xbf16> to vector<16x8x4xbf16>
    %41 = vector.shape_cast %40 : vector<16x8x4xbf16> to vector<8x2x8x4xbf16>
    %42 = vector.extract_strided_slice %41 {offsets = [0, 0, 0, 0], sizes = [8, 1, 8, 4], strides = [1, 1, 1, 1]} : vector<8x2x8x4xbf16> to vector<8x1x8x4xbf16>
    %43 = vector.shape_cast %42 : vector<8x1x8x4xbf16> to vector<8x8x4xbf16>
    %44 = vector.shape_cast %43 : vector<8x8x4xbf16> to vector<64x4xbf16>
    %c1 = arith.constant 1 : index
    %c0_12 = arith.constant 0 : index
    %c0_13 = arith.constant 0 : index
    %45 = vector.load %arg3[%c1, %c0_12, %c0_13] : memref<9x4x128xbf16, #tpu.memory_space<vmem>>, vector<1x4x128xbf16>
    %46 = vector.shape_cast %45 : vector<1x4x128xbf16> to vector<4x128xbf16>
    %cst_14 = arith.constant dense<0.000000e+00> : vector<64x128xf32>
    %47 = tpu.matmul %44, %46, %cst_14 {dimension_numbers = #tpu.dot_dimension_numbers<[1], [0], [0], [1], [0, 0, 1, 1], [], []>} : vector<64x4xbf16>, vector<4x128xbf16>, vector<64x128xf32> -> vector<64x128xf32>
    %48 = arith.addf %35, %47 : vector<64x128xf32>
    %49 = vector.extract_strided_slice %39 {offsets = [1, 0, 0], sizes = [16, 8, 4], strides = [1, 1, 1]} : vector<18x8x4xbf16> to vector<16x8x4xbf16>
    %50 = vector.shape_cast %49 : vector<16x8x4xbf16> to vector<8x2x8x4xbf16>
    %51 = vector.extract_strided_slice %50 {offsets = [0, 0, 0, 0], sizes = [8, 1, 8, 4], strides = [1, 1, 1, 1]} : vector<8x2x8x4xbf16> to vector<8x1x8x4xbf16>
    %52 = vector.shape_cast %51 : vector<8x1x8x4xbf16> to vector<8x8x4xbf16>
    %53 = vector.shape_cast %52 : vector<8x8x4xbf16> to vector<64x4xbf16>
    %c4 = arith.constant 4 : index
    %c0_15 = arith.constant 0 : index
    %c0_16 = arith.constant 0 : index
    %54 = vector.load %arg3[%c4, %c0_15, %c0_16] : memref<9x4x128xbf16, #tpu.memory_space<vmem>>, vector<1x4x128xbf16>
    %55 = vector.shape_cast %54 : vector<1x4x128xbf16> to vector<4x128xbf16>
    %cst_17 = arith.constant dense<0.000000e+00> : vector<64x128xf32>
    %56 = tpu.matmul %53, %55, %cst_17 {dimension_numbers = #tpu.dot_dimension_numbers<[1], [0], [0], [1], [0, 0, 1, 1], [], []>} : vector<64x4xbf16>, vector<4x128xbf16>, vector<64x128xf32> -> vector<64x128xf32>
    %57 = arith.addf %48, %56 : vector<64x128xf32>
    %58 = vector.extract_strided_slice %39 {offsets = [2, 0, 0], sizes = [16, 8, 4], strides = [1, 1, 1]} : vector<18x8x4xbf16> to vector<16x8x4xbf16>
    %59 = vector.shape_cast %58 : vector<16x8x4xbf16> to vector<8x2x8x4xbf16>
    %60 = vector.extract_strided_slice %59 {offsets = [0, 0, 0, 0], sizes = [8, 1, 8, 4], strides = [1, 1, 1, 1]} : vector<8x2x8x4xbf16> to vector<8x1x8x4xbf16>
    %61 = vector.shape_cast %60 : vector<8x1x8x4xbf16> to vector<8x8x4xbf16>
    %62 = vector.shape_cast %61 : vector<8x8x4xbf16> to vector<64x4xbf16>
    %c7 = arith.constant 7 : index
    %c0_18 = arith.constant 0 : index
    %c0_19 = arith.constant 0 : index
    %63 = vector.load %arg3[%c7, %c0_18, %c0_19] : memref<9x4x128xbf16, #tpu.memory_space<vmem>>, vector<1x4x128xbf16>
    %64 = vector.shape_cast %63 : vector<1x4x128xbf16> to vector<4x128xbf16>
    %cst_20 = arith.constant dense<0.000000e+00> : vector<64x128xf32>
    %65 = tpu.matmul %62, %64, %cst_20 {dimension_numbers = #tpu.dot_dimension_numbers<[1], [0], [0], [1], [0, 0, 1, 1], [], []>} : vector<64x4xbf16>, vector<4x128xbf16>, vector<64x128xf32> -> vector<64x128xf32>
    %66 = arith.addf %57, %65 : vector<64x128xf32>
    %67 = vector.extract_strided_slice %3 {offsets = [0, 2, 0], sizes = [18, 16, 4], strides = [1, 1, 1]} : vector<18x18x4xbf16> to vector<18x16x4xbf16>
    %68 = vector.shape_cast %67 : vector<18x16x4xbf16> to vector<18x8x2x4xbf16>
    %69 = vector.extract_strided_slice %68 {offsets = [0, 0, 0, 0], sizes = [18, 8, 1, 4], strides = [1, 1, 1, 1]} : vector<18x8x2x4xbf16> to vector<18x8x1x4xbf16>
    %70 = vector.shape_cast %69 : vector<18x8x1x4xbf16> to vector<18x8x4xbf16>
    %71 = vector.extract_strided_slice %70 {offsets = [0, 0, 0], sizes = [16, 8, 4], strides = [1, 1, 1]} : vector<18x8x4xbf16> to vector<16x8x4xbf16>
    %72 = vector.shape_cast %71 : vector<16x8x4xbf16> to vector<8x2x8x4xbf16>
    %73 = vector.extract_strided_slice %72 {offsets = [0, 0, 0, 0], sizes = [8, 1, 8, 4], strides = [1, 1, 1, 1]} : vector<8x2x8x4xbf16> to vector<8x1x8x4xbf16>
    %74 = vector.shape_cast %73 : vector<8x1x8x4xbf16> to vector<8x8x4xbf16>
    %75 = vector.shape_cast %74 : vector<8x8x4xbf16> to vector<64x4xbf16>
    %c2 = arith.constant 2 : index
    %c0_21 = arith.constant 0 : index
    %c0_22 = arith.constant 0 : index
    %76 = vector.load %arg3[%c2, %c0_21, %c0_22] : memref<9x4x128xbf16, #tpu.memory_space<vmem>>, vector<1x4x128xbf16>
    %77 = vector.shape_cast %76 : vector<1x4x128xbf16> to vector<4x128xbf16>
    %cst_23 = arith.constant dense<0.000000e+00> : vector<64x128xf32>
    %78 = tpu.matmul %75, %77, %cst_23 {dimension_numbers = #tpu.dot_dimension_numbers<[1], [0], [0], [1], [0, 0, 1, 1], [], []>} : vector<64x4xbf16>, vector<4x128xbf16>, vector<64x128xf32> -> vector<64x128xf32>
    %79 = arith.addf %66, %78 : vector<64x128xf32>
    %80 = vector.extract_strided_slice %70 {offsets = [1, 0, 0], sizes = [16, 8, 4], strides = [1, 1, 1]} : vector<18x8x4xbf16> to vector<16x8x4xbf16>
    %81 = vector.shape_cast %80 : vector<16x8x4xbf16> to vector<8x2x8x4xbf16>
    %82 = vector.extract_strided_slice %81 {offsets = [0, 0, 0, 0], sizes = [8, 1, 8, 4], strides = [1, 1, 1, 1]} : vector<8x2x8x4xbf16> to vector<8x1x8x4xbf16>
    %83 = vector.shape_cast %82 : vector<8x1x8x4xbf16> to vector<8x8x4xbf16>
    %84 = vector.shape_cast %83 : vector<8x8x4xbf16> to vector<64x4xbf16>
    %c5 = arith.constant 5 : index
    %c0_24 = arith.constant 0 : index
    %c0_25 = arith.constant 0 : index
    %85 = vector.load %arg3[%c5, %c0_24, %c0_25] : memref<9x4x128xbf16, #tpu.memory_space<vmem>>, vector<1x4x128xbf16>
    %86 = vector.shape_cast %85 : vector<1x4x128xbf16> to vector<4x128xbf16>
    %cst_26 = arith.constant dense<0.000000e+00> : vector<64x128xf32>
    %87 = tpu.matmul %84, %86, %cst_26 {dimension_numbers = #tpu.dot_dimension_numbers<[1], [0], [0], [1], [0, 0, 1, 1], [], []>} : vector<64x4xbf16>, vector<4x128xbf16>, vector<64x128xf32> -> vector<64x128xf32>
    %88 = arith.addf %79, %87 : vector<64x128xf32>
    %89 = vector.extract_strided_slice %70 {offsets = [2, 0, 0], sizes = [16, 8, 4], strides = [1, 1, 1]} : vector<18x8x4xbf16> to vector<16x8x4xbf16>
    %90 = vector.shape_cast %89 : vector<16x8x4xbf16> to vector<8x2x8x4xbf16>
    %91 = vector.extract_strided_slice %90 {offsets = [0, 0, 0, 0], sizes = [8, 1, 8, 4], strides = [1, 1, 1, 1]} : vector<8x2x8x4xbf16> to vector<8x1x8x4xbf16>
    %92 = vector.shape_cast %91 : vector<8x1x8x4xbf16> to vector<8x8x4xbf16>
    %93 = vector.shape_cast %92 : vector<8x8x4xbf16> to vector<64x4xbf16>
    %c8 = arith.constant 8 : index
    %c0_27 = arith.constant 0 : index
    %c0_28 = arith.constant 0 : index
    %94 = vector.load %arg3[%c8, %c0_27, %c0_28] : memref<9x4x128xbf16, #tpu.memory_space<vmem>>, vector<1x4x128xbf16>
    %95 = vector.shape_cast %94 : vector<1x4x128xbf16> to vector<4x128xbf16>
    %cst_29 = arith.constant dense<0.000000e+00> : vector<64x128xf32>
    %96 = tpu.matmul %93, %95, %cst_29 {dimension_numbers = #tpu.dot_dimension_numbers<[1], [0], [0], [1], [0, 0, 1, 1], [], []>} : vector<64x4xbf16>, vector<4x128xbf16>, vector<64x128xf32> -> vector<64x128xf32>
    %97 = arith.addf %88, %96 : vector<64x128xf32>
    %c0_30 = arith.constant 0 : index
    %c0_31 = arith.constant 0 : index
    %98 = vector.load %arg4[%c0_30, %c0_31] : memref<1x128xf32, #tpu.memory_space<vmem>>, vector<1x128xf32>
    %99 = vector.broadcast %98 : vector<1x128xf32> to vector<64x128xf32>
    %100 = arith.addf %97, %99 : vector<64x128xf32>
    %cst_32 = arith.constant 3.000000e+00 : f32
    %101 = vector.broadcast %cst_32 : f32 to vector<64x128xf32>
    %102 = arith.addf %100, %101 : vector<64x128xf32>
    %cst_33 = arith.constant 0.000000e+00 : f32
    %cst_34 = arith.constant 6.000000e+00 : f32
    %103 = vector.broadcast %cst_33 : f32 to vector<64x128xf32>
    %104 = arith.maximumf %103, %102 : vector<64x128xf32>
    %105 = vector.broadcast %cst_34 : f32 to vector<64x128xf32>
    %106 = arith.minimumf %105, %104 : vector<64x128xf32>
    %107 = arith.mulf %100, %106 : vector<64x128xf32>
    %cst_35 = arith.constant 0.166666672 : f32
    %108 = vector.broadcast %cst_35 : f32 to vector<64x128xf32>
    %109 = arith.mulf %107, %108 : vector<64x128xf32>
    %c0_36 = arith.constant 0 : index
    %c0_37 = arith.constant 0 : index
    %c0_38 = arith.constant 0 : index
    %110 = vector.load %arg5[%c0_36, %c0_37, %c0_38] : memref<1x64x128xf32, #tpu.memory_space<vmem>>, vector<1x64x128xf32>
    %111 = vector.shape_cast %110 : vector<1x64x128xf32> to vector<64x128xf32>
    %112 = vector.shape_cast %109 : vector<64x128xf32> to vector<1x64x128xf32>
    tpu.vector_store %arg5[%c0_36, %c0_37, %c0_38], %112 {strides = array<i32>} : memref<1x64x128xf32, #tpu.memory_space<vmem>>, vector<1x64x128xf32>,
    return
  }
  func.func @transform_0(%arg0: i32, %arg1: i32) -> (i32, i32, i32, i32) {
    %c0_i32 = arith.constant 0 : i32
    %c0_i32_0 = arith.constant 0 : i32
    %c0_i32_1 = arith.constant 0 : i32
    %c0_i32_2 = arith.constant 0 : i32
    return %arg0, %c0_i32, %c0_i32_0, %c0_i32_1 : i32, i32, i32, i32
  }
  func.func @transform_1(%arg0: i32, %arg1: i32) -> (i32, i32, i32) {
    %c0_i32 = arith.constant 0 : i32
    %c0_i32_0 = arith.constant 0 : i32
    %c0_i32_1 = arith.constant 0 : i32
    %c0_i32_2 = arith.constant 0 : i32
    return %c0_i32, %c0_i32_0, %c0_i32_1 : i32, i32, i32
  }
  func.func @transform_2(%arg0: i32, %arg1: i32) -> (i32, i32) {
    %c0_i32 = arith.constant 0 : i32
    %c0_i32_0 = arith.constant 0 : i32
    %c0_i32_1 = arith.constant 0 : i32
    return %c0_i32, %c0_i32_0 : i32, i32
  }
  func.func @transform_3(%arg0: i32, %arg1: i32) -> (i32, i32, i32) {
    %c0_i32 = arith.constant 0 : i32
    %c0_i32_0 = arith.constant 0 : i32
    return %arg0, %arg1, %c0_i32 : i32, i32, i32
  }
}

</mosaic_0001>

<bundles_post_ra>
// kernel: tpu_custom_call.1
= control target key start
LH: loop header
LB: loop body
LE: loop exit
PB: predicated region body
PF: predicated region fallthrough
CT: control target
= control target key end

     0   :  { %8 = vsyncpa [#allocation3], 0  ;;  %s12839_s0 = inlined_call_operand.vmem [shape: bf16[2,18,18,4], index: 0, kind: input, shape index: {}]   ;;  %s12840_s1 = inlined_call_operand.vmem [shape: bf16[9,4,128], index: 1, kind: input, shape index: {}]   ;;  %s12841_s2 = inlined_call_operand.vmem [shape: f32[1,128], index: 2, kind: input, shape index: {}]   ;;  %s12842_s3 = inlined_call_operand.hbm [shape: f32[2,64,128], index: 3, kind: output, shape index: {}]  }
   0x1   :  { %10 = vsyncpa [#allocation3 + $0x1], 0  ;;  %s9060_s12 = smov 0   ;;  %s9062_s13 = smov 0  }
   0x2   :  { %s9064_s14 = smov 0   ;;  %s9066_s15 = smov 0  }
   0x3   :  { %s9068_s16 = smov 0   ;;  %s9070_s17 = smov 0  }
   0x4 LB: > { %s8506_s18 = sadd.s32 4294967295, %s9034_s17   ;;  %s8507_s19 = sadd.s32 4294967294, %s9034_s17   ;;  %s9034_s17 = sphi %s9070_s17, %s16_s17   ;;  %s9030_s16 = sphi %s9068_s16, %s14022_s16   ;;  %s9026_s15 = sphi %s9066_s15, %s14021_s15   ;;  %s9022_s14 = sphi %s9064_s14, %s14020_s14   ;;  %s9018_s13 = sphi %s9062_s13, %s14019_s13   ;;  %s9014_s12 = sphi %s9060_s12, %s14018_s12  }
   0x5   : > { %s28_s20 = sadd.s32 1, %s9030_s16  ;;  %s105_s21 = sadd.s32 1, %s9022_s14 }
   0x6   : > { %p30_p0 = scmp.ge.s32.totalorder %s28_s20, 2  ;;  %p115_p1 = scmp.ne.s32.totalorder %s9022_s14, %s9018_s13 }
   0x7   : > { %p116_p2 = scmp.eq.s32.totalorder %s8506_s18, 1  ;;  %p121_p3 = scmp.ne.s32.totalorder %s9018_s13, %s9014_s12 }
   0x8   : > { %s14024_s20 = smov (%p30_p0, %s28_s20), 0  ;;  %p122_p5 = scmp.eq.s32.totalorder %s8507_s19, 1 }
   0x9   : > { %p9100_p4 = por %p116_p2, %p115_p1  ;;  %s100_s23 = ssub.s32 %s9030_s16, %s14024_s20 }
   0xa   : > { %p8510_p6 = scmp.ge.s32.totalorder %s9034_s17, 1  ;;  %p103_p7 = scmp.eq.s32.totalorder %s100_s23, 0 }
   0xb   : > { %p9107_p8 = por %p122_p5, %p121_p3  ;;  %p154_p9 = scmp.lt.s32.totalorder %s9034_s17, 3 }
   0xc   : > { %s9113_s25 = scalar_select %p103_p7, %s9022_s14, %s105_s21  }
   0xd   : > { %p155_p10 = pnand %p8510_p6, %p154_p9 }
   0xf   : > { %158 = sbr.rel (%p155_p10) target bundleno = 856 (0x358), region = 32 }
  0x14   : > { %v8547_v0 = vld [vmem:[%s12840_s1 + $0x6] sm:$0x3]  ;;  %vm13113_vm0 = vcmask 1041408   ;;  %p178_p11 = scmp.lt.s32.totalorder %s9026_s15, 1  ;;  %v285_v1 = vlaneseq  ;;  %v9036_v3 = vmov 1966171168  }
  0x15   : > { %8889 = vmatprep.subr.msk.bf16.mxu1 %vm13113_vm0, %v8547_v0  ;;  %8888 = vmatprep.subr.msk.bf16.mxu0 %vm13113_vm0, %v8547_v0  ;;  %v2191_v2 = vsel %vm13113_vm0, %v8547_v0, 0  ;;  %v283_v4 = vunpack.c.l.s4 %v9036_v3  ;;  %v1090_v5 = vld [vmem:[%s12840_s1] sm:$0x3]  ;;  %v8556_v13 = vld [vmem:[%s12840_s1 + $0xc] sm:$0x3]  ;;  %vm13115_vm1 = vcmask 1041409  }
  0x16   : > { %8887 = vmatpush3.bf16.msra.mxu1 %v2191_v2  ;;  %8797 = vmatpush3.bf16.msra.mxu0 %v2191_v2  ;;  %s179_s30 = scalar_select %p178_p11, %s9026_s15, 1  ;;  %v286_v6 = vshrl.u32 %v285_v1, 7  ;;  %v9147_v17 = vsel %vm13113_vm0, %v1090_v5, 0  ;;  %v9168_v26 = vsel %vm13113_vm0, %v8556_v13, 0  ;;  %vm13114_vm2 = vcmask 1042434  }
  0x17   : > { %v284_v7 = vunpack.c.0.s8 %v283_v4  ;;  %8890 = vmatprep.subr.msk.bf16.mxu1 %vm13113_vm0, %v1090_v5  ;;  %8891 = vmatprep.subr.msk.bf16.mxu0 %vm13113_vm0, %v8556_v13  ;;  %vm13116_vm3 = vcmask 1043459   ;;  %vm2063_vm4 = vcmask 1044484   ;;  %vm2066_vm5 = vcmask 1045509   ;;  %s175_s9 = sand.u32 1, %s9018_s13   ;;  %s8750_s18 = sshll.u32 %s9026_s15, 10 }
  0x18   : > { %s8898_s4 = smul.u32 216, %s179_s30  ;;  %vm2069_vm6 = vcmask 1046534   ;;  %vm2072_vm7 = vcmask 1047559   ;;  %vm13117_vm8 = vcmask 31744   ;;  %vm3897_vm9 = vsmask.f32 256  ;;  %s12786_s26 = scalar_lea.hbm %s12842_s3, %s8750_s18 }
  0x19   : > { %v9127_v8 = vsub.s32 %v284_v7, %v286_v6  ;;  %vm3898_vm10 = vsmask.f32 1284  ;;  %vm3900_vm12 = vsmask.f32 2312  ;;  %vm3902_vm14 = vsmask.f32 3340 }
  0x1a   : > { %s9132_s7 = scalar_lea.vmem %s12839_s0, %s8898_s4  ;;  %vm3899_vm11 = vmor %vm3897_vm9, %vm3898_vm10  ;;  %vm3904_vm15 = vsmask.f32 4368  ;;  %s8511_s10 = sshll.u32 %s175_s9, 6 }
  0x1b   : > { %v8515_v9 = vld.sshfl [vmem:[%s9132_s7 + $0xc] sm:$0x33 pattern:$0x75316420]  ;;  %vm3901_vm13 = vmor %vm3899_vm11, %vm3900_vm12  ;;  %s12765_s11 = scalar_lea.vmem [#allocation2], %s8511_s10  ;;  %s12794_s27 = scalar_lea.sflag [#allocation3], %s175_s9 }
  0x1c   : > { %v8516_v10 = vld.sshfl [vmem:[%s9132_s7 + $0x10] sm:$0x33 pattern:$0x75316420]  ;;  %v329_v11 = vcombine.high %v8515_v9, %v8515_v9  ;;  %v9137_v12 = vrot.slane %v8515_v9, %v9127_v8  ;;  %s8431_s19 = sshll.u32 %s12765_s11, 4  ;;  %s9037_s28 = smov [#allocation2]   ;;  %s12788_s19 = int_to_ptr.vmem [resolvable:$true] %s8431_s19 }
  0x1d   : > { %v8519_v14 = vld.sshfl [vmem:[%s9132_s7 + $0x24] sm:$0x33 pattern:$0x75316420]  ;;  %v353_v15 = vcombine.high %v8516_v10, %v8516_v10  ;;  %v9144_v16 = vrot.slane %v8516_v10, %v9127_v8  ;;  %s8958_s15 = scalar_lea.vmem %s12788_s19, 1024  ;;  %s8962_s29 = sshll.u32 %s9037_s28, 4  ;;  %s8963_s29 = int_to_ptr.vmem [resolvable:$false] %s8962_s29 }
  0x1e   : > { %13152 = vst [vmem:[#allocation5_spill] sm:$0xff] %v9137_v12  ;;  %v8520_v18 = vld.sshfl [vmem:[%s9132_s7 + $0x28] sm:$0x33 pattern:$0x75316420]  ;;  %v9152_v19 = vrot.slane %v329_v11, %v9127_v8  ;;  %v9156_v20 = vcombine.high %v9137_v12, %v9137_v12  ;;  %v425_v21 = vcombine.high %v8519_v14, %v8519_v14  ;;  %v9159_v22 = vrot.slane %v8519_v14, %v9127_v8  ;;  %p8959_p12 = scmp.ne.s32.totalorder %s12788_s19, %s8958_s15  ;;  %s8964_s30 = scalar_lea.vmem %s8963_s29, 2048 }
  0x1f   : > { %13153 = vst [vmem:[#allocation6_spill] sm:$0xff] %v9144_v16  ;;  %v9162_v23 = vrot.slane %v353_v15, %v9127_v8  ;;  %v449_v24 = vcombine.high %v8520_v18, %v8520_v18  ;;  %v9165_v25 = vrot.slane %v8520_v18, %v9127_v8  ;;  %v9176_v28 = vcombine.high %v9144_v16, %v9144_v16  ;;  %p8965_p1 = scmp.lt.s32.totalorder %s12788_s19, %s8963_s29  ;;  %p8966_p2 = scmp.lt.s32.totalorder %s8964_s30, %s8958_s15 }
  0x20   : > { %13154 = vst [vmem:[#allocation7_spill] sm:$0xff] %v9152_v19  ;;  %13155 = vst [vmem:[#allocation8_spill] sm:$0xff] %v9156_v20  ;;  %v9172_v27 = vcombine.high %v9152_v19, %v9152_v19  ;;  %v9179_v29 = vrot.slane %v425_v21, %v9127_v8  ;;  %v1099_v30 = vrot.slane %v9137_v12, %v9127_v8  ;;  %p8960_p13 = pnand %p8959_p12, %p9100_p4 }
  0x21   : > { %13156 = vst [vmem:[#allocation9_spill] sm:$0xff] %v9159_v22  ;;  %13157 = vst [vmem:[#allocation10_spill] sm:$0xff] %v9162_v23  ;;  %v9185_v31 = vcombine.high %v9162_v23, %v9162_v23  ;;  %v9189_v32 = vcombine.high %v9159_v22, %v9159_v22  ;;  %v9192_v33 = vrot.slane %v449_v24, %v9127_v8  ;;  %p8967_p3 = por %p8966_p2, %p8965_p1 }
  0x22   : > { %13158 = vst [vmem:[#allocation11_spill] sm:$0xff] %v9165_v25  ;;  %13159 = vst [vmem:[#allocation12_spill] sm:$0xff] %v9172_v27  ;;  %v1113_v34 = vrot.slane %v9152_v19, %v9127_v8  ;;  %v9198_v35 = vcombine.high %v9179_v29, %v9179_v29  ;;  %v9202_v36 = vcombine.high %v9165_v25, %v9165_v25  ;;  %p8961_p0 = pneg %p8960_p13 }
  0x23   : > { %13160 = vst [vmem:[#allocation13_spill] sm:$0xff] %v9176_v28  ;;  %13161 = vst [vmem:[#allocation14_spill] sm:$0xff] %v9179_v29  ;;  %v1127_v37 = vrot.slane %v9156_v20, %v9127_v8  ;;  %v1141_v38 = vrot.slane %v9172_v27, %v9127_v8  ;;  %v9210_v39 = vcombine.high %v9192_v33, %v9192_v33 }
  0x24   : > { %13162 = vst [vmem:[#allocation15_spill] sm:$0xff] %v9185_v31  ;;  %13163 = vst [vmem:[#allocation16_spill] sm:$0xff] %v9189_v32  ;;  %v1106_v40 = vrot.slane %v1099_v30, %v9127_v8  ;;  %v1155_v41 = vrot.slane %v9144_v16, %v9127_v8  ;;  %v1169_v42 = vrot.slane %v9162_v23, %v9127_v8  ;;  %p8968_p5 = pnand %p8967_p3, %p8961_p0 }
  0x25   : > { %13164 = vst [vmem:[#allocation17_spill] sm:$0xff] %v9192_v33  ;;  %13165 = vst [vmem:[#allocation18_spill] sm:$0xff] %v9198_v35  ;;  %v9218_v43 = vrot.slane %v1113_v34, %v9127_v8  ;;  %v9221_v44 = vrot.slane %v1127_v37, %v9127_v8  ;;  %v1183_v45 = vrot.slane %v9176_v28, %v9127_v8 }
  0x26   : > { %13166 = vst [vmem:[#allocation19_spill] sm:$0xff] %v9202_v36  ;;  %13167 = vst [vmem:[#allocation20_spill] sm:$0xff] %v9210_v39  ;;  %v1197_v46 = vrot.slane %v9185_v31, %v9127_v8  ;;  %v9228_v47 = vrot.slane %v1141_v38, %v9127_v8  ;;  %v9231_v48 = vrot.slane %v1155_v41, %v9127_v8  ;;  %v1989_v7 = vunpack.c.l.b16 %v1106_v40 }
  0x27   : > { %13168 = vst [vmem:[#allocation21_spill] sm:$0xff] %v9218_v43  ;;  %v1211_v49 = vrot.slane %v9159_v22, %v9127_v8  ;;  %v1225_v50 = vrot.slane %v9179_v29, %v9127_v8  ;;  %v9238_v51 = vrot.slane %v1169_v42, %v9127_v8  ;;  %v9241_v52 = vrot.slane %v1183_v45, %v9127_v8 }
  0x28   : > { %v1239_v53 = vrot.slane %v9189_v32, %v9127_v8  ;;  %v1253_v54 = vrot.slane %v9198_v35, %v9127_v8  ;;  %v9248_v55 = vrot.slane %v1197_v46, %v9127_v8  ;;  %v1267_v57 = vrot.slane %v9165_v25, %v9127_v8 }
  0x29   : > { %v9251_v56 = vrot.slane %v1225_v50, %v9127_v8  ;;  %v1281_v58 = vrot.slane %v9192_v33, %v9127_v8  ;;  %v1295_v61 = vrot.slane %v9202_v36, %v9127_v8  ;;  %v1309_v62 = vrot.slane %v9210_v39, %v9127_v8 }
  0x2a   : > { %v9258_v59 = vrot.slane %v1239_v53, %v9127_v8  ;;  %v9261_v60 = vrot.slane %v1253_v54, %v9127_v8  ;;  %v1218_v63 = vrot.slane %v1211_v49, %v9127_v8  ;;  %v9269_v0 = vrot.slane %v1267_v57, %v9127_v8 }
  0x2b   : > { %13169 = vst [vmem:[#allocation22_spill] sm:$0xff] %v9251_v56  ;;  %v9272_v1 = vrot.slane %v1281_v58, %v9127_v8  ;;  %v12844_v2 = vunpack.c.l.b16 %v9218_v43  ;;  %v9276_v3 = vrot.slane %v1295_v61, %v9127_v8  ;;  %v9279_v4 = vrot.slane %v1309_v62, %v9127_v8 }
  0x2c   : > { %v1991_v5 = vunpack.c.l.b16 %v9221_v44  ;;  %v1992_v6 = vunpack.c.l.b16 %v9228_v47  ;;  %v1993_v9 = vunpack.c.l.b16 %v9231_v48  ;;  %v1994_v10 = vunpack.c.l.b16 %v9238_v51 }
  0x2d   : > { %v1995_v11 = vunpack.c.l.b16 %v9241_v52  ;;  %v1996_v13 = vunpack.c.l.b16 %v9248_v55  ;;  %v12843_v14 = vunpack.c.l.b16 %v9251_v56  ;;  %v1999_v15 = vunpack.c.l.b16 %v9258_v59 }
  0x2e   : > { %v2000_v18 = vunpack.c.l.b16 %v9261_v60  ;;  %v1997_v21 = vunpack.c.l.b16 %v1218_v63  ;;  %v12845_v24 = vunpack.c.l.b16 %v9269_v0  ;;  %v2002_v30 = vunpack.c.l.b16 %v9272_v1 }
  0x2f   : > { %v2003_v34 = vunpack.c.l.b16 %v9276_v3  ;;  %v12846_v37 = vunpack.c.l.b16 %v9279_v4  ;;  %v2053_v38 = vrot.slane %v12844_v2, 7  ;;  %v2056_v40 = vrot.slane %v1991_v5, 6 }
  0x30   : > { %v2059_v41 = vrot.slane %v1992_v6, 5  ;;  %v2062_v42 = vrot.slane %v1993_v9, 4  ;;  %v2065_v45 = vrot.slane %v1994_v10, 3  ;;  %v2068_v46 = vrot.slane %v1995_v11, 2 }
  0x31   : > { %v2074_v49 = vrot.slane %v12843_v14, 7  ;;  %v2055_v50 = vsel %vm13115_vm1, %v2053_v38, %v1989_v7  ;;  %v2076_v53 = vrot.slane %v1999_v15, 6  ;;  %v2078_v54 = vrot.slane %v2000_v18, 5 }
  0x32   : > { %v2080_v57 = vrot.slane %v12845_v24, 4  ;;  %v2058_v58 = vsel %vm13114_vm2, %v2056_v40, %v2055_v50  ;;  %v2071_v61 = vrot.slane %v1996_v13, 1  ;;  %v2082_v63 = vrot.slane %v2002_v30, 3 }
  0x33   : > { %v2075_v62 = vsel %vm13115_vm1, %v2074_v49, %v1997_v21  ;;  %v2061_v7 = vsel %vm13116_vm3, %v2059_v41, %v2058_v58  ;;  %v2084_v14 = vrot.slane %v2003_v34, 2  ;;  %v2086_v2 = vrot.slane %v12846_v37, 1 }
  0x34   : > { %v2077_v38 = vsel %vm13114_vm2, %v2076_v53, %v2075_v62  ;;  %v2064_v40 = vsel %vm2063_vm4, %v2062_v42, %v2061_v7  ;;  %v9381_v44 = vrot.slane %v1996_v13, 2  ;;  %v9385_v47 = vrot.slane %v1999_v15, 7 }
  0x35   : > { %v2079_v50 = vsel %vm13116_vm3, %v2078_v54, %v2077_v38  ;;  %v2067_v49 = vsel %vm2066_vm5, %v2065_v45, %v2064_v40  ;;  %v9389_v48 = vrot.slane %v2000_v18, 6  ;;  %v13178_v51 = vunpack.c.l.b16 %v9269_v0 }
  0x36   : > { %v2081_v41 = vsel %vm2063_vm4, %v2080_v57, %v2079_v50  ;;  %v2070_v62 = vsel %vm2069_vm6, %v2068_v46, %v2067_v49  ;;  %v8531_v49 = vld.sshfl [vmem:[%s9132_s7 + $0x6c] sm:$0x33 pattern:$0x75316420]  ;;  %v9369_v57 = vrot.slane %v1993_v9, 5  ;;  %13175 = vst [vmem:[#allocation28_spill] sm:$0xff] %v9381_v44 }
  0x37   : > { %v2083_v37 = vsel %vm2066_vm5, %v2082_v63, %v2081_v41  ;;  %v2073_v7 = vsel %vm2072_vm7, %v2071_v61, %v2070_v62  ;;  %v8535_v62 = vld.sshfl [vmem:[%s9132_s7 + $0x84] sm:$0x33 pattern:$0x75316420]  ;;  %v9377_v63 = vrot.slane %v1995_v11, 3  ;;  %13176 = vst [vmem:[#allocation29_spill] sm:$0xff] %v9385_v47  ;;  %v9404_v59 = vrot.slane %v8531_v49, %v9127_v8 }
  0x38   : > { %v2085_v45 = vsel %vm2069_vm6, %v2084_v14, %v2083_v37  ;;  %v8532_v37 = vld.sshfl [vmem:[%s9132_s7 + $0x70] sm:$0x33 pattern:$0x75316420]  ;;  %13172 = vst [vmem:[#allocation25_spill] sm:$0xff] %v9369_v57  ;;  %13177 = vst [vmem:[#allocation30_spill] sm:$0xff] %v9389_v48  ;;  %v9413_v1 = vrot.slane %v8535_v62, %v9127_v8 }
  0x39   : > { %v2087_v40 = vsel %vm2072_vm7, %v2086_v2, %v2085_v45  ;;  %v8536_v46 = vld.sshfl [vmem:[%s9132_s7 + $0x88] sm:$0x33 pattern:$0x75316420]  ;;  %v9373_v2 = vrot.slane %v1994_v10, 4  ;;  %13174 = vst [vmem:[#allocation27_spill] sm:$0xff] %v9377_v63  ;;  %v737_v9 = vcombine.high %v8532_v37, %v8532_v37  ;;  %v9407_v60 = vrot.slane %v8532_v37, %v9127_v8 }
  0x3a   : > { %v2172_v41 = vpack.c.b16 %v2087_v40, %v2073_v7  ;;  %v9361_v7 = vrot.slane %v1991_v5, 7  ;;  %v9365_v40 = vrot.slane %v1992_v6, 6  ;;  %v9393_v5 = vrot.slane %v13178_v51, 5  ;;  %13182 = vst [vmem:[#allocation34_spill] sm:$0xff] %v9404_v59  ;;  %13185 = vst [vmem:[#allocation37_spill] sm:$0xff] %v9413_v1 }
  0x3b   : > { %13173 = vst [vmem:[#allocation26_spill] sm:$0xff] %v9373_v2  ;;  %v9397_v52 = vrot.slane %v2002_v30, 4  ;;  %v9401_v55 = vrot.slane %v2003_v34, 3  ;;  %v713_v6 = vcombine.high %v8531_v49, %v8531_v49  ;;  %13183 = vst [vmem:[#allocation35_spill] sm:$0xff] %v9407_v60  ;;  %v809_v10 = vcombine.high %v8535_v62, %v8535_v62 }
  0x3c   : > { %8798 = vmatprep.mubr.msk.bf16.mxu0 %vm13117_vm8, %v2172_v41  ;;  %13170 = vst [vmem:[#allocation23_spill] sm:$0xff] %v9361_v7  ;;  %13171 = vst [vmem:[#allocation24_spill] sm:$0xff] %v9365_v40  ;;  %v833_v11 = vcombine.high %v8536_v46, %v8536_v46  ;;  %v9416_v3 = vrot.slane %v8536_v46, %v9127_v8  ;;  %v9420_v13 = vcombine.high %v9404_v59, %v9404_v59 }
  0x3d   : > { %13179 = vst [vmem:[#allocation31_spill] sm:$0xff] %v9393_v5  ;;  %13180 = vst [vmem:[#allocation32_spill] sm:$0xff] %v9397_v52  ;;  %v9410_v0 = vrot.slane %v713_v6, %v9127_v8  ;;  %v9423_v15 = vrot.slane %v737_v9, %v9127_v8  ;;  %v9427_v18 = vcombine.high %v9407_v60, %v9407_v60  ;;  %v13191_v34 = vunpack.c.l.b16 %v9279_v4 }
  0x3e   : > { %13181 = vst [vmem:[#allocation33_spill] sm:$0xff] %v9401_v55  ;;  %13186 = vst [vmem:[#allocation38_spill] sm:$0xff] %v9416_v3  ;;  %v9430_v30 = vrot.slane %v809_v10, %v9127_v8  ;;  %v9442_v41 = vcombine.high %v9413_v1, %v9413_v1  ;;  %v9445_v37 = vrot.slane %v833_v11, %v9127_v8 }
  0x3f   : > { %13184 = vst [vmem:[#allocation36_spill] sm:$0xff] %v9410_v0  ;;  %13187 = vst [vmem:[#allocation39_spill] sm:$0xff] %v9420_v13  ;;  %v9434_v49 = vrot.slane %v13191_v34, 2  ;;  %v9438_v46 = vcombine.high %v9410_v0, %v9410_v0  ;;  %v9449_v62 = vcombine.high %v9423_v15, %v9423_v15  ;;  %v9453_v4 = vcombine.high %v9416_v3, %v9416_v3 }
  0x40   : > { %13188 = vst [vmem:[#allocation40_spill] sm:$0xff] %v9423_v15  ;;  %13189 = vst [vmem:[#allocation41_spill] sm:$0xff] %v9427_v18  ;;  %v1547_v51 = vrot.slane %v9404_v59, %v9127_v8  ;;  %v1561_v6 = vrot.slane %v9410_v0, %v9127_v8  ;;  %v9461_v9 = vcombine.high %v9430_v30, %v9430_v30 }
  0x41   : > { %13190 = vst [vmem:[#allocation42_spill] sm:$0xff] %v9430_v30  ;;  %13192 = vst [vmem:[#allocation43_spill] sm:$0xff] %v9434_v49  ;;  %v1575_v10 = vrot.slane %v9420_v13, %v9127_v8  ;;  %v1589_v11 = vrot.slane %v9438_v46, %v9127_v8  ;;  %v1603_v34 = vrot.slane %v9407_v60, %v9127_v8 }
  0x42   : > { %13193 = vst [vmem:[#allocation44_spill] sm:$0xff] %v9438_v46  ;;  %13194 = vst [vmem:[#allocation45_spill] sm:$0xff] %v9442_v41  ;;  %v9471_v45 = vcombine.high %v9445_v37, %v9445_v37  ;;  %v1554_v14 = vrot.slane %v1547_v51, %v9127_v8  ;;  %v1617_v50 = vrot.slane %v9423_v15, %v9127_v8 }
  0x43   : > { %13195 = vst [vmem:[#allocation46_spill] sm:$0xff] %v9445_v37  ;;  %13196 = vst [vmem:[#allocation47_spill] sm:$0xff] %v9449_v62  ;;  %v1631_v54 = vrot.slane %v9427_v18, %v9127_v8  ;;  %v9479_v61 = vrot.slane %v1561_v6, %v9127_v8  ;;  %v9482_v38 = vrot.slane %v1575_v10, %v9127_v8 }
  0x44   : > { %13197 = vst [vmem:[#allocation48_spill] sm:$0xff] %v9453_v4  ;;  %13198 = vst [vmem:[#allocation49_spill] sm:$0xff] %v9461_v9  ;;  %v9485_v42 = vrot.slane %v1589_v11, %v9127_v8  ;;  %v1645_v21 = vrot.slane %v9449_v62, %v9127_v8  ;;  %v9490_v51 = vrot.slane %v1603_v34, %v9127_v8  ;;  %v2021_v47 = vunpack.c.l.b16 %v1554_v14 }
  0x45   : > { %13199 = vst [vmem:[#allocation50_spill] sm:$0xff] %v9471_v45  ;;  %13200 = vst [vmem:[#allocation51_spill] sm:$0xff] %v9479_v61  ;;  %v9493_v24 = vrot.slane %v1617_v50, %v9127_v8  ;;  %v1659_v53 = vrot.slane %v9413_v1, %v9127_v8  ;;  %v1673_v6 = vrot.slane %v9430_v30, %v9127_v8  ;;  %v13202_v14 = vunpack.c.l.b16 %v9479_v61 }
  0x46   : > { %v9500_v10 = vrot.slane %v1631_v54, %v9127_v8  ;;  %v1687_v11 = vrot.slane %v9442_v41, %v9127_v8  ;;  %v1701_v58 = vrot.slane %v9461_v9, %v9127_v8  ;;  %v1715_v34 = vrot.slane %v9416_v3, %v9127_v8 }
  0x47   : > { %v9509_v50 = vrot.slane %v1645_v21, %v9127_v8  ;;  %v9512_v49 = vrot.slane %v1673_v6, %v9127_v8  ;;  %v1729_v55 = vrot.slane %v9445_v37, %v9127_v8  ;;  %v1743_v54 = vrot.slane %v9453_v4, %v9127_v8 }
  0x48   : > { %v9519_v52 = vrot.slane %v1687_v11, %v9127_v8  ;;  %v9522_v5 = vrot.slane %v1701_v58, %v9127_v8  ;;  %v9525_v44 = vrot.slane %v1715_v34, %v9127_v8  ;;  %v1757_v21 = vrot.slane %v9471_v45, %v9127_v8 }
  0x49   : > { %13201 = vst [vmem:[#allocation52_spill] sm:$0xff] %v9512_v49  ;;  %v1666_v6 = vrot.slane %v1659_v53, %v9127_v8  ;;  %v9531_v63 = vrot.slane %v1729_v55, %v9127_v8  ;;  %v9534_v48 = vrot.slane %v1743_v54, %v9127_v8  ;;  %v2116_v53 = vrot.slane %v13202_v14, 7 }
  0x4a   : > { %v9538_v2 = vrot.slane %v1757_v21, %v9127_v8  ;;  %v13203_v56 = vunpack.c.l.b16 %v9482_v38  ;;  %v13204_v54 = vunpack.c.l.b16 %v9485_v42  ;;  %v13205_v21 = vunpack.c.l.b16 %v9490_v51 }
  0x4b   : > { %v2029_v58 = vunpack.c.l.b16 %v1666_v6  ;;  %v2117_v6 = vsel %vm13115_vm1, %v2116_v53, %v2021_v47  ;;  %v13206_v34 = vunpack.c.l.b16 %v9493_v24  ;;  %v13207_v57 = vunpack.c.l.b16 %v9500_v10 }
  0x4c   : > { %v2118_v7 = vrot.slane %v13203_v56, 6  ;;  %v2120_v11 = vrot.slane %v13204_v54, 5  ;;  %v2122_v43 = vrot.slane %v13205_v21, 4  ;;  %v13208_v14 = vunpack.c.l.b16 %v9512_v49 }
  0x4d   : > { %v2124_v40 = vrot.slane %v13206_v34, 3  ;;  %v2126_v61 = vrot.slane %v13207_v57, 2  ;;  %v13209_v56 = vunpack.c.l.b16 %v9519_v52  ;;  %v13210_v54 = vunpack.c.l.b16 %v9522_v5 }
  0x4e   : > { %v2130_v55 = vrot.slane %v13208_v14, 7  ;;  %v2119_v37 = vsel %vm13114_vm2, %v2118_v7, %v2117_v6  ;;  %v13211_v21 = vunpack.c.l.b16 %v9525_v44  ;;  %v13212_v34 = vunpack.c.l.b16 %v9509_v50 }
  0x4f   : > { %v2132_v3 = vrot.slane %v13209_v56, 6  ;;  %v2134_v30 = vrot.slane %v13210_v54, 5  ;;  %v2121_v53 = vsel %vm13116_vm3, %v2120_v11, %v2119_v37  ;;  %v13213_v14 = vunpack.c.l.b16 %v9531_v63 }
  0x50   : > { %v2136_v47 = vrot.slane %v13211_v21, 4  ;;  %v2128_v15 = vrot.slane %v13212_v34, 1  ;;  %v2131_v57 = vsel %vm13115_vm1, %v2130_v55, %v2029_v58  ;;  %v2123_v7 = vsel %vm2063_vm4, %v2122_v43, %v2121_v53 }
  0x51   : > { %v2138_v49 = vrot.slane %v13213_v14, 3  ;;  %v2133_v6 = vsel %vm13114_vm2, %v2132_v3, %v2131_v57  ;;  %v13214_v56 = vunpack.c.l.b16 %v9534_v48  ;;  %v13215_v60 = vunpack.c.l.b16 %v9538_v2 }
  0x52   : > { %v2125_v37 = vsel %vm2066_vm5, %v2124_v40, %v2123_v7  ;;  %v2135_v11 = vsel %vm13116_vm3, %v2134_v30, %v2133_v6  ;;  %v8527_v30 = vld.sshfl [vmem:[%s9132_s7 + $0x54] sm:$0x33 pattern:$0x75316420]  ;;  %v13222_v7 = vunpack.c.l.b16 %v9493_v24  ;;  %v13232_v24 = vunpack.c.l.b16 %v9525_v44 }
  0x53   : > { %v2140_v54 = vrot.slane %v13214_v56, 2  ;;  %v2142_v21 = vrot.slane %v13215_v60, 1  ;;  %v2127_v55 = vsel %vm2069_vm6, %v2126_v61, %v2125_v37  ;;  %v2137_v43 = vsel %vm2063_vm4, %v2136_v47, %v2135_v11  ;;  %v8523_v37 = vld.sshfl [vmem:[%s9132_s7 + $0x3c] sm:$0x33 pattern:$0x75316420] }
  0x54   : > { %v2129_v57 = vsel %vm2072_vm7, %v2128_v15, %v2127_v55  ;;  %v2139_v60 = vsel %vm2066_vm5, %v2138_v49, %v2137_v43  ;;  %v13216_v49 = vunpack.c.l.b16 %v9482_v38  ;;  %v8528_v56 = vld.sshfl [vmem:[%s9132_s7 + $0x58] sm:$0x33 pattern:$0x75316420]  ;;  %v13220_v43 = vunpack.c.l.b16 %v9490_v51 }
  0x55   : > { %v2141_v14 = vsel %vm2069_vm6, %v2140_v54, %v2139_v60  ;;  %v8524_v60 = vld.sshfl [vmem:[%s9132_s7 + $0x40] sm:$0x33 pattern:$0x75316420]  ;;  %v13230_v51 = vunpack.c.l.b16 %v9522_v5  ;;  %v13236_v50 = vunpack.c.l.b16 %v9534_v48  ;;  %v9669_v44 = vrot.slane %v8527_v30, %v9127_v8 }
  0x56   : > { %v2143_v6 = vsel %vm2072_vm7, %v2142_v21, %v2141_v14  ;;  %v9618_v15 = vrot.slane %v13216_v49, 7  ;;  %v9628_v54 = vrot.slane %v13220_v43, 5  ;;  %v9632_v21 = vrot.slane %v13222_v7, 4 }
  0x57   : > { %v2174_v11 = vpack.c.b16 %v2143_v6, %v2129_v57  ;;  %v13218_v57 = vunpack.c.l.b16 %v9485_v42  ;;  %v13224_v14 = vunpack.c.l.b16 %v9500_v10  ;;  %v13226_v49 = vmov %v13212_v34  ;;  %13240 = vst [vmem:[#allocation66_spill] sm:$0xff] %v9669_v44 }
  0x58   : > { %13217 = vst [vmem:[#allocation53_spill] sm:$0xff] %v9618_v15  ;;  %13221 = vst [vmem:[#allocation55_spill] sm:$0xff] %v9628_v54  ;;  %v9640_v55 = vrot.slane %v13226_v49, 2  ;;  %v13228_v42 = vunpack.c.l.b16 %v9519_v52  ;;  %v9648_v43 = vrot.slane %v13230_v51, 6  ;;  %v9652_v7 = vrot.slane %v13232_v24, 5 }
  0x59   : > { %8802 = vmatprep.mubr.msk.bf16.mxu1 %vm13117_vm8, %v2174_v11  ;;  %v9624_v6 = vrot.slane %v13218_v57, 6  ;;  %13223 = vst [vmem:[#allocation56_spill] sm:$0xff] %v9632_v21  ;;  %v9636_v38 = vrot.slane %v13224_v14, 3  ;;  %v13234_v10 = vunpack.c.l.b16 %v9531_v63  ;;  %v9660_v57 = vrot.slane %v13236_v50, 3 }
  0x5a   : > { %13227 = vst [vmem:[#allocation58_spill] sm:$0xff] %v9640_v55  ;;  %v9644_v11 = vrot.slane %v13228_v42, 7  ;;  %13231 = vst [vmem:[#allocation60_spill] sm:$0xff] %v9648_v43  ;;  %v521_v49 = vcombine.high %v8523_v37, %v8523_v37  ;;  %v9663_v52 = vrot.slane %v8523_v37, %v9127_v8  ;;  %v545_v42 = vcombine.high %v8524_v60, %v8524_v60 }
  0x5b   : > { %13219 = vst [vmem:[#allocation54_spill] sm:$0xff] %v9624_v6  ;;  %13225 = vst [vmem:[#allocation57_spill] sm:$0xff] %v9636_v38  ;;  %v9656_v14 = vrot.slane %v13234_v10, 4  ;;  %v9666_v5 = vrot.slane %v8524_v60, %v9127_v8  ;;  %v617_v51 = vcombine.high %v8527_v30, %v8527_v30  ;;  %v641_v24 = vcombine.high %v8528_v56, %v8528_v56 }
  0x5c   : > { %13229 = vst [vmem:[#allocation59_spill] sm:$0xff] %v9644_v11  ;;  %13233 = vst [vmem:[#allocation61_spill] sm:$0xff] %v9652_v7  ;;  %v9672_v63 = vrot.slane %v521_v49, %v9127_v8  ;;  %v9676_v48 = vcombine.high %v9663_v52, %v9663_v52  ;;  %v9679_v10 = vrot.slane %v8528_v56, %v9127_v8  ;;  %v13244_v37 = vunpack.c.l.b16 %v9538_v2 }
  0x5d   : > { %13235 = vst [vmem:[#allocation62_spill] sm:$0xff] %v9656_v14  ;;  %13237 = vst [vmem:[#allocation63_spill] sm:$0xff] %v9660_v57  ;;  %v9686_v60 = vrot.slane %v545_v42, %v9127_v8  ;;  %v9690_v30 = vcombine.high %v9666_v5, %v9666_v5  ;;  %v9693_v49 = vrot.slane %v617_v51, %v9127_v8 }
  0x5e   : > { %13238 = vst [vmem:[#allocation64_spill] sm:$0xff] %v9663_v52  ;;  %13239 = vst [vmem:[#allocation65_spill] sm:$0xff] %v9666_v5  ;;  %v9683_v50 = vrot.slane %v13244_v37, 2  ;;  %v9697_v61 = vcombine.high %v9672_v63, %v9672_v63  ;;  %v9701_v56 = vcombine.high %v9669_v44, %v9669_v44  ;;  %v9704_v2 = vrot.slane %v641_v24, %v9127_v8 }
  0x5f   : > { %13241 = vst [vmem:[#allocation67_spill] sm:$0xff] %v9672_v63  ;;  %13242 = vst [vmem:[#allocation68_spill] sm:$0xff] %v9676_v48  ;;  %v1323_v42 = vrot.slane %v9663_v52, %v9127_v8  ;;  %v9710_v37 = vcombine.high %v9686_v60, %v9686_v60  ;;  %v9714_v51 = vcombine.high %v9679_v10, %v9679_v10 }
  0x60   : > { %13243 = vst [vmem:[#allocation69_spill] sm:$0xff] %v9679_v10  ;;  %13245 = vst [vmem:[#allocation70_spill] sm:$0xff] %v9683_v50  ;;  %v1337_v47 = vrot.slane %v9672_v63, %v9127_v8  ;;  %v1351_v40 = vrot.slane %v9676_v48, %v9127_v8  ;;  %v9722_v24 = vcombine.high %v9693_v49, %v9693_v49 }
  0x61   : > { %13246 = vst [vmem:[#allocation71_spill] sm:$0xff] %v9686_v60  ;;  %13247 = vst [vmem:[#allocation72_spill] sm:$0xff] %v9690_v30  ;;  %v9726_v58 = vcombine.high %v9704_v2, %v9704_v2  ;;  %v1365_v34 = vrot.slane %v9697_v61, %v9127_v8  ;;  %v1379_v3 = vrot.slane %v9666_v5, %v9127_v8 }
  0x62   : > { %13248 = vst [vmem:[#allocation73_spill] sm:$0xff] %v9693_v49  ;;  %13249 = vst [vmem:[#allocation74_spill] sm:$0xff] %v9697_v61  ;;  %v1330_v53 = vrot.slane %v1323_v42, %v9127_v8  ;;  %v9734_v50 = vrot.slane %v1337_v47, %v9127_v8  ;;  %v1393_v57 = vrot.slane %v9686_v60, %v9127_v8  ;;  %v8521_v60 = vld.sshfl [vmem:[%s9132_s7 + $0x30] sm:$0x33 pattern:$0x75316420] }
  0x63   : > { %13250 = vst [vmem:[#allocation75_spill] sm:$0xff] %v9701_v56  ;;  %13251 = vst [vmem:[#allocation76_spill] sm:$0xff] %v9704_v2  ;;  %v1407_v14 = vrot.slane %v9690_v30, %v9127_v8  ;;  %v9741_v55 = vrot.slane %v1351_v40, %v9127_v8  ;;  %v9744_v7 = vrot.slane %v1365_v34, %v9127_v8 }
  0x64   : > { %13252 = vst [vmem:[#allocation77_spill] sm:$0xff] %v9710_v37  ;;  %13253 = vst [vmem:[#allocation78_spill] sm:$0xff] %v9714_v51  ;;  %v1421_v38 = vrot.slane %v9710_v37, %v9127_v8  ;;  %v1435_v42 = vrot.slane %v9669_v44, %v9127_v8  ;;  %v9751_v47 = vrot.slane %v1379_v3, %v9127_v8  ;;  %v2005_v62 = vunpack.c.l.b16 %v1330_v53 }
  0x65   : > { %13254 = vst [vmem:[#allocation79_spill] sm:$0xff] %v9722_v24  ;;  %13255 = vst [vmem:[#allocation80_spill] sm:$0xff] %v9726_v58  ;;  %v9754_v43 = vrot.slane %v1393_v57, %v9127_v8  ;;  %v1449_v21 = vrot.slane %v9693_v49, %v9127_v8  ;;  %v1463_v40 = vrot.slane %v9701_v56, %v9127_v8  ;;  %v13258_v18 = vunpack.c.l.b16 %v9734_v50 }
  0x66   : > { %13256 = vst [vmem:[#allocation81_spill] sm:$0xff] %v9734_v50  ;;  %v9761_v34 = vrot.slane %v1407_v14, %v9127_v8  ;;  %v9764_v54 = vrot.slane %v1421_v38, %v9127_v8  ;;  %v1477_v11 = vrot.slane %v9722_v24, %v9127_v8  ;;  %v1491_v3 = vrot.slane %v9679_v10, %v9127_v8 }
  0x67   : > { %v1442_v57 = vrot.slane %v1435_v42, %v9127_v8  ;;  %v9772_v6 = vrot.slane %v1449_v21, %v9127_v8  ;;  %v1505_v15 = vrot.slane %v9704_v2, %v9127_v8  ;;  %v1519_v14 = vrot.slane %v9714_v51, %v9127_v8 }
  0x68   : > { %v9779_v38 = vrot.slane %v1463_v40, %v9127_v8  ;;  %v9782_v4 = vrot.slane %v1477_v11, %v9127_v8  ;;  %v9785_v45 = vrot.slane %v1491_v3, %v9127_v8  ;;  %v1533_v42 = vrot.slane %v9726_v58, %v9127_v8 }
  0x69   : > { %13257 = vst [vmem:[#allocation82_spill] sm:$0xff] %v9772_v6  ;;  %v9790_v21 = vrot.slane %v1505_v15, %v9127_v8  ;;  %v9793_v1 = vrot.slane %v1519_v14, %v9127_v8  ;;  %v2013_v13 = vunpack.c.l.b16 %v1442_v57  ;;  %v2088_v53 = vrot.slane %v13258_v18, 7 }
  0x6a   : > { %v9798_v9 = vrot.slane %v1533_v42, %v9127_v8  ;;  %v13259_v15 = vunpack.c.l.b16 %v9741_v55  ;;  %v13260_v57 = vunpack.c.l.b16 %v9744_v7  ;;  %v13261_v41 = vunpack.c.l.b16 %v9751_v47 }
  0x6b   : > { %v13262_v42 = vunpack.c.l.b16 %v9754_v43  ;;  %v2089_v11 = vsel %vm13115_vm1, %v2088_v53, %v2005_v62  ;;  %v13263_v3 = vunpack.c.l.b16 %v9761_v34  ;;  %v13264_v18 = vunpack.c.l.b16 %v9772_v6 }
  0x6c   : > { %v2090_v46 = vrot.slane %v13259_v15, 6  ;;  %v2092_v14 = vrot.slane %v13260_v57, 5  ;;  %v2094_v40 = vrot.slane %v13261_v41, 4  ;;  %v13265_v15 = vunpack.c.l.b16 %v9779_v38 }
  0x6d   : > { %v2096_v0 = vrot.slane %v13262_v42, 3  ;;  %v2098_v50 = vrot.slane %v13263_v3, 2  ;;  %v2102_v49 = vrot.slane %v13264_v18, 7  ;;  %v13266_v57 = vunpack.c.l.b16 %v9764_v54 }
  0x6e   : > { %v2104_v59 = vrot.slane %v13265_v15, 6  ;;  %v2091_v63 = vsel %vm13114_vm2, %v2090_v46, %v2089_v11  ;;  %v13267_v41 = vunpack.c.l.b16 %v9782_v4  ;;  %v13268_v42 = vunpack.c.l.b16 %v9785_v45 }
  0x6f   : > { %v2100_v36 = vrot.slane %v13266_v57, 1  ;;  %v2093_v53 = vsel %vm13116_vm3, %v2092_v14, %v2091_v63  ;;  %v2103_v3 = vsel %vm13115_vm1, %v2102_v49, %v2013_v13  ;;  %v13269_v18 = vunpack.c.l.b16 %v9790_v21 }
  0x70   : > { %v2106_v39 = vrot.slane %v13267_v41, 5  ;;  %v2108_v62 = vrot.slane %v13268_v42, 4  ;;  %v13270_v15 = vunpack.c.l.b16 %v9793_v1  ;;  %v2095_v46 = vsel %vm2063_vm4, %v2094_v40, %v2093_v53 }
  0x71   : > { %v2110_v6 = vrot.slane %v13269_v18, 3  ;;  %v2105_v11 = vsel %vm13114_vm2, %v2104_v59, %v2103_v3  ;;  %v13271_v57 = vunpack.c.l.b16 %v9798_v9  ;;  %v2097_v42 = vsel %vm2066_vm5, %v2096_v0, %v2095_v46 }
  0x72   : > { %v2112_v33 = vrot.slane %v13270_v15, 2  ;;  %v2107_v63 = vsel %vm13116_vm3, %v2106_v39, %v2105_v11  ;;  %v2099_v14 = vsel %vm2069_vm6, %v2098_v50, %v2097_v42  ;;  %v8544_v11 = vld.sshfl [vmem:[%s9132_s7 + $0xb8] sm:$0x33 pattern:$0x75316420]  ;;  %v13272_v50 = vunpack.c.l.b16 %v9741_v55 }
  0x73   : > { %v2114_v41 = vrot.slane %v13271_v57, 1  ;;  %v2109_v18 = vsel %vm2063_vm4, %v2108_v62, %v2107_v63  ;;  %v2101_v53 = vsel %vm2072_vm7, %v2100_v36, %v2099_v14  ;;  %v13276_v57 = vunpack.c.l.b16 %v9751_v47 }
  0x74   : > { %v2111_v3 = vsel %vm2066_vm5, %v2110_v6, %v2109_v18  ;;  %v8539_v18 = vld.sshfl [vmem:[%s9132_s7 + $0x9c] sm:$0x33 pattern:$0x75316420]  ;;  %v9888_v0 = vrot.slane %v13272_v50, 7  ;;  %v13282_v55 = vunpack.c.l.b16 %v9764_v54  ;;  %v13286_v47 = vunpack.c.l.b16 %v9782_v4 }
  0x75   : > { %v2113_v15 = vsel %vm2069_vm6, %v2112_v33, %v2111_v3  ;;  %v8540_v3 = vld.sshfl [vmem:[%s9132_s7 + $0xa0] sm:$0x33 pattern:$0x75316420]  ;;  %v9896_v63 = vrot.slane %v13276_v57, 5  ;;  %v13278_v33 = vunpack.c.l.b16 %v9754_v43  ;;  %v13288_v43 = vunpack.c.l.b16 %v9785_v45 }
  0x76   : > { %v2115_v36 = vsel %vm2072_vm7, %v2114_v41, %v2113_v15  ;;  %v8543_v6 = vld.sshfl [vmem:[%s9132_s7 + $0xb4] sm:$0x33 pattern:$0x75316420]  ;;  %13273 = vst [vmem:[#allocation83_spill] sm:$0xff] %v9888_v0  ;;  %v13274_v41 = vunpack.c.l.b16 %v9744_v7  ;;  %v9908_v50 = vrot.slane %v13282_v55, 2  ;;  %v13284_v7 = vunpack.c.l.b16 %v9779_v38 }
  0x77   : > { %v2173_v42 = vpack.c.b16 %v2115_v36, %v2101_v53  ;;  %v9881_v53 = vld [vmem:[%s12840_s1 + $0x8] sm:$0x3]  ;;  %13277 = vst [vmem:[#allocation85_spill] sm:$0xff] %v9896_v63  ;;  %v9900_v62 = vrot.slane %v13278_v33, 4  ;;  %v9917_v57 = vrot.slane %v13286_v47, 6  ;;  %v9921_v33 = vrot.slane %v13288_v43, 5 }
  0x78   : > { %v9892_v15 = vrot.slane %v13274_v41, 6  ;;  %13283 = vst [vmem:[#allocation88_spill] sm:$0xff] %v9908_v50  ;;  %v9913_v41 = vrot.slane %v13284_v7, 7  ;;  %v905_v38 = vcombine.high %v8539_v18, %v8539_v18  ;;  %v9934_v4 = vrot.slane %v8539_v18, %v9127_v8 }
  0x79   : > { %8799 = vmatmul.mubr.msk.bf16.vlgmr.msra.gmra.mxu0 %vm13117_vm8, %v2173_v42  ;;  %13279 = vst [vmem:[#allocation86_spill] sm:$0xff] %v9900_v62  ;;  %v13280_v42 = vunpack.c.l.b16 %v9761_v34  ;;  %13287 = vst [vmem:[#allocation90_spill] sm:$0xff] %v9917_v57  ;;  %v13290_v34 = vunpack.c.l.b16 %v9790_v21  ;;  %v929_v55 = vcombine.high %v8540_v3, %v8540_v3  ;;  %v9937_v45 = vrot.slane %v8540_v3, %v9127_v8 }
  0x7a   : > { %13275 = vst [vmem:[#allocation84_spill] sm:$0xff] %v9892_v15  ;;  %8817 = vmatpush3.bf16.msra.mxu0 %v9168_v26  ;;  %13285 = vst [vmem:[#allocation89_spill] sm:$0xff] %v9913_v41  ;;  %v13292_v26 = vunpack.c.l.b16 %v9793_v1  ;;  %v1001_v7 = vcombine.high %v8543_v6, %v8543_v6  ;;  %v9940_v21 = vrot.slane %v8543_v6, %v9127_v8 }
  0x7b   : > { %v9904_v36 = vrot.slane %v13280_v42, 3  ;;  %13289 = vst [vmem:[#allocation91_spill] sm:$0xff] %v9921_v33  ;;  %v9925_v42 = vrot.slane %v13290_v34, 4  ;;  %8893 = vmatprep.subr.msk.bf16.mxu0 %vm13113_vm0, %v9881_v53  ;;  %13294 = vst [vmem:[#allocation94_spill] sm:$0xff] %v9934_v4  ;;  %v1025_v47 = vcombine.high %v8544_v11, %v8544_v11  ;;  %v9943_v43 = vrot.slane %v905_v38, %v9127_v8 }
  0x7c   : > { %v9931_v54 = vrot.slane %v13292_v26, 3  ;;  %13295 = vst [vmem:[#allocation95_spill] sm:$0xff] %v9937_v45  ;;  %13296 = vst [vmem:[#allocation96_spill] sm:$0xff] %v9940_v21  ;;  %v9947_v1 = vcombine.high %v9934_v4, %v9934_v4  ;;  %v9950_v34 = vrot.slane %v929_v55, %v9127_v8  ;;  %v9953_v18 = vrot.slane %v8544_v11, %v9127_v8 }
  0x7d   : > { %13281 = vst [vmem:[#allocation87_spill] sm:$0xff] %v9904_v36  ;;  %13291 = vst [vmem:[#allocation92_spill] sm:$0xff] %v9925_v42  ;;  %v9957_v3 = vcombine.high %v9937_v45, %v9937_v45  ;;  %v9960_v6 = vrot.slane %v1001_v7, %v9127_v8  ;;  %v9964_v26 = vcombine.high %v9940_v21, %v9940_v21 }
  0x7e   : > { %13293 = vst [vmem:[#allocation93_spill] sm:$0xff] %v9931_v54  ;;  %13297 = vst [vmem:[#allocation97_spill] sm:$0xff] %v9943_v43  ;;  %v9967_v38 = vrot.slane %v1025_v47, %v9127_v8  ;;  %v9971_v55 = vcombine.high %v9943_v43, %v9943_v43  ;;  %v9975_v11 = vcombine.high %v9950_v34, %v9950_v34 }
  0x7f   : > { %13298 = vst [vmem:[#allocation98_spill] sm:$0xff] %v9947_v1  ;;  %13299 = vst [vmem:[#allocation99_spill] sm:$0xff] %v9950_v34  ;;  %v9979_v14 = vcombine.high %v9953_v18, %v9953_v18  ;;  %v1771_v7 = vrot.slane %v9934_v4, %v9127_v8  ;;  %v9985_v46 = vcombine.high %v9960_v6, %v9960_v6 }
  0x80   : > { %13300 = vst [vmem:[#allocation100_spill] sm:$0xff] %v9953_v18  ;;  %13301 = vst [vmem:[#allocation101_spill] sm:$0xff] %v9957_v3  ;;  %v9989_v47 = vcombine.high %v9967_v38, %v9967_v38  ;;  %v1785_v13 = vrot.slane %v9943_v43, %v9127_v8  ;;  %v1799_v22 = vrot.slane %v9947_v1, %v9127_v8 }
  0x81   : > { %13302 = vst [vmem:[#allocation102_spill] sm:$0xff] %v9960_v6  ;;  %13303 = vst [vmem:[#allocation103_spill] sm:$0xff] %v9964_v26  ;;  %v1778_v59 = vrot.slane %v1771_v7, %v9127_v8  ;;  %v1813_v39 = vrot.slane %v9971_v55, %v9127_v8  ;;  %v1827_v49 = vrot.slane %v9937_v45, %v9127_v8 }
  0x82   : > { %13304 = vst [vmem:[#allocation104_spill] sm:$0xff] %v9967_v38  ;;  %13305 = vst [vmem:[#allocation105_spill] sm:$0xff] %v9971_v55  ;;  %v1841_v40 = vrot.slane %v9950_v34, %v9127_v8  ;;  %v10003_v54 = vrot.slane %v1785_v13, %v9127_v8  ;;  %v10006_v50 = vrot.slane %v1799_v22, %v9127_v8  ;;  %v8514_v34 = vld.sshfl [vmem:[%s9132_s7 + $0x4] sm:$0x33 pattern:$0x75316420] }
  0x83   : > { %13306 = vst [vmem:[#allocation106_spill] sm:$0xff] %v9975_v11  ;;  %13307 = vst [vmem:[#allocation107_spill] sm:$0xff] %v9979_v14  ;;  %v1855_v42 = vrot.slane %v9957_v3, %v9127_v8  ;;  %v1869_v7 = vrot.slane %v9975_v11, %v9127_v8  ;;  %v10013_v36 = vrot.slane %v1813_v39, %v9127_v8  ;;  %v8513_v11 = vld.sshfl [vmem:[%s9132_s7] sm:$0x33 pattern:$0x75316420] }
  0x84   : > { %13308 = vst [vmem:[#allocation108_spill] sm:$0xff] %v9985_v46  ;;  %13309 = vst [vmem:[#allocation109_spill] sm:$0xff] %v9989_v47  ;;  %v10016_v33 = vrot.slane %v1827_v49, %v9127_v8  ;;  %v10019_v62 = vrot.slane %v1841_v40, %v9127_v8  ;;  %v1883_v13 = vrot.slane %v9940_v21, %v9127_v8 }
  0x85   : > { %13310 = vst [vmem:[#allocation110_spill] sm:$0xff] %v10003_v54  ;;  %13311 = vst [vmem:[#allocation111_spill] sm:$0xff] %v10006_v50  ;;  %v10024_v22 = vrot.slane %v1855_v42, %v9127_v8  ;;  %v10027_v57 = vrot.slane %v1869_v7, %v9127_v8  ;;  %v1897_v63 = vrot.slane %v9960_v6, %v9127_v8  ;;  %v13326_v21 = vunpack.c.l.b16 %v10013_v36 }
  0x86   : > { %13312 = vst [vmem:[#allocation112_spill] sm:$0xff] %v10013_v36  ;;  %13313 = vst [vmem:[#allocation113_spill] sm:$0xff] %v10016_v33  ;;  %v1911_v39 = vrot.slane %v9964_v26, %v9127_v8  ;;  %v1890_v49 = vrot.slane %v1883_v13, %v9127_v8  ;;  %v1925_v40 = vrot.slane %v9985_v46, %v9127_v8 }
  0x87   : > { %13314 = vst [vmem:[#allocation114_spill] sm:$0xff] %v10019_v62  ;;  %13315 = vst [vmem:[#allocation115_spill] sm:$0xff] %v10024_v22  ;;  %v1939_v15 = vrot.slane %v9953_v18, %v9127_v8  ;;  %v1953_v42 = vrot.slane %v9967_v38, %v9127_v8  ;;  %v10041_v7 = vrot.slane %v1897_v63, %v9127_v8  ;;  %v2037_v63 = vunpack.c.l.b16 %v1778_v59 }
  0x88   : > { %13316 = vst [vmem:[#allocation116_spill] sm:$0xff] %v10027_v57  ;;  %v10044_v41 = vrot.slane %v1911_v39, %v9127_v8  ;;  %v1967_v0 = vrot.slane %v9979_v14, %v9127_v8  ;;  %v1981_v13 = vrot.slane %v9989_v47, %v9127_v8  ;;  %v10051_v46 = vrot.slane %v1925_v40, %v9127_v8 }
  0x89   : > { %13317 = vst [vmem:[#allocation117_spill] sm:$0xff] %v10041_v7  ;;  %v10054_v18 = vrot.slane %v1939_v15, %v9127_v8  ;;  %v10057_v38 = vrot.slane %v1953_v42, %v9127_v8  ;;  %v2045_v6 = vunpack.c.l.b16 %v1890_v49  ;;  %v13324_v59 = vunpack.c.l.b16 %v10003_v54 }
  0x8a   : > { %13318 = vst [vmem:[#allocation118_spill] sm:$0xff] %v10044_v41  ;;  %13319 = vst [vmem:[#allocation119_spill] sm:$0xff] %v10051_v46  ;;  %v10060_v26 = vrot.slane %v1967_v0, %v9127_v8  ;;  %v10063_v39 = vrot.slane %v1981_v13, %v9127_v8  ;;  %v13325_v49 = vunpack.c.l.b16 %v10006_v50  ;;  %v2148_v13 = vrot.slane %v13326_v21, 5 }
  0x8b   : > { %13320 = vst [vmem:[#allocation120_spill] sm:$0xff] %v10054_v18  ;;  %13321 = vst [vmem:[#allocation121_spill] sm:$0xff] %v10057_v38  ;;  %v2144_v3 = vrot.slane %v13324_v59, 7  ;;  %v13327_v14 = vunpack.c.l.b16 %v10016_v33  ;;  %v13328_v40 = vunpack.c.l.b16 %v10019_v62  ;;  %v13329_v15 = vunpack.c.l.b16 %v10024_v22 }
  0x8c   : > { %13322 = vst [vmem:[#allocation122_spill] sm:$0xff] %v10060_v26  ;;  %13323 = vst [vmem:[#allocation123_spill] sm:$0xff] %v10063_v39  ;;  %v2146_v0 = vrot.slane %v13325_v49, 6  ;;  %v13330_v42 = vunpack.c.l.b16 %v10027_v57  ;;  %v13331_v49 = vunpack.c.l.b16 %v10041_v7  ;;  %v13332_v21 = vunpack.c.l.b16 %v10044_v41 }
  0x8d   : > { %v2150_v47 = vrot.slane %v13327_v14, 4  ;;  %v2152_v45 = vrot.slane %v13328_v40, 3  ;;  %v2154_v55 = vrot.slane %v13329_v15, 2  ;;  %v2145_v59 = vsel %vm13115_vm1, %v2144_v3, %v2037_v63 }
  0x8e   : > { %v2156_v54 = vrot.slane %v13330_v42, 1  ;;  %v2158_v50 = vrot.slane %v13331_v49, 7  ;;  %v2160_v36 = vrot.slane %v13332_v21, 6  ;;  %v13333_v33 = vunpack.c.l.b16 %v10051_v46 }
  0x8f   : > { %v2147_v40 = vsel %vm13114_vm2, %v2146_v0, %v2145_v59  ;;  %v13334_v22 = vunpack.c.l.b16 %v10054_v18  ;;  %v13335_v57 = vunpack.c.l.b16 %v10057_v38  ;;  %v13336_v3 = vunpack.c.l.b16 %v10060_v26  ;;  %v8517_v38 = vld.sshfl [vmem:[%s9132_s7 + $0x18] sm:$0x33 pattern:$0x75316420] }
  0x90   : > { %v2162_v14 = vrot.slane %v13333_v33, 5  ;;  %v2149_v49 = vsel %vm13116_vm3, %v2148_v13, %v2147_v40  ;;  %v2159_v21 = vsel %vm13115_vm1, %v2158_v50, %v2045_v6  ;;  %v13337_v7 = vunpack.c.l.b16 %v10063_v39 }
  0x91   : > { %v2164_v15 = vrot.slane %v13334_v22, 4  ;;  %v2166_v42 = vrot.slane %v13335_v57, 3  ;;  %v2168_v63 = vrot.slane %v13336_v3, 2  ;;  %v281_v33 = vcombine.high %v8513_v11, %v8513_v11 }
  0x92   : > { %v2170_v46 = vrot.slane %v13337_v7, 1  ;;  %v2151_v0 = vsel %vm2063_vm4, %v2150_v47, %v2149_v49  ;;  %v2161_v59 = vsel %vm13114_vm2, %v2160_v36, %v2159_v21  ;;  %v10116_v22 = vrot.slane %v8513_v11, %v9127_v8  ;;  %v8518_v36 = vld.sshfl [vmem:[%s9132_s7 + $0x1c] sm:$0x33 pattern:$0x75316420] }
  0x93   : > { %v305_v57 = vcombine.high %v8514_v34, %v8514_v34  ;;  %v2153_v26 = vsel %vm2066_vm5, %v2152_v45, %v2151_v0  ;;  %v2163_v3 = vsel %vm13116_vm3, %v2162_v14, %v2161_v59  ;;  %v10122_v13 = vrot.slane %v281_v33, %v9127_v8 }
  0x94   : > { %v10125_v50 = vrot.slane %v8514_v34, %v9127_v8  ;;  %v2155_v6 = vsel %vm2069_vm6, %v2154_v55, %v2153_v26  ;;  %v2165_v47 = vsel %vm2063_vm4, %v2164_v15, %v2163_v3  ;;  %v10132_v11 = vcombine.high %v10116_v22, %v10116_v22 }
  0x95   : > { %v10135_v45 = vrot.slane %v305_v57, %v9127_v8  ;;  %v2157_v7 = vsel %vm2072_vm7, %v2156_v54, %v2155_v6  ;;  %v2167_v14 = vsel %vm2066_vm5, %v2166_v42, %v2165_v47  ;;  %v10141_v34 = vcombine.high %v10122_v13, %v10122_v13  ;;  %v10183_v47 = vld [vmem:[%s12840_s1 + $0x2] sm:$0x3] }
  0x96   : > { %13338 = vst [vmem:[#allocation124_spill] sm:$0xff] %v10125_v50  ;;  %13339 = vst [vmem:[#allocation125_spill] sm:$0xff] %v10132_v11  ;;  %v10145_v26 = vcombine.high %v10125_v50, %v10125_v50  ;;  %v2169_v55 = vsel %vm2069_vm6, %v2168_v63, %v2167_v14  ;;  %v377_v15 = vcombine.high %v8517_v38, %v8517_v38 }
  0x97   : > { %13340 = vst [vmem:[#allocation126_spill] sm:$0xff] %v10135_v45  ;;  %13341 = vst [vmem:[#allocation127_spill] sm:$0xff] %v10141_v34  ;;  %v10150_v40 = vcombine.high %v10135_v45, %v10135_v45  ;;  %v10153_v49 = vrot.slane %v8517_v38, %v9127_v8  ;;  %v2171_v54 = vsel %vm2072_vm7, %v2170_v46, %v2169_v55 }
  0x98   : > { %13342 = vst [vmem:[#allocation128_spill] sm:$0xff] %v10145_v26  ;;  %v401_v42 = vcombine.high %v8518_v36, %v8518_v36  ;;  %v10157_v21 = vrot.slane %v8518_v36, %v9127_v8  ;;  %v2264_v33 = vrot.slane %v10116_v22, %v9127_v8  ;;  %v2175_v0 = vpack.c.b16 %v2171_v54, %v2157_v7 }
  0x99   : > { %13343 = vst [vmem:[#allocation129_spill] sm:$0xff] %v10150_v40  ;;  %13344 = vst [vmem:[#allocation130_spill] sm:$0xff] %v10153_v49  ;;  %v10162_v63 = vrot.slane %v377_v15, %v9127_v8  ;;  %v10166_v59 = vcombine.high %v10153_v49, %v10153_v49  ;;  %v2278_v38 = vrot.slane %v10122_v13, %v9127_v8 }
  0x9a   : > { %13345 = vst [vmem:[#allocation131_spill] sm:$0xff] %v10157_v21  ;;  %v10171_v46 = vrot.slane %v401_v42, %v9127_v8  ;;  %v10175_v57 = vcombine.high %v10157_v21, %v10157_v21  ;;  %v2271_v3 = vrot.slane %v2264_v33, %v9127_v8  ;;  %v2292_v6 = vrot.slane %v10132_v11, %v9127_v8 }
  0x9b   : > { %13346 = vst [vmem:[#allocation132_spill] sm:$0xff] %v10162_v63  ;;  %13347 = vst [vmem:[#allocation133_spill] sm:$0xff] %v10166_v59  ;;  %8803 = vmatmul.mubr.msk.bf16.vlgmr.msra.gmra.mxu1 %vm13117_vm8, %v2175_v0  ;;  %v10188_v36 = vcombine.high %v10162_v63, %v10162_v63  ;;  %v10191_v7 = vrot.slane %v2278_v38, %v9127_v8  ;;  %v2306_v14 = vrot.slane %v10141_v34, %v9127_v8 }
  0x9c   : > { %13348 = vst [vmem:[#allocation134_spill] sm:$0xff] %v10171_v46  ;;  %13349 = vst [vmem:[#allocation135_spill] sm:$0xff] %v10175_v57  ;;  %v2320_v55 = vrot.slane %v10125_v50, %v9127_v8  ;;  %8807 = vmatpush3.bf16.msra.mxu1 %v9147_v17  ;;  %v10200_v15 = vcombine.high %v10171_v46, %v10171_v46  ;;  %v10203_v54 = vrot.slane %v2292_v6, %v9127_v8 }
  0x9d   : > { %13350 = vst [vmem:[#allocation136_spill] sm:$0xff] %v10188_v36  ;;  %13351 = vst [vmem:[#allocation137_spill] sm:$0xff] %v10191_v7  ;;  %v2334_v42 = vrot.slane %v10135_v45, %v9127_v8  ;;  %v2348_v33 = vrot.slane %v10145_v26, %v9127_v8  ;;  %v10210_v0 = vrot.slane %v2306_v14, %v9127_v8  ;;  %8892 = vmatprep.subr.msk.bf16.mxu1 %vm13113_vm0, %v10183_v47 }
  0x9e   : > { %13352 = vst [vmem:[#allocation138_spill] sm:$0xff] %v10200_v15  ;;  %13353 = vst [vmem:[#allocation139_spill] sm:$0xff] %v10203_v54  ;;  %v10213_v38 = vrot.slane %v2320_v55, %v9127_v8  ;;  %v2362_v17 = vrot.slane %v10150_v40, %v9127_v8  ;;  %v2376_v39 = vrot.slane %v10153_v49, %v9127_v8  ;;  %v13367_v24 = vunpack.c.l.b16 %v10203_v54 }
  0x9f   : > { %13354 = vst [vmem:[#allocation140_spill] sm:$0xff] %v10210_v0  ;;  %v10222_v6 = vrot.slane %v2334_v42, %v9127_v8  ;;  %v10225_v18 = vrot.slane %v2348_v33, %v9127_v8  ;;  %v2390_v14 = vrot.slane %v10162_v63, %v9127_v8  ;;  %v2404_v55 = vrot.slane %v10166_v59, %v9127_v8 }
  0xa0   : > { %13355 = vst [vmem:[#allocation141_spill] sm:$0xff] %v10213_v38  ;;  %v10232_v41 = vrot.slane %v2362_v17, %v9127_v8  ;;  %v2383_v62 = vrot.slane %v2376_v39, %v9127_v8  ;;  %v2418_v1 = vrot.slane %v10188_v36, %v9127_v8  ;;  %v2432_v42 = vrot.slane %v10157_v21, %v9127_v8 }
  0xa1   : > { %13356 = vst [vmem:[#allocation142_spill] sm:$0xff] %v10222_v6  ;;  %13357 = vst [vmem:[#allocation143_spill] sm:$0xff] %v10225_v18  ;;  %v10240_v33 = vrot.slane %v2390_v14, %v9127_v8  ;;  %v10243_v43 = vrot.slane %v2404_v55, %v9127_v8  ;;  %v2446_v4 = vrot.slane %v10171_v46, %v9127_v8  ;;  %v3154_v14 = vunpack.c.l.b16 %v2271_v3  ;;  %v8522_v3 = vld.sshfl [vmem:[%s9132_s7 + $0x34] sm:$0x33 pattern:$0x75316420] }
  0xa2   : > { %13358 = vst [vmem:[#allocation144_spill] sm:$0xff] %v10232_v41  ;;  %v2460_v17 = vrot.slane %v10175_v57, %v9127_v8  ;;  %v10250_v39 = vrot.slane %v2418_v1, %v9127_v8  ;;  %v10253_v51 = vrot.slane %v2432_v42, %v9127_v8  ;;  %v2474_v58 = vrot.slane %v10200_v15, %v9127_v8 }
  0xa3   : > { %13359 = vst [vmem:[#allocation145_spill] sm:$0xff] %v10240_v33  ;;  %13360 = vst [vmem:[#allocation146_spill] sm:$0xff] %v10243_v43  ;;  %v10258_v2 = vrot.slane %v2446_v4, %v9127_v8  ;;  %v13366_v4 = vunpack.c.l.b16 %v10191_v7  ;;  %v13368_v10 = vunpack.c.l.b16 %v10210_v0  ;;  %v13370_v30 = vunpack.c.l.b16 %v10222_v6 }
  0xa4   : > { %13361 = vst [vmem:[#allocation147_spill] sm:$0xff] %v10250_v39  ;;  %13362 = vst [vmem:[#allocation148_spill] sm:$0xff] %v10253_v51  ;;  %v10261_v55 = vrot.slane %v2460_v17, %v9127_v8  ;;  %v10266_v1 = vrot.slane %v2474_v58, %v9127_v8  ;;  %v3162_v17 = vunpack.c.l.b16 %v2383_v62  ;;  %v3220_v62 = vrot.slane %v13367_v24, 6 }
  0xa5   : > { %13363 = vst [vmem:[#allocation149_spill] sm:$0xff] %v10258_v2  ;;  %v3218_v37 = vrot.slane %v13366_v4, 7  ;;  %v3222_v44 = vrot.slane %v13368_v10, 5  ;;  %v13369_v58 = vunpack.c.l.b16 %v10213_v38  ;;  %v3226_v42 = vrot.slane %v13370_v30, 3 }
  0xa6   : > { %13364 = vst [vmem:[#allocation150_spill] sm:$0xff] %v10261_v55  ;;  %13365 = vst [vmem:[#allocation151_spill] sm:$0xff] %v10266_v1  ;;  %v13371_v56 = vunpack.c.l.b16 %v10225_v18  ;;  %v13372_v4 = vunpack.c.l.b16 %v10232_v41  ;;  %v13373_v24 = vunpack.c.l.b16 %v10240_v33  ;;  %v13374_v10 = vunpack.c.l.b16 %v10243_v43 }
  0xa7   : > { %v3224_v52 = vrot.slane %v13369_v58, 4  ;;  %v3219_v7 = vsel %vm13115_vm1, %v3218_v37, %v3154_v14  ;;  %v13375_v30 = vunpack.c.l.b16 %v10250_v39  ;;  %v13377_v37 = vunpack.c.l.b16 %v10258_v2 }
  0xa8   : > { %v3228_v5 = vrot.slane %v13371_v56, 2  ;;  %v3230_v54 = vrot.slane %v13372_v4, 1  ;;  %v3232_v48 = vrot.slane %v13373_v24, 7  ;;  %v3234_v38 = vrot.slane %v13374_v10, 6 }
  0xa9   : > { %v3221_v58 = vsel %vm13114_vm2, %v3220_v62, %v3219_v7  ;;  %v3236_v6 = vrot.slane %v13375_v30, 5  ;;  %v13376_v56 = vunpack.c.l.b16 %v10253_v51  ;;  %v3240_v14 = vrot.slane %v13377_v37, 3 }
  0xaa   : > { %v3223_v4 = vsel %vm13116_vm3, %v3222_v44, %v3221_v58  ;;  %v3233_v24 = vsel %vm13115_vm1, %v3232_v48, %v3162_v17  ;;  %v13378_v33 = vunpack.c.l.b16 %v10261_v55  ;;  %v13379_v10 = vunpack.c.l.b16 %v10266_v1  ;;  %v8525_v48 = vld.sshfl [vmem:[%s9132_s7 + $0x48] sm:$0x33 pattern:$0x75316420] }
  0xab   : > { %v3238_v18 = vrot.slane %v13376_v56, 4  ;;  %v3225_v62 = vsel %vm2063_vm4, %v3224_v52, %v3223_v4  ;;  %v3235_v30 = vsel %vm13114_vm2, %v3234_v38, %v3233_v24  ;;  %v473_v56 = vcombine.high %v8521_v60, %v8521_v60  ;;  %v8526_v4 = vld.sshfl [vmem:[%s9132_s7 + $0x4c] sm:$0x33 pattern:$0x75316420] }
  0xac   : > { %v3242_v43 = vrot.slane %v13378_v33, 2  ;;  %v3244_v7 = vrot.slane %v13379_v10, 1  ;;  %v10317_v2 = vrot.slane %v8521_v60, %v9127_v8  ;;  %v3227_v37 = vsel %vm2066_vm5, %v3226_v42, %v3225_v62  ;;  %v8529_v24 = vld.sshfl [vmem:[%s9132_s7 + $0x60] sm:$0x33 pattern:$0x75316420] }
  0xad   : > { %v3237_v44 = vsel %vm13116_vm3, %v3236_v6, %v3235_v30  ;;  %v497_v17 = vcombine.high %v8522_v3, %v8522_v3  ;;  %v10323_v33 = vrot.slane %v8522_v3, %v9127_v8  ;;  %v3229_v58 = vsel %vm2069_vm6, %v3228_v5, %v3227_v37  ;;  %v8530_v10 = vld.sshfl [vmem:[%s9132_s7 + $0x64] sm:$0x33 pattern:$0x75316420] }
  0xae   : > { %v3239_v52 = vsel %vm2063_vm4, %v3238_v18, %v3237_v44  ;;  %v10329_v38 = vrot.slane %v473_v56, %v9127_v8  ;;  %v10333_v60 = vcombine.high %v10317_v2, %v10317_v2  ;;  %v3231_v42 = vsel %vm2072_vm7, %v3230_v54, %v3229_v58 }
  0xaf   : > { %v3241_v6 = vsel %vm2066_vm5, %v3240_v14, %v3239_v52  ;;  %v10339_v3 = vrot.slane %v497_v17, %v9127_v8  ;;  %v10343_v5 = vcombine.high %v10323_v33, %v10323_v33  ;;  %v569_v30 = vcombine.high %v8525_v48, %v8525_v48 }
  0xb0   : > { %13380 = vst [vmem:[#allocation152_spill] sm:$0xff] %v10329_v38  ;;  %v3243_v18 = vsel %vm2069_vm6, %v3242_v43, %v3241_v6  ;;  %v10349_v62 = vcombine.high %v10329_v38, %v10329_v38  ;;  %v10352_v54 = vrot.slane %v8525_v48, %v9127_v8  ;;  %v593_v37 = vcombine.high %v8526_v4, %v8526_v4 }
  0xb1   : > { %v10355_v14 = vsel %vm2072_vm7, %v3244_v7, %v3243_v18  ;;  %v10359_v56 = vcombine.high %v10339_v3, %v10339_v3  ;;  %v10362_v44 = vrot.slane %v8526_v4, %v9127_v8  ;;  %v10366_v17 = vrot.slane %v569_v30, %v9127_v8 }
  0xb2   : > { %v3330_v43 = vpack.c.b16 %v10355_v14, %v3231_v42  ;;  %v10370_v48 = vcombine.high %v10352_v54, %v10352_v54  ;;  %v665_v58 = vcombine.high %v8529_v24, %v8529_v24  ;;  %v10373_v7 = vrot.slane %v593_v37, %v9127_v8 }
  0xb3   : > { %13381 = vst [vmem:[#allocation153_spill] sm:$0xff] %v10362_v44  ;;  %13382 = vst [vmem:[#allocation154_spill] sm:$0xff] %v10366_v17  ;;  %v10377_v52 = vcombine.high %v10362_v44, %v10362_v44  ;;  %v10380_v4 = vrot.slane %v8529_v24, %v9127_v8  ;;  %v689_v6 = vcombine.high %v8530_v10, %v8530_v10 }
  0xb4   : > { %13383 = vst [vmem:[#allocation155_spill] sm:$0xff] %v10373_v7  ;;  %8808 = vmatprep.mubr.msk.bf16.mxu1 %vm13117_vm8, %v3330_v43  ;;  %v10385_v42 = vcombine.high %v10366_v17, %v10366_v17  ;;  %v10388_v18 = vrot.slane %v665_v58, %v9127_v8  ;;  %v10391_v30 = vrot.slane %v8530_v10, %v9127_v8 }
  0xb5   : > { %13384 = vst [vmem:[#allocation156_spill] sm:$0xff] %v10380_v4  ;;  %v2488_v37 = vrot.slane %v10317_v2, %v9127_v8  ;;  %v10397_v24 = vcombine.high %v10373_v7, %v10373_v7  ;;  %v10401_v43 = vcombine.high %v10380_v4, %v10380_v4  ;;  %v10404_v1 = vrot.slane %v689_v6, %v9127_v8 }
  0xb6   : > { %13385 = vst [vmem:[#allocation157_spill] sm:$0xff] %v10388_v18  ;;  %13386 = vst [vmem:[#allocation158_spill] sm:$0xff] %v10391_v30  ;;  %v2502_v58 = vrot.slane %v10329_v38, %v9127_v8  ;;  %v10410_v10 = vcombine.high %v10388_v18, %v10388_v18  ;;  %v10414_v55 = vcombine.high %v10391_v30, %v10391_v30 }
  0xb7   : > { %13387 = vst [vmem:[#allocation159_spill] sm:$0xff] %v10401_v43  ;;  %13388 = vst [vmem:[#allocation160_spill] sm:$0xff] %v10404_v1  ;;  %v10417_v51 = vrot.slane %v2488_v37, %v9127_v8  ;;  %v2516_v39 = vrot.slane %v10333_v60, %v9127_v8  ;;  %v10423_v6 = vcombine.high %v10404_v1, %v10404_v1 }
  0xb8   : > { %13389 = vst [vmem:[#allocation161_spill] sm:$0xff] %v10410_v10  ;;  %13390 = vst [vmem:[#allocation162_spill] sm:$0xff] %v10414_v55  ;;  %v10426_v41 = vrot.slane %v2502_v58, %v9127_v8  ;;  %v2530_v0 = vrot.slane %v10349_v62, %v9127_v8  ;;  %v2544_v61 = vrot.slane %v10323_v33, %v9127_v8 }
  0xb9   : > { %13391 = vst [vmem:[#allocation163_spill] sm:$0xff] %v10423_v6  ;;  %v10433_v38 = vrot.slane %v2516_v39, %v9127_v8  ;;  %v2558_v37 = vrot.slane %v10339_v3, %v9127_v8  ;;  %v2572_v25 = vrot.slane %v10343_v5, %v9127_v8  ;;  %v2586_v32 = vrot.slane %v10359_v56, %v9127_v8 }
  0xba   : > { %13392 = vst [vmem:[#allocation164_spill] sm:$0xff] %v10426_v41  ;;  %v10442_v58 = vrot.slane %v2530_v0, %v9127_v8  ;;  %v10445_v35 = vrot.slane %v2544_v61, %v9127_v8  ;;  %v2600_v29 = vrot.slane %v10352_v54, %v9127_v8  ;;  %v2614_v39 = vrot.slane %v10366_v17, %v9127_v8 }
  0xbb   : > { %v10452_v28 = vrot.slane %v2558_v37, %v9127_v8  ;;  %v10455_v31 = vrot.slane %v2572_v25, %v9127_v8  ;;  %v10458_v23 = vrot.slane %v2586_v32, %v9127_v8  ;;  %v2628_v0 = vrot.slane %v10370_v48, %v9127_v8 }
  0xbc   : > { %v10463_v61 = vrot.slane %v2600_v29, %v9127_v8  ;;  %v10466_v12 = vrot.slane %v2614_v39, %v9127_v8  ;;  %v2642_v17 = vrot.slane %v10385_v42, %v9127_v8  ;;  %v2656_v37 = vrot.slane %v10362_v44, %v9127_v8 }
  0xbd   : > { %v10473_v25 = vrot.slane %v2628_v0, %v9127_v8  ;;  %v2670_v32 = vrot.slane %v10373_v7, %v9127_v8  ;;  %v2684_v16 = vrot.slane %v10377_v52, %v9127_v8  ;;  %v2698_v29 = vrot.slane %v10397_v24, %v9127_v8 }
  0xbe   : > { %13393 = vst [vmem:[#allocation165_spill] sm:$0xff] %v10466_v12  ;;  %v10482_v39 = vrot.slane %v2642_v17, %v9127_v8  ;;  %v10485_v20 = vrot.slane %v2656_v37, %v9127_v8  ;;  %v2712_v44 = vrot.slane %v10380_v4, %v9127_v8  ;;  %v2726_v0 = vrot.slane %v10388_v18, %v9127_v8 }
  0xbf   : > { %v10492_v7 = vrot.slane %v2670_v32, %v9127_v8  ;;  %v10495_v27 = vrot.slane %v2684_v16, %v9127_v8  ;;  %v10498_v19 = vrot.slane %v2698_v29, %v9127_v8  ;;  %v2740_v17 = vrot.slane %v10401_v43, %v9127_v8 }
  0xc0   : > { %v10503_v37 = vrot.slane %v2712_v44, %v9127_v8  ;;  %v10506_v4 = vrot.slane %v2726_v0, %v9127_v8  ;;  %v2754_v18 = vrot.slane %v10410_v10, %v9127_v8  ;;  %v2768_v32 = vrot.slane %v10391_v30, %v9127_v8 }
  0xc1   : > { %v10513_v16 = vrot.slane %v2740_v17, %v9127_v8  ;;  %v2782_v29 = vrot.slane %v10404_v1, %v9127_v8  ;;  %v2796_v43 = vrot.slane %v10414_v55, %v9127_v8  ;;  %v2810_v44 = vrot.slane %v10423_v6, %v9127_v8 }
  0xc2   : > { %13394 = vst [vmem:[#allocation166_spill] sm:$0xff] %v10506_v4  ;;  %v10522_v0 = vrot.slane %v2754_v18, %v9127_v8  ;;  %v10525_v10 = vrot.slane %v2768_v32, %v9127_v8  ;;  %v3170_v30 = vunpack.c.l.b16 %v10417_v51  ;;  %v3186_v51 = vunpack.c.l.b16 %v10503_v37 }
  0xc3   : > { %13395 = vst [vmem:[#allocation167_spill] sm:$0xff] %v10513_v16  ;;  %v10530_v15 = vrot.slane %v2782_v29, %v9127_v8  ;;  %v10533_v1 = vrot.slane %v2796_v43, %v9127_v8  ;;  %v10536_v55 = vrot.slane %v2810_v44, %v9127_v8  ;;  %v3178_v29 = vunpack.c.l.b16 %v10463_v61 }
  0xc4   : > { %13396 = vst [vmem:[#allocation168_spill] sm:$0xff] %v10522_v0  ;;  %13397 = vst [vmem:[#allocation169_spill] sm:$0xff] %v10525_v10  ;;  %v13401_v32 = vunpack.c.l.b16 %v10426_v41  ;;  %v13402_v57 = vunpack.c.l.b16 %v10433_v38  ;;  %v13403_v17 = vunpack.c.l.b16 %v10442_v58  ;;  %v13404_v61 = vunpack.c.l.b16 %v10445_v35 }
  0xc5   : > { %13398 = vst [vmem:[#allocation170_spill] sm:$0xff] %v10530_v15  ;;  %13399 = vst [vmem:[#allocation171_spill] sm:$0xff] %v10533_v1  ;;  %v13405_v46 = vunpack.c.l.b16 %v10452_v28  ;;  %v13406_v44 = vunpack.c.l.b16 %v10455_v31  ;;  %v13407_v18 = vunpack.c.l.b16 %v10458_v23  ;;  %v13408_v41 = vunpack.c.l.b16 %v10466_v12 }
  0xc6   : > { %13400 = vst [vmem:[#allocation172_spill] sm:$0xff] %v10536_v55  ;;  %v3246_v21 = vrot.slane %v13401_v32, 7  ;;  %v3248_v37 = vrot.slane %v13402_v57, 6  ;;  %v3250_v36 = vrot.slane %v13403_v17, 5  ;;  %v3252_v43 = vrot.slane %v13404_v61, 4 }
  0xc7   : > { %v3254_v59 = vrot.slane %v13405_v46, 3  ;;  %v3256_v6 = vrot.slane %v13406_v44, 2  ;;  %v3258_v63 = vrot.slane %v13407_v18, 1  ;;  %v3260_v57 = vrot.slane %v13408_v41, 7 }
  0xc8   : > { %v3247_v32 = vsel %vm13115_vm1, %v3246_v21, %v3170_v30  ;;  %v13409_v49 = vunpack.c.l.b16 %v10473_v25  ;;  %v13410_v40 = vunpack.c.l.b16 %v10482_v39  ;;  %v13411_v46 = vunpack.c.l.b16 %v10485_v20 }
  0xc9   : > { %v3249_v26 = vsel %vm13114_vm2, %v3248_v37, %v3247_v32  ;;  %v13412_v44 = vunpack.c.l.b16 %v10492_v7  ;;  %v13413_v18 = vunpack.c.l.b16 %v10495_v27  ;;  %v3261_v41 = vsel %vm13115_vm1, %v3260_v57, %v3178_v29 }
  0xca   : > { %v3262_v17 = vrot.slane %v13409_v49, 6  ;;  %v3264_v61 = vrot.slane %v13410_v40, 5  ;;  %v3266_v45 = vrot.slane %v13411_v46, 4  ;;  %v3251_v30 = vsel %vm13116_vm3, %v3250_v36, %v3249_v26 }
  0xcb   : > { %v3268_v50 = vrot.slane %v13412_v44, 3  ;;  %v3270_v21 = vrot.slane %v13413_v18, 2  ;;  %v13414_v49 = vunpack.c.l.b16 %v10498_v19  ;;  %v13415_v40 = vunpack.c.l.b16 %v10506_v4 }
  0xcc   : > { %v3253_v37 = vsel %vm2063_vm4, %v3252_v43, %v3251_v30  ;;  %v3263_v32 = vsel %vm13114_vm2, %v3262_v17, %v3261_v41  ;;  %v13416_v46 = vunpack.c.l.b16 %v10513_v16  ;;  %v13417_v11 = vunpack.c.l.b16 %v10522_v0 }
  0xcd   : > { %v3272_v12 = vrot.slane %v13414_v49, 1  ;;  %v3274_v34 = vrot.slane %v13415_v40, 7  ;;  %v3255_v26 = vsel %vm2066_vm5, %v3254_v59, %v3253_v37  ;;  %v3265_v36 = vsel %vm13116_vm3, %v3264_v61, %v3263_v32 }
  0xce   : > { %v3276_v44 = vrot.slane %v13416_v46, 6  ;;  %v3278_v18 = vrot.slane %v13417_v11, 5  ;;  %v13418_v57 = vunpack.c.l.b16 %v10525_v10  ;;  %v3257_v40 = vsel %vm2069_vm6, %v3256_v6, %v3255_v26 }
  0xcf   : > { %v3275_v29 = vsel %vm13115_vm1, %v3274_v34, %v3186_v51  ;;  %v3267_v43 = vsel %vm2063_vm4, %v3266_v45, %v3265_v36  ;;  %v13419_v30 = vunpack.c.l.b16 %v10530_v15  ;;  %v3259_v11 = vsel %vm2072_vm7, %v3258_v63, %v3257_v40 }
  0xd0   : > { %v3280_v49 = vrot.slane %v13418_v57, 4  ;;  %v3277_v17 = vsel %vm13114_vm2, %v3276_v44, %v3275_v29  ;;  %v3269_v59 = vsel %vm2066_vm5, %v3268_v50, %v3267_v43  ;;  %v13420_v34 = vunpack.c.l.b16 %v10533_v1 }
  0xd1   : > { %v3282_v41 = vrot.slane %v13419_v30, 3  ;;  %v3279_v61 = vsel %vm13116_vm3, %v3278_v18, %v3277_v17  ;;  %v3271_v37 = vsel %vm2069_vm6, %v3270_v21, %v3269_v59  ;;  %v13421_v45 = vunpack.c.l.b16 %v10536_v55 }
  0xd2   : > { %v3284_v51 = vrot.slane %v13420_v34, 2  ;;  %v3281_v6 = vsel %vm2063_vm4, %v3280_v49, %v3279_v61  ;;  %v3550_v46 = vpack.c.b16 %v3259_v11, %v10355_v14  ;;  %v13422_v44 = vunpack.c.l.b16 %v9798_v9  ;;  %v10662_v61 = vld.sshfl [vmem:[%s9132_s7 + $0x94] sm:$0x33 pattern:$0x75316420] }
  0xd3   : > { %v3286_v32 = vrot.slane %v13421_v45, 1  ;;  %v3273_v50 = vsel %vm2072_vm7, %v3272_v12, %v3271_v37  ;;  %v3283_v63 = vsel %vm2066_vm5, %v3282_v41, %v3281_v6  ;;  %v8533_v45 = vld.sshfl [vmem:[%s9132_s7 + $0x78] sm:$0x33 pattern:$0x75316420]  ;;  %v13426_v37 = vunpack.c.l.b16 %v10442_v58 }
  0xd4   : > { %v10622_v26 = vrot.slane %v13422_v44, 2  ;;  %v3285_v36 = vsel %vm2069_vm6, %v3284_v51, %v3283_v63  ;;  %v3331_v21 = vpack.c.b16 %v3273_v50, %v3259_v11  ;;  %8818 = vmatprep.mubr.msk.bf16.mxu0 %vm13117_vm8, %v3550_v46  ;;  %v13424_v63 = vunpack.c.l.b16 %v10433_v38 }
  0xd5   : > { %v10632_v14 = vsel %vm2072_vm7, %v3286_v32, %v3285_v36  ;;  %v8534_v32 = vld.sshfl [vmem:[%s9132_s7 + $0x7c] sm:$0x33 pattern:$0x75316420]  ;;  %v10666_v6 = vrot.slane %v13426_v37, 6  ;;  %v13430_v46 = vunpack.c.l.b16 %v10452_v28  ;;  %v13436_v58 = vunpack.c.l.b16 %v10473_v25 }
  0xd6   : > { %13423 = vst [vmem:[#allocation173_spill] sm:$0xff] %v10622_v26  ;;  %v3551_v40 = vpack.c.b16 %v10632_v14, %v3273_v50  ;;  %8809 = vmatmul.mubr.msk.bf16.vlgmr.msra.gmra.mxu1 %vm13117_vm8, %v3331_v21  ;;  %v10658_v36 = vrot.slane %v13424_v63, 7  ;;  %v8537_v21 = vld.sshfl [vmem:[%s9132_s7 + $0x90] sm:$0x33 pattern:$0x75316420]  ;;  %v13432_v50 = vunpack.c.l.b16 %v10455_v31  ;;  %v13434_v63 = vunpack.c.l.b16 %v10458_v23 }
  0xd7   : > { %13427 = vst [vmem:[#allocation175_spill] sm:$0xff] %v10666_v6  ;;  %v10674_v44 = vrot.slane %v13430_v46, 4  ;;  %v10686_v37 = vrot.slane %v13436_v58, 7  ;;  %v13440_v28 = vunpack.c.l.b16 %v10485_v20  ;;  %v8724_v31 = vld [vmem:[%s12840_s1 + $0xe] sm:$0x3]  ;;  %v13442_v23 = vunpack.c.l.b16 %v10492_v7 }
  0xd8   : > { %8819 = vmatmul.mubr.msk.bf16.vlgmr.msra.gmra.mxu0 %vm13117_vm8, %v3551_v40  ;;  %13425 = vst [vmem:[#allocation174_spill] sm:$0xff] %v10658_v36  ;;  %v13428_v40 = vunpack.c.l.b16 %v10445_v35  ;;  %v10678_v38 = vrot.slane %v13432_v50, 3  ;;  %v10682_v51 = vrot.slane %v13434_v63, 2  ;;  %v13438_v35 = vunpack.c.l.b16 %v10482_v39  ;;  %v13518_v36 = vld [vmem:[#allocation132_spill] sm:$0xff] }
  0xd9   : > { %13431 = vst [vmem:[#allocation177_spill] sm:$0xff] %v10674_v44  ;;  %13437 = vst [vmem:[#allocation180_spill] sm:$0xff] %v10686_v37  ;;  %v10694_v46 = vrot.slane %v13440_v28, 5  ;;  %v10701_v50 = vrot.slane %v13442_v23, 4  ;;  %v13444_v25 = vunpack.c.l.b16 %v10495_v27  ;;  %v6108_v39 = vsel %vm13113_vm0, %v10183_v47, 0 }
  0xda   : > { %v10670_v34 = vrot.slane %v13428_v40, 5  ;;  %13433 = vst [vmem:[#allocation178_spill] sm:$0xff] %v10678_v38  ;;  %13435 = vst [vmem:[#allocation179_spill] sm:$0xff] %v10682_v51  ;;  %v10690_v40 = vrot.slane %v13438_v35, 6  ;;  %v7274_v20 = vsel %vm13113_vm0, %v9881_v53, 0  ;;  %v13446_v58 = vunpack.c.l.b16 %v10498_v19  ;;  %8827 = vmatpush3.bf16.msra.mxu1 %v6108_v39 }
  0xdb   : > { %13441 = vst [vmem:[#allocation182_spill] sm:$0xff] %v10694_v46  ;;  %13443 = vst [vmem:[#allocation183_spill] sm:$0xff] %v10701_v50  ;;  %v10705_v63 = vrot.slane %v13444_v25, 3  ;;  %8837 = vmatpush3.bf16.msra.mxu0 %v7274_v20  ;;  %v761_v28 = vcombine.high %v8533_v45, %v8533_v45  ;;  %v10716_v7 = vrot.slane %v8533_v45, %v9127_v8  ;;  %8894 = vmatprep.subr.msk.bf16.mxu1 %vm13113_vm0, %v8724_v31 }
  0xdc   : > { %13429 = vst [vmem:[#allocation176_spill] sm:$0xff] %v10670_v34  ;;  %13439 = vst [vmem:[#allocation181_spill] sm:$0xff] %v10690_v40  ;;  %v10713_v35 = vrot.slane %v13446_v58, 2  ;;  %v785_v23 = vcombine.high %v8534_v32, %v8534_v32  ;;  %v10719_v27 = vrot.slane %v8534_v32, %v9127_v8  ;;  %v857_v25 = vcombine.high %v8537_v21, %v8537_v21 }
  0xdd   : > { %13445 = vst [vmem:[#allocation184_spill] sm:$0xff] %v10705_v63  ;;  %v10722_v47 = vrot.slane %v8537_v21, %v9127_v8  ;;  %v881_v53 = vcombine.high %v10662_v61, %v10662_v61  ;;  %v10728_v19 = vrot.slane %v761_v28, %v9127_v8  ;;  %v10732_v45 = vcombine.high %v10716_v7, %v10716_v7  ;;  %v8546_v34 = vld.sshfl [vmem:[%s9132_s7 + $0xc4] sm:$0x33 pattern:$0x75316420] }
  0xde   : > { %13447 = vst [vmem:[#allocation185_spill] sm:$0xff] %v10713_v35  ;;  %v10735_v39 = vrot.slane %v785_v23, %v9127_v8  ;;  %v2824_v32 = vrot.slane %v10716_v7, %v9127_v8  ;;  %v10741_v21 = vcombine.high %v10719_v27, %v10719_v27  ;;  %v2880_v31 = vrot.slane %v10719_v27, %v9127_v8  ;;  %v8542_v35 = vld.sshfl [vmem:[%s9132_s7 + $0xac] sm:$0x33 pattern:$0x75316420] }
  0xdf   : > { %v10746_v20 = vrot.slane %v857_v25, %v9127_v8  ;;  %v10750_v58 = vcombine.high %v10722_v47, %v10722_v47  ;;  %v10754_v28 = vcombine.high %v10728_v19, %v10728_v19  ;;  %v2838_v11 = vrot.slane %v10728_v19, %v9127_v8 }
  0xe0   : > { %v10758_v23 = vcombine.high %v10735_v39, %v10735_v39  ;;  %v2831_v59 = vrot.slane %v2824_v32, %v9127_v8  ;;  %v2852_v25 = vrot.slane %v10732_v45, %v9127_v8  ;;  %v10766_v17 = vrot.slane %v2880_v31, %v9127_v8 }
  0xe1   : > { %v2894_v43 = vrot.slane %v10735_v39, %v9127_v8  ;;  %v2908_v30 = vrot.slane %v10741_v21, %v9127_v8  ;;  %v10773_v41 = vrot.slane %v2838_v11, %v9127_v8  ;;  %v2866_v32 = vrot.slane %v10754_v28, %v9127_v8 }
  0xe2   : > { %13448 = vst [vmem:[#allocation186_spill] sm:$0xff] %v10766_v17  ;;  %v2922_v29 = vrot.slane %v10758_v23, %v9127_v8  ;;  %v3194_v12 = vunpack.c.l.b16 %v2831_v59  ;;  %v10780_v49 = vrot.slane %v2852_v25, %v9127_v8  ;;  %v13058_v57 = vunpack.c.l.b16 %v10766_v17 }
  0xe3   : > { %13449 = vst [vmem:[#allocation187_spill] sm:$0xff] %v10773_v41  ;;  %v10783_v31 = vrot.slane %v2894_v43, %v9127_v8  ;;  %v10786_v18 = vrot.slane %v2908_v30, %v9127_v8  ;;  %v10790_v11 = vrot.slane %v2866_v32, %v9127_v8  ;;  %v13059_v26 = vunpack.c.l.b16 %v10773_v41 }
  0xe4   : > { %13450 = vst [vmem:[#allocation188_spill] sm:$0xff] %v10780_v49  ;;  %v10793_v9 = vrot.slane %v2922_v29, %v9127_v8  ;;  %v10798_v59 = vcombine.high %v10746_v20, %v10746_v20  ;;  %v13062_v43 = vunpack.c.l.b16 %v10780_v49  ;;  %v3294_v55 = vrot.slane %v13058_v57, 4 }
  0xe5   : > { %13451 = vst [vmem:[#allocation189_spill] sm:$0xff] %v10783_v31  ;;  %13452 = vst [vmem:[#allocation190_spill] sm:$0xff] %v10786_v18  ;;  %v13063_v25 = vunpack.c.l.b16 %v10783_v31  ;;  %v3288_v1 = vrot.slane %v13059_v26, 7  ;;  %v10811_v15 = vrot.slane %v10662_v61, %v9127_v8  ;;  %v13455_v17 = vunpack.c.l.b16 %v10786_v18 }
  0xe6   : > { %13453 = vst [vmem:[#allocation191_spill] sm:$0xff] %v10790_v11  ;;  %13454 = vst [vmem:[#allocation192_spill] sm:$0xff] %v10793_v9  ;;  %v3290_v4 = vrot.slane %v13062_v43, 6  ;;  %v10820_v32 = vrot.slane %v881_v53, %v9127_v8  ;;  %v13457_v26 = vunpack.c.l.b16 %v10790_v11  ;;  %v13458_v61 = vunpack.c.l.b16 %v10793_v9 }
  0xe7   : > { %v3296_v30 = vrot.slane %v13063_v25, 3  ;;  %v3298_v57 = vrot.slane %v13455_v17, 2  ;;  %v3289_v29 = vsel %vm13115_vm1, %v3288_v1, %v3194_v12  ;;  %v10829_v43 = vcombine.high %v10811_v15, %v10811_v15 }
  0xe8   : > { %13456 = vst [vmem:[#allocation193_spill] sm:$0xff] %v10820_v32  ;;  %v3292_v41 = vrot.slane %v13457_v26, 5  ;;  %v3300_v10 = vrot.slane %v13458_v61, 1  ;;  %v3291_v25 = vsel %vm13114_vm2, %v3290_v4, %v3289_v29  ;;  %v10834_v17 = vcombine.high %v10820_v32, %v10820_v32 }
  0xe9   : > { %13459 = vst [vmem:[#allocation194_spill] sm:$0xff] %v10829_v43  ;;  %v2936_v53 = vrot.slane %v10722_v47, %v9127_v8  ;;  %v2950_v1 = vrot.slane %v10746_v20, %v9127_v8  ;;  %v2964_v12 = vrot.slane %v10750_v58, %v9127_v8  ;;  %v2978_v61 = vrot.slane %v10798_v59, %v9127_v8 }
  0xea   : > { %13460 = vst [vmem:[#allocation195_spill] sm:$0xff] %v10834_v17  ;;  %v3293_v26 = vsel %vm13116_vm3, %v3292_v41, %v3291_v25  ;;  %v2992_v4 = vrot.slane %v10811_v15, %v9127_v8  ;;  %v3006_v41 = vrot.slane %v10820_v32, %v9127_v8 }
  0xeb   : > { %v3295_v29 = vsel %vm2063_vm4, %v3294_v55, %v3293_v26  ;;  %v2943_v9 = vrot.slane %v2936_v53, %v9127_v8  ;;  %v10850_v18 = vrot.slane %v2950_v1, %v9127_v8  ;;  %v10856_v31 = vrot.slane %v2964_v12, %v9127_v8 }
  0xec   : > { %v3297_v25 = vsel %vm2066_vm5, %v3296_v30, %v3295_v29  ;;  %v10859_v11 = vrot.slane %v2978_v61, %v9127_v8  ;;  %v10862_v49 = vrot.slane %v2992_v4, %v9127_v8  ;;  %v10866_v53 = vrot.slane %v3006_v41, %v9127_v8  ;;  %v8541_v29 = vld.sshfl [vmem:[%s9132_s7 + $0xa8] sm:$0x33 pattern:$0x75316420] }
  0xed   : > { %13461 = vst [vmem:[#allocation196_spill] sm:$0xff] %v10850_v18  ;;  %13462 = vst [vmem:[#allocation197_spill] sm:$0xff] %v10856_v31  ;;  %v3299_v55 = vsel %vm2069_vm6, %v3298_v57, %v3297_v25  ;;  %v3020_v1 = vrot.slane %v10829_v43, %v9127_v8  ;;  %v3034_v30 = vrot.slane %v10834_v17, %v9127_v8  ;;  %v3202_v12 = vunpack.c.l.b16 %v2943_v9  ;;  %v8564_v17 = vld.sshfl [vmem:[%s9132_s7 + $0x2c] sm:$0x1 pattern:$0x75316420] }
  0xee   : > { %13463 = vst [vmem:[#allocation198_spill] sm:$0xff] %v10859_v11  ;;  %13464 = vst [vmem:[#allocation199_spill] sm:$0xff] %v10862_v49  ;;  %v3301_v26 = vsel %vm2072_vm7, %v3300_v10, %v3299_v55  ;;  %v13072_v61 = vunpack.c.l.b16 %v10850_v18  ;;  %v13074_v4 = vunpack.c.l.b16 %v10856_v31  ;;  %v13075_v0 = vunpack.c.l.b16 %v10859_v11 }
  0xef   : > { %13465 = vst [vmem:[#allocation200_spill] sm:$0xff] %v10866_v53  ;;  %v3332_v57 = vpack.c.b16 %v3301_v26, %v10632_v14  ;;  %v10878_v41 = vrot.slane %v3020_v1, %v9127_v8  ;;  %v10881_v25 = vrot.slane %v3034_v30, %v9127_v8  ;;  %v953_v63 = vcombine.high %v8541_v29, %v8541_v29 }
  0xf0   : > { %v3302_v9 = vrot.slane %v13072_v61, 7  ;;  %v3304_v55 = vrot.slane %v13074_v4, 6  ;;  %v3306_v30 = vrot.slane %v13075_v0, 5  ;;  %v13468_v10 = vunpack.c.l.b16 %v10862_v49 }
  0xf1   : > { %13466 = vst [vmem:[#allocation201_spill] sm:$0xff] %v10878_v41  ;;  %13467 = vst [vmem:[#allocation202_spill] sm:$0xff] %v10881_v25  ;;  %8812 = vmatprep.mubr.msk.bf16.mxu1 %vm13117_vm8, %v3332_v57  ;;  %v13077_v14 = vunpack.c.l.b16 %v10878_v41  ;;  %v13469_v61 = vunpack.c.l.b16 %v10866_v53  ;;  %v10902_v4 = vrot.slane %v8541_v29, %v9127_v8  ;;  %v13471_v0 = vunpack.c.l.b16 %v10881_v25 }
  0xf2   : > { %v3303_v16 = vsel %vm13115_vm1, %v3302_v9, %v3202_v12  ;;  %v3308_v18 = vrot.slane %v13468_v10, 4  ;;  %v10910_v50 = vrot.slane %v953_v63, %v9127_v8  ;;  %v10918_v29 = vrot.slane %v8542_v35, %v9127_v8 }
  0xf3   : > { %v3310_v31 = vrot.slane %v13469_v61, 3  ;;  %13470 = vst [vmem:[#allocation203_spill] sm:$0xff] %v10902_v4  ;;  %v3305_v57 = vsel %vm13114_vm2, %v3304_v55, %v3303_v16  ;;  %v3312_v1 = vrot.slane %v13077_v14, 2  ;;  %v3314_v11 = vrot.slane %v13471_v0, 1 }
  0xf4   : > { %13472 = vst [vmem:[#allocation204_spill] sm:$0xff] %v10910_v50  ;;  %v3307_v12 = vsel %vm13116_vm3, %v3306_v30, %v3305_v57  ;;  %v10915_v10 = vcombine.high %v10902_v4, %v10902_v4  ;;  %v977_v61 = vcombine.high %v8542_v35, %v8542_v35  ;;  %13474 = vst [vmem:[#allocation206_spill] sm:$0xff] %v10918_v29 }
  0xf5   : > { %v3309_v16 = vsel %vm2063_vm4, %v3308_v18, %v3307_v12  ;;  %v10923_v9 = vcombine.high %v10910_v50, %v10910_v50  ;;  %v3048_v0 = vrot.slane %v10902_v4, %v9127_v8  ;;  %v3062_v63 = vrot.slane %v10910_v50, %v9127_v8 }
  0xf6   : > { %13473 = vst [vmem:[#allocation205_spill] sm:$0xff] %v10915_v10  ;;  %v3311_v55 = vsel %vm2066_vm5, %v3310_v31, %v3309_v16  ;;  %v10931_v30 = vrot.slane %v977_v61, %v9127_v8  ;;  %v10935_v35 = vcombine.high %v10918_v29, %v10918_v29  ;;  %v3076_v18 = vrot.slane %v10915_v10, %v9127_v8 }
  0xf7   : > { %13475 = vst [vmem:[#allocation207_spill] sm:$0xff] %v10923_v9  ;;  %v3313_v57 = vsel %vm2069_vm6, %v3312_v1, %v3311_v55  ;;  %v3055_v12 = vrot.slane %v3048_v0, %v9127_v8  ;;  %v10942_v14 = vrot.slane %v3062_v63, %v9127_v8  ;;  %v3090_v31 = vrot.slane %v10923_v9, %v9127_v8 }
  0xf8   : > { %13476 = vst [vmem:[#allocation208_spill] sm:$0xff] %v10931_v30  ;;  %13477 = vst [vmem:[#allocation209_spill] sm:$0xff] %v10935_v35  ;;  %v10947_v61 = vsel %vm2072_vm7, %v3314_v11, %v3313_v57  ;;  %v10951_v16 = vcombine.high %v10931_v30, %v10931_v30  ;;  %v10954_v25 = vrot.slane %v3076_v18, %v9127_v8  ;;  %v8545_v57 = vld.sshfl [vmem:[%s9132_s7 + $0xc0] sm:$0x33 pattern:$0x75316420] }
  0xf9   : > { %13478 = vst [vmem:[#allocation210_spill] sm:$0xff] %v10942_v14  ;;  %v3104_v1 = vrot.slane %v10918_v29, %v9127_v8  ;;  %v3552_v0 = vpack.c.b16 %v10947_v61, %v3301_v26  ;;  %v10960_v63 = vrot.slane %v3090_v31, %v9127_v8  ;;  %v3118_v55 = vrot.slane %v10931_v30, %v9127_v8 }
  0xfa   : > { %13479 = vst [vmem:[#allocation211_spill] sm:$0xff] %v10951_v16  ;;  %13480 = vst [vmem:[#allocation212_spill] sm:$0xff] %v10954_v25  ;;  %v3132_v11 = vrot.slane %v10935_v35, %v9127_v8  ;;  %v3146_v18 = vrot.slane %v10951_v16, %v9127_v8  ;;  %v3210_v53 = vunpack.c.l.b16 %v3055_v12  ;;  %v13083_v26 = vunpack.c.l.b16 %v10942_v14 }
  0xfb   : > { %13481 = vst [vmem:[#allocation213_spill] sm:$0xff] %v10960_v63  ;;  %v10968_v41 = vrot.slane %v3104_v1, %v9127_v8  ;;  %8822 = vmatprep.mubr.msk.bf16.mxu0 %vm13117_vm8, %v3552_v0  ;;  %v10975_v31 = vrot.slane %v3118_v55, %v9127_v8  ;;  %v13085_v51 = vunpack.c.l.b16 %v10954_v25  ;;  %v13087_v1 = vunpack.c.l.b16 %v10960_v63 }
  0xfc   : > { %v10978_v49 = vrot.slane %v3132_v11, %v9127_v8  ;;  %v10983_v46 = vrot.slane %v3146_v18, %v9127_v8  ;;  %v3316_v12 = vrot.slane %v13083_v26, 7  ;;  %v1049_v44 = vcombine.high %v8545_v57, %v8545_v57 }
  0xfd   : > { %13482 = vst [vmem:[#allocation214_spill] sm:$0xff] %v10968_v41  ;;  %13483 = vst [vmem:[#allocation215_spill] sm:$0xff] %v10975_v31  ;;  %v13088_v38 = vunpack.c.l.b16 %v10968_v41  ;;  %v3318_v11 = vrot.slane %v13085_v51, 6  ;;  %v3320_v40 = vrot.slane %v13087_v1, 5  ;;  %v11000_v26 = vrot.slane %v8545_v57, %v9127_v8 }
  0xfe   : > { %13484 = vst [vmem:[#allocation216_spill] sm:$0xff] %v10978_v49  ;;  %13485 = vst [vmem:[#allocation217_spill] sm:$0xff] %v10983_v46  ;;  %v3317_v6 = vsel %vm13115_vm1, %v3316_v12, %v3210_v53  ;;  %v13487_v55 = vunpack.c.l.b16 %v10975_v31  ;;  %v13488_v51 = vunpack.c.l.b16 %v10978_v49  ;;  %v11008_v1 = vrot.slane %v1049_v44, %v9127_v8 }
  0xff   : > { %v3322_v14 = vrot.slane %v13088_v38, 4  ;;  %13486 = vst [vmem:[#allocation218_spill] sm:$0xff] %v11000_v26  ;;  %v3319_v0 = vsel %vm13114_vm2, %v3318_v11, %v3317_v6  ;;  %v13490_v53 = vunpack.c.l.b16 %v10983_v46  ;;  %v11015_v57 = vcombine.high %v11000_v26, %v11000_v26 }
 0x100   : > { %v3324_v25 = vrot.slane %v13487_v55, 3  ;;  %v3326_v63 = vrot.slane %v13488_v51, 2  ;;  %13489 = vst [vmem:[#allocation219_spill] sm:$0xff] %v11008_v1  ;;  %v3321_v18 = vsel %vm13116_vm3, %v3320_v40, %v3319_v0  ;;  %v1073_v38 = vcombine.high %v8546_v34, %v8546_v34 }
 0x101   : > { %v3328_v12 = vrot.slane %v13490_v53, 1  ;;  %13491 = vst [vmem:[#allocation220_spill] sm:$0xff] %v11015_v57  ;;  %v3323_v6 = vsel %vm2063_vm4, %v3322_v14, %v3321_v18  ;;  %v11020_v55 = vcombine.high %v11008_v1, %v11008_v1  ;;  %v11023_v51 = vrot.slane %v8546_v34, %v9127_v8 }
 0x102   : > { %v3422_v44 = vrot.slane %v11000_v26, %v9127_v8  ;;  %v3325_v40 = vsel %vm2066_vm5, %v3324_v25, %v3323_v6  ;;  %v11029_v0 = vrot.slane %v1073_v38, %v9127_v8  ;;  %v3436_v14 = vrot.slane %v11008_v1, %v9127_v8 }
 0x103   : > { %13492 = vst [vmem:[#allocation221_spill] sm:$0xff] %v11020_v55  ;;  %13493 = vst [vmem:[#allocation222_spill] sm:$0xff] %v11023_v51  ;;  %v3450_v11 = vrot.slane %v11015_v57, %v9127_v8  ;;  %v3327_v18 = vsel %vm2069_vm6, %v3326_v63, %v3325_v40  ;;  %v11038_v34 = vcombine.high %v11023_v51, %v11023_v51  ;;  %v8563_v57 = vld.sshfl [vmem:[%s9132_s7 + $0x20] sm:$0x1 pattern:$0x75316420] }
 0x104   : > { %13494 = vst [vmem:[#allocation223_spill] sm:$0xff] %v11029_v0  ;;  %v3429_v53 = vrot.slane %v3422_v44, %v9127_v8  ;;  %v3464_v25 = vrot.slane %v11020_v55, %v9127_v8  ;;  %v11044_v38 = vsel %vm2072_vm7, %v3328_v12, %v3327_v18  ;;  %v11048_v6 = vcombine.high %v11029_v0, %v11029_v0  ;;  %v11059_v44 = vld [vmem:[%s12840_s1 + $0x4] sm:$0x3] }
 0x105   : > { %13495 = vst [vmem:[#allocation224_spill] sm:$0xff] %v11038_v34  ;;  %v11051_v46 = vrot.slane %v3436_v14, %v9127_v8  ;;  %v11054_v63 = vrot.slane %v3450_v11, %v9127_v8  ;;  %v3333_v12 = vpack.c.b16 %v11044_v38, %v10947_v61  ;;  %v3478_v18 = vrot.slane %v11023_v51, %v9127_v8  ;;  %v8561_v11 = vld.sshfl [vmem:[%s9132_s7 + $0x8] sm:$0x1 pattern:$0x75316420] }
 0x106   : > { %13496 = vst [vmem:[#allocation225_spill] sm:$0xff] %v11048_v6  ;;  %v11064_v40 = vrot.slane %v3464_v25, %v9127_v8  ;;  %v3492_v14 = vrot.slane %v11029_v0, %v9127_v8  ;;  %8895 = vmatprep.subr.msk.bf16.mxu0 %vm13113_vm0, %v11059_v44  ;;  %v3506_v49 = vrot.slane %v11038_v34, %v9127_v8  ;;  %v3528_v61 = vunpack.c.l.b16 %v3429_v53 }
 0x107   : > { %13497 = vst [vmem:[#allocation226_spill] sm:$0xff] %v11051_v46  ;;  %13498 = vst [vmem:[#allocation227_spill] sm:$0xff] %v11054_v63  ;;  %v3520_v31 = vrot.slane %v11048_v6, %v9127_v8  ;;  %v13109_v25 = vunpack.c.l.b16 %v11051_v46  ;;  %8813 = vmatmul.mubr.msk.bf16.gmra.mxu1 %vm13117_vm8, %v3333_v12  ;;  %v11080_v41 = vrot.slane %v3478_v18, %v9127_v8  ;;  %v13111_v51 = vunpack.c.l.b16 %v11054_v63 }
 0x108   : > { %13499 = vst [vmem:[#allocation228_spill] sm:$0xff] %v11064_v40  ;;  %v11083_v0 = vrot.slane %v3492_v14, %v9127_v8  ;;  %v11089_v34 = vrot.slane %v3506_v49, %v9127_v8  ;;  %v11097_v18 = vrot.slane %v8561_v11, %v9127_v8  ;;  %v13505_v1 = vunpack.c.l.b16 %v11064_v40 }
 0x109   : > { %13500 = vst [vmem:[#allocation229_spill] sm:$0xff] %v11080_v41  ;;  %v11092_v53 = vrot.slane %v3520_v31, %v9127_v8  ;;  %v3536_v12 = vrot.slane %v13109_v25, 7  ;;  %v13120_v14 = vunpack.c.l.b16 %v11080_v41  ;;  %v3538_v55 = vrot.slane %v13111_v51, 6 }
 0x10a   : > { %13501 = vst [vmem:[#allocation230_spill] sm:$0xff] %v11083_v0  ;;  %13502 = vst [vmem:[#allocation231_spill] sm:$0xff] %v11089_v34  ;;  %v3540_v49 = vrot.slane %v13505_v1, 5  ;;  %v13119_v26 = vunpack.c.l.b16 %v11089_v34  ;;  %v11109_v25 = vrot.slane %v8563_v57, %v9127_v8  ;;  %v13507_v63 = vunpack.c.l.b16 %v11083_v0  ;;  %v13515_v0 = vld [vmem:[#allocation129_spill] sm:$0xff] }
 0x10b   : > { %13503 = vst [vmem:[#allocation232_spill] sm:$0xff] %v11092_v53  ;;  %13504 = vst [vmem:[#allocation233_spill] sm:$0xff] %v11097_v18  ;;  %v13118_v31 = vunpack.c.l.b16 %v11092_v53  ;;  %v3537_v46 = vsel %vm13115_vm1, %v3536_v12, %v3528_v61  ;;  %v3542_v6 = vrot.slane %v13120_v14, 4  ;;  %vm3906_vm0 = vsmask.f32 5396  ;;  %v13511_v53 = vld [vmem:[#allocation126_spill] sm:$0xff] }
 0x10c   : > { %13506 = vst [vmem:[#allocation234_spill] sm:$0xff] %v11109_v25  ;;  %v3539_v11 = vsel %vm13114_vm2, %v3538_v55, %v3537_v46  ;;  %v3544_v51 = vrot.slane %v13507_v63, 3  ;;  %v3546_v40 = vrot.slane %v13119_v26, 2  ;;  %vm3903_vm2 = vmor %vm3901_vm13, %vm3902_vm14  ;;  %vm3908_vm1 = vsmask.f32 6424 }
 0x10d   : > { %v3541_v1 = vsel %vm13116_vm3, %v3540_v49, %v3539_v11  ;;  %v3548_v61 = vrot.slane %v13118_v31, 1  ;;  %vm3910_vm3 = vsmask.f32 7452  ;;  %v3913_v55 = vshrl.u32 %v10116_v22, 16  ;;  %vm3905_vm8 = vmor %vm3903_vm2, %vm3904_vm15  ;;  %v13508_v11 = vld [vmem:[#allocation125_spill] sm:$0xff] }
 0x10e   : > { %v3543_v46 = vsel %vm2063_vm4, %v3542_v6, %v3541_v1  ;;  %v3918_v12 = vshll.u32 %v10122_v13, 16  ;;  %v3921_v49 = vshrl.u32 %v10122_v13, 16  ;;  %v3926_v6 = vshll.u32 %v13508_v11, 16  ;;  %vm3907_vm9 = vmor %vm3905_vm8, %vm3906_vm0 }
 0x10f   : > { %v3545_v57 = vsel %vm2066_vm5, %v3544_v51, %v3543_v46  ;;  %v3929_v31 = vshrl.u32 %v13508_v11, 16  ;;  %v13509_v51 = vld [vmem:[#allocation127_spill] sm:$0xff]  ;;  %vm3909_vm10 = vmor %vm3907_vm9, %vm3908_vm1  ;;  %v3950_v13 = vshll.u32 %v13511_v53, 16  ;;  %vm13516_vm0 = vcmask 31744  }
 0x110   : > { %v3547_v63 = vsel %vm2069_vm6, %v3546_v40, %v3545_v57  ;;  %v3934_v46 = vshll.u32 %v13509_v51, 16  ;;  %v3937_v26 = vshrl.u32 %v13509_v51, 16  ;;  %v13510_v40 = vld [vmem:[#allocation124_spill] sm:$0xff]  ;;  %vm11138_vm2 = vmor %vm3909_vm10, %vm3910_vm3  ;;  %vm13525_vm1 = vcmask 1041409  }
 0x111   : > { %v3549_v1 = vsel %vm2072_vm7, %v3548_v61, %v3547_v63  ;;  %v3942_v57 = vshll.u32 %v13510_v40, 16  ;;  %v3945_v14 = vshrl.u32 %v13510_v40, 16  ;;  %v3953_v61 = vshrl.u32 %v13511_v53, 16  ;;  %v13514_v63 = vld [vmem:[#allocation128_spill] sm:$0xff]  ;;  %vm13528_vm11 = vmmov %vm13525_vm1 }
 0x112   : > { %v3553_v22 = vpack.c.b16 %v3549_v1, %v11044_v38  ;;  %v3958_v11 = vshll.u32 %v13514_v63, 16  ;;  %v3961_v51 = vshrl.u32 %v13514_v63, 16  ;;  %v3966_v38 = vshll.u32 %v13515_v0, 16  ;;  %vm13556_vm14 = vmmov %vm13516_vm0 }
 0x113   : > { %v3920_v1 = vsel %vm11138_vm2, %v3913_v55, %v3918_v12  ;;  %v3928_v40 = vsel %vm11138_vm2, %v3921_v49, %v3926_v6  ;;  %v3936_v41 = vsel %vm11138_vm2, %v3929_v31, %v3934_v46  ;;  %v3944_v53 = vsel %vm11138_vm2, %v3937_v26, %v3942_v57  ;;  %v13517_v49 = vld [vmem:[#allocation130_spill] sm:$0xff]  ;;  %v13519_v26 = vld [vmem:[#allocation133_spill] sm:$0xff]  ;;  %vm13568_vm15 = vmmov %vm13525_vm1 }
 0x114   : > { %8823 = vmatmul.mubr.msk.bf16.gmra.mxu0 %vm13516_vm0, %v3553_v22  ;;  %v3952_v37 = vsel %vm11138_vm2, %v3945_v14, %v3950_v13  ;;  %v3960_v63 = vsel %vm11138_vm2, %v3953_v61, %v3958_v11  ;;  %v3968_v22 = vsel %vm11138_vm2, %v3961_v51, %v3966_v38  ;;  %v3969_v55 = vshrl.u32 %v13515_v0, 16  ;;  %v13520_v13 = vld [vmem:[#allocation136_spill] sm:$0xff]  ;;  %v13521_v51 = vld [vmem:[#allocation131_spill] sm:$0xff]  ;;  %vm13571_vm0 = vmmov %vm13525_vm1 }
 0x115   : > { %v3974_v12 = vshll.u32 %v11097_v18, 16  ;;  %v4043_v6 = vshrl.u32 %v13517_v49, 16  ;;  %v4048_v31 = vshll.u32 %v13518_v36, 16  ;;  %v4051_v46 = vshrl.u32 %v13518_v36, 16  ;;  %v13522_v18 = vld [vmem:[#allocation134_spill] sm:$0xff] }
 0x116   : > { %v4056_v57 = vshll.u32 %v13519_v26, 16  ;;  %v4059_v14 = vshrl.u32 %v13519_v26, 16  ;;  %v4064_v16 = vshll.u32 %v13520_v13, 16  ;;  %v4067_v61 = vshrl.u32 %v13520_v13, 16 }
 0x117   : > { %v3976_v11 = vsel %vm11138_vm2, %v3969_v55, %v3974_v12  ;;  %v4050_v0 = vsel %vm11138_vm2, %v4043_v6, %v4048_v31  ;;  %v4072_v38 = vshll.u32 %v13521_v51, 16  ;;  %v4075_v49 = vshrl.u32 %v13521_v51, 16  ;;  %v13523_v12 = vld [vmem:[#allocation135_spill] sm:$0xff]  ;;  %v13524_v31 = vld [vmem:[#allocation138_spill] sm:$0xff] }
 0x118   : > { %v4058_v36 = vsel %vm11138_vm2, %v4051_v46, %v4056_v57  ;;  %v4066_v26 = vsel %vm11138_vm2, %v4059_v14, %v4064_v16  ;;  %v4080_v35 = vshll.u32 %v13522_v18, 16  ;;  %v4083_v13 = vshrl.u32 %v13522_v18, 16 }
 0x119   : > { %v4074_v55 = vsel %vm11138_vm2, %v4067_v61, %v4072_v38  ;;  %v4088_v30 = vshll.u32 %v13523_v12, 16  ;;  %v4091_v6 = vshrl.u32 %v13523_v12, 16  ;;  %v4096_v29 = vshll.u32 %v13524_v31, 16 }
 0x11a   : > { %v4082_v51 = vsel %vm11138_vm2, %v4075_v49, %v4080_v35  ;;  %v4099_v46 = vshrl.u32 %v13524_v31, 16  ;;  %v4104_v16 = vshll.u32 %v11109_v25, 16  ;;  %v5025_v57 = vrot.slane %v3920_v1, %v9127_v8 }
 0x11b   : > { %v4090_v18 = vsel %vm11138_vm2, %v4083_v13, %v4088_v30  ;;  %v4098_v14 = vsel %vm11138_vm2, %v4091_v6, %v4096_v29  ;;  %v5039_v61 = vrot.slane %v3928_v40, %v9127_v8  ;;  %v5053_v38 = vrot.slane %v3936_v41, %v9127_v8 }
 0x11c   : > { %v4106_v12 = vsel %vm11138_vm2, %v4099_v46, %v4104_v16  ;;  %v5032_v35 = vrot.slane %v5025_v57, %v9127_v8  ;;  %v5067_v49 = vrot.slane %v3944_v53, %v9127_v8  ;;  %v5081_v31 = vrot.slane %v3952_v37, %v9127_v8 }
 0x11d   : > { %v5046_v1 = vrot.slane %v5039_v61, %v9127_v8  ;;  %v5060_v30 = vrot.slane %v5053_v38, %v9127_v8  ;;  %v5095_v13 = vrot.slane %v3960_v63, %v9127_v8  ;;  %v5109_v29 = vrot.slane %v3968_v22, %v9127_v8 }
 0x11e   : > { %v5074_v40 = vrot.slane %v5067_v49, %v9127_v8  ;;  %v5088_v41 = vrot.slane %v5081_v31, %v9127_v8  ;;  %v5123_v6 = vrot.slane %v3976_v11, %v9127_v8  ;;  %v5137_v46 = vrot.slane %v4050_v0, %v9127_v8 }
 0x11f   : > { %v5102_v53 = vrot.slane %v5095_v13, %v9127_v8  ;;  %v5116_v37 = vrot.slane %v5109_v29, %v9127_v8  ;;  %v5151_v16 = vrot.slane %v4058_v36, %v9127_v8  ;;  %v5165_v57 = vrot.slane %v4066_v26, %v9127_v8 }
 0x120   : > { %v5130_v63 = vrot.slane %v5123_v6, %v9127_v8  ;;  %v5144_v22 = vrot.slane %v5137_v46, %v9127_v8  ;;  %v5179_v61 = vrot.slane %v4074_v55, %v9127_v8  ;;  %v5193_v38 = vrot.slane %v4082_v51, %v9127_v8 }
 0x121   : > { %v5158_v11 = vrot.slane %v5151_v16, %v9127_v8  ;;  %v5172_v0 = vrot.slane %v5165_v57, %v9127_v8  ;;  %v5207_v49 = vrot.slane %v4090_v18, %v9127_v8  ;;  %v5221_v31 = vrot.slane %v4098_v14, %v9127_v8 }
 0x122   : > { %v5186_v36 = vrot.slane %v5179_v61, %v9127_v8  ;;  %v5200_v26 = vrot.slane %v5193_v38, %v9127_v8  ;;  %v5235_v13 = vrot.slane %v4106_v12, %v9127_v8  ;;  %v5915_v29 = vunpack.c.l.b16 %v5032_v35 }
 0x123   : > { %v5214_v6 = vrot.slane %v5207_v49, %v9127_v8  ;;  %v5228_v55 = vrot.slane %v5221_v31, %v9127_v8  ;;  %v5916_v51 = vunpack.c.l.b16 %v5046_v1  ;;  %v5917_v46 = vunpack.c.l.b16 %v5060_v30  ;;  %v8562_v30 = vld.sshfl [vmem:[%s9132_s7 + $0x14] sm:$0x1 pattern:$0x75316420] }
 0x124   : > { %v5242_v16 = vrot.slane %v5235_v13, %v9127_v8  ;;  %v5918_v57 = vunpack.c.l.b16 %v5074_v40  ;;  %v5919_v18 = vunpack.c.l.b16 %v5088_v41  ;;  %v5920_v14 = vunpack.c.l.b16 %v5102_v53 }
 0x125   : > { %v5921_v25 = vunpack.c.l.b16 %v5116_v37  ;;  %v5922_v61 = vunpack.c.l.b16 %v5130_v63  ;;  %v5923_v9 = vunpack.c.l.b16 %v5144_v22  ;;  %v5924_v38 = vunpack.c.l.b16 %v5158_v11 }
 0x126   : > { %v5925_v10 = vunpack.c.l.b16 %v5172_v0  ;;  %v5926_v12 = vunpack.c.l.b16 %v5186_v36  ;;  %v5927_v35 = vunpack.c.l.b16 %v5200_v26  ;;  %v5928_v50 = vunpack.c.l.b16 %v5214_v6 }
 0x127   : > { %v5929_v49 = vunpack.c.l.b16 %v5228_v55  ;;  %v5930_v4 = vunpack.c.l.b16 %v5242_v16  ;;  %v5979_v31 = vrot.slane %v5916_v51, 7  ;;  %v5981_v1 = vrot.slane %v5917_v46, 6 }
 0x128   : > { %v5983_v13 = vrot.slane %v5918_v57, 5  ;;  %v5985_v43 = vrot.slane %v5919_v18, 4  ;;  %v5987_v40 = vrot.slane %v5920_v14, 3  ;;  %v5989_v32 = vrot.slane %v5921_v25, 2  ;;  %v13533_v57 = vld [vmem:[#allocation7_spill] sm:$0xff]  ;;  %v13534_v14 = vld [vmem:[#allocation12_spill] sm:$0xff] }
 0x129   : > { %v5980_v41 = vsel %vm13525_vm1, %v5979_v31, %v5915_v29  ;;  %v5991_v53 = vrot.slane %v5922_v61, 1  ;;  %v5993_v37 = vrot.slane %v5924_v38, 7  ;;  %v5995_v63 = vrot.slane %v5925_v10, 6  ;;  %v13536_v38 = vld [vmem:[#allocation8_spill] sm:$0xff] }
 0x12a   : > { %vm13526_vm3 = vcmask 1042434   ;;  %v5997_v11 = vrot.slane %v5926_v12, 5  ;;  %v5999_v0 = vrot.slane %v5927_v35, 4  ;;  %v6001_v36 = vrot.slane %v5928_v50, 3  ;;  %v13538_v35 = vld [vmem:[#allocation6_spill] sm:$0xff] }
 0x12b   : > { %v5982_v22 = vsel %vm13526_vm3, %v5981_v1, %v5980_v41  ;;  %vm13527_vm8 = vcmask 1043459   ;;  %v5994_v6 = vsel %vm13528_vm11, %v5993_v37, %v5923_v9  ;;  %v6003_v55 = vrot.slane %v5929_v49, 2  ;;  %vm13529_vm12 = vmmov %vm13526_vm3 }
 0x12c   : > { %v5984_v26 = vsel %vm13527_vm8, %v5983_v13, %v5982_v22  ;;  %v6005_v51 = vrot.slane %v5930_v4, 1  ;;  %v5996_v25 = vsel %vm13529_vm12, %v5995_v63, %v5994_v6  ;;  %v11238_v29 = vrot.slane %v8562_v30, %v9127_v8  ;;  %vm13532_vm13 = vmmov %vm13527_vm8  ;;  %v13539_v30 = vld [vmem:[#allocation5_spill] sm:$0xff]  ;;  %v13544_v6 = vld [vmem:[#allocation15_spill] sm:$0xff] }
 0x12d   : > { %v5986_v46 = vsel %vm2063_vm4, %v5985_v43, %v5984_v26  ;;  %v11241_v10 = vrot.slane %v8564_v17, %v9127_v8  ;;  %v5998_v50 = vsel %vm13532_vm13, %v5997_v11, %v5996_v25  ;;  %v3983_v18 = vshll.u32 %v13533_v57, 16  ;;  %v13543_v11 = vld [vmem:[#allocation10_spill] sm:$0xff]  ;;  %v13546_v25 = vld [vmem:[#allocation13_spill] sm:$0xff]  ;;  %vm13569_vm9 = vmmov %vm13526_vm3 }
 0x12e   : > { %13530 = vst [vmem:[#allocation125_spill] sm:$0xff] %v11238_v29  ;;  %v5988_v16 = vsel %vm2066_vm5, %v5987_v40, %v5986_v46  ;;  %v3986_v9 = vshrl.u32 %v13533_v57, 16  ;;  %v6000_v43 = vsel %vm2063_vm4, %v5999_v0, %v5998_v50  ;;  %v13535_v61 = vshll.u32 %v13534_v14, 16  ;;  %vm13570_vm10 = vmmov %vm13527_vm8 }
 0x12f   : > { %13531 = vst [vmem:[#allocation127_spill] sm:$0xff] %v11241_v10  ;;  %v5990_v4 = vsel %vm2069_vm6, %v5989_v32, %v5988_v16  ;;  %v13537_v12 = vshrl.u32 %v13536_v38, 16  ;;  %v4007_v49 = vshll.u32 %v13538_v35, 16  ;;  %v6002_v1 = vsel %vm2066_vm5, %v6001_v36, %v6000_v43  ;;  %vm13572_vm1 = vmmov %vm13526_vm3 }
 0x130   : > { %v5992_v31 = vsel %vm2072_vm7, %v5991_v53, %v5990_v4  ;;  %v13540_v13 = vshrl.u32 %v13539_v30, 16  ;;  %v13541_v40 = vshll.u32 %v13536_v38, 16  ;;  %v6004_v37 = vsel %vm2069_vm6, %v6003_v55, %v6002_v1  ;;  %v13555_v30 = vld [vmem:[#allocation11_spill] sm:$0xff]  ;;  %vm13573_vm3 = vmmov %vm13527_vm8 }
 0x131   : > { %v4001_v17 = vsel %vm11138_vm2, %v13537_v12, %v13535_v61  ;;  %v13542_v63 = vshrl.u32 %v13534_v14, 16  ;;  %v4010_v53 = vshrl.u32 %v13538_v35, 16  ;;  %v4015_v0 = vshll.u32 %v13543_v11, 16  ;;  %v13551_v12 = vld [vmem:[#allocation18_spill] sm:$0xff]  ;;  %vm13591_vm8 = vmmov %vm13556_vm14 }
 0x132   : > { %v3985_v32 = vsel %vm11138_vm2, %v13540_v13, %v3983_v18  ;;  %v3993_v41 = vsel %vm11138_vm2, %v3986_v9, %v13541_v40  ;;  %v11274_v36 = vsel %vm2072_vm7, %v6005_v51, %v6004_v37  ;;  %v4018_v26 = vshrl.u32 %v13543_v11, 16  ;;  %v13548_v9 = vld [vmem:[#allocation14_spill] sm:$0xff]  ;;  %v13557_v40 = vld [vmem:[#allocation9_spill] sm:$0xff]  ;;  %vm13599_vm11 = vmmov %vm13571_vm0 }
 0x133   : > { %v4009_v22 = vsel %vm11138_vm2, %v13542_v63, %v4007_v49  ;;  %v13545_v46 = vshll.u32 %v13544_v6, 16  ;;  %v13547_v16 = vshrl.u32 %v13546_v25, 16  ;;  %v4039_v50 = vshll.u32 %v11238_v29, 16  ;;  %v13553_v49 = vld [vmem:[#allocation16_spill] sm:$0xff]  ;;  %vm13600_vm12 = vmmov %vm13572_vm1 }
 0x134   : > { %v6091_v57 = vpack.c.b16 %v11274_v36, %v5992_v31  ;;  %v4017_v18 = vsel %vm11138_vm2, %v4010_v53, %v4015_v0  ;;  %v4113_v4 = vshll.u32 %v13548_v9, 16  ;;  %v4116_v51 = vshrl.u32 %v13548_v9, 16  ;;  %v13564_v9 = vld [vmem:[#allocation19_spill] sm:$0xff]  ;;  %vm13601_vm13 = vmmov %vm13573_vm3 }
 0x135   : > { %v4033_v55 = vsel %vm11138_vm2, %v13547_v16, %v13545_v46  ;;  %v13549_v43 = vshll.u32 %v13546_v25, 16  ;;  %v13550_v61 = vshrl.u32 %v13544_v6, 16  ;;  %v13552_v35 = vshll.u32 %v13551_v12, 16 }
 0x136   : > { %v13554_v31 = vshrl.u32 %v13553_v49, 16  ;;  %v4137_v13 = vshll.u32 %v13555_v30, 16  ;;  %8828 = vmatprep.mubr.msk.bf16.mxu1 %vm13556_vm14, %v6091_v57  ;;  %v13558_v37 = vshrl.u32 %v13557_v40, 16  ;;  %v13559_v53 = vshll.u32 %v13553_v49, 16  ;;  %vm13602_vm14 = vmmov %vm13571_vm0 }
 0x137   : > { %v4025_v14 = vsel %vm11138_vm2, %v4018_v26, %v13549_v43  ;;  %v4041_v38 = vsel %vm11138_vm2, %v13550_v61, %v4039_v50  ;;  %v4140_v0 = vshrl.u32 %v13555_v30, 16  ;;  %v13560_v26 = vld [vmem:[#allocation17_spill] sm:$0xff]  ;;  %v13561_v46 = vshrl.u32 %v13551_v12, 16  ;;  %v13562_v50 = vld [vmem:[#allocation20_spill] sm:$0xff] }
 0x138   : > { %v4131_v1 = vsel %vm11138_vm2, %v13554_v31, %v13552_v35  ;;  %v4115_v63 = vsel %vm11138_vm2, %v13558_v37, %v4113_v4  ;;  %v4123_v11 = vsel %vm11138_vm2, %v4116_v51, %v13559_v53  ;;  %v4145_v6 = vshll.u32 %v13560_v26, 16 }
 0x139   : > { %v4139_v25 = vsel %vm11138_vm2, %v13561_v46, %v4137_v13  ;;  %v4148_v16 = vshrl.u32 %v13560_v26, 16  ;;  %v13563_v57 = vshll.u32 %v13562_v50, 16  ;;  %v13565_v4 = vshrl.u32 %v13564_v9, 16 }
 0x13a   : > { %v4169_v51 = vshll.u32 %v11241_v10, 16  ;;  %v4147_v61 = vsel %vm11138_vm2, %v4140_v0, %v4145_v6  ;;  %v6191_v35 = vrot.slane %v3985_v32, %v9127_v8  ;;  %v6205_v12 = vrot.slane %v3993_v41, %v9127_v8 }
 0x13b   : > { %v4163_v43 = vsel %vm11138_vm2, %v13565_v4, %v13563_v57  ;;  %v6219_v49 = vrot.slane %v4001_v17, %v9127_v8  ;;  %v13566_v31 = vshll.u32 %v13564_v9, 16  ;;  %v13567_v13 = vshrl.u32 %v13562_v50, 16 }
 0x13c   : > { %v6233_v37 = vrot.slane %v4009_v22, %v9127_v8  ;;  %v6247_v53 = vrot.slane %v4017_v18, %v9127_v8  ;;  %v6198_v32 = vrot.slane %v6191_v35, %v9127_v8  ;;  %v6212_v41 = vrot.slane %v6205_v12, %v9127_v8 }
 0x13d   : > { %v4155_v30 = vsel %vm11138_vm2, %v4148_v16, %v13566_v31  ;;  %v4171_v40 = vsel %vm11138_vm2, %v13567_v13, %v4169_v51  ;;  %v6226_v17 = vrot.slane %v6219_v49, %v9127_v8  ;;  %v6261_v0 = vrot.slane %v4025_v14, %v9127_v8 }
 0x13e   : > { %v6240_v26 = vrot.slane %v6233_v37, %v9127_v8  ;;  %v6254_v6 = vrot.slane %v6247_v53, %v9127_v8  ;;  %v6275_v46 = vrot.slane %v4033_v55, %v9127_v8  ;;  %v6289_v16 = vrot.slane %v4041_v38, %v9127_v8 }
 0x13f   : > { %v6268_v22 = vrot.slane %v6261_v0, %v9127_v8  ;;  %v6303_v18 = vrot.slane %v4115_v63, %v9127_v8  ;;  %v6317_v50 = vrot.slane %v4123_v11, %v9127_v8  ;;  %v6331_v57 = vrot.slane %v4131_v1, %v9127_v8 }
 0x140   : > { %v6282_v9 = vrot.slane %v6275_v46, %v9127_v8  ;;  %v6296_v14 = vrot.slane %v6289_v16, %v9127_v8  ;;  %v6345_v4 = vrot.slane %v4139_v25, %v9127_v8  ;;  %v6359_v51 = vrot.slane %v4147_v61, %v9127_v8 }
 0x141   : > { %v6310_v55 = vrot.slane %v6303_v18, %v9127_v8  ;;  %v6324_v38 = vrot.slane %v6317_v50, %v9127_v8  ;;  %v6338_v35 = vrot.slane %v6331_v57, %v9127_v8  ;;  %v6373_v63 = vrot.slane %v4155_v30, %v9127_v8 }
 0x142   : > { %v6352_v11 = vrot.slane %v6345_v4, %v9127_v8  ;;  %v6366_v1 = vrot.slane %v6359_v51, %v9127_v8  ;;  %v6387_v12 = vrot.slane %v4163_v43, %v9127_v8  ;;  %v6401_v49 = vrot.slane %v4171_v40, %v9127_v8 }
 0x143   : > { %v6380_v25 = vrot.slane %v6373_v63, %v9127_v8  ;;  %v7081_v31 = vunpack.c.l.b16 %v6198_v32  ;;  %v7082_v61 = vunpack.c.l.b16 %v6212_v41  ;;  %v7083_v13 = vunpack.c.l.b16 %v6226_v17  ;;  %v8565_v63 = vld.sshfl [vmem:[%s9132_s7 + $0x38] sm:$0x1 pattern:$0x75316420] }
 0x144   : > { %v6394_v37 = vrot.slane %v6387_v12, %v9127_v8  ;;  %v6408_v53 = vrot.slane %v6401_v49, %v9127_v8  ;;  %v7084_v0 = vunpack.c.l.b16 %v6240_v26  ;;  %v7085_v30 = vunpack.c.l.b16 %v6254_v6  ;;  %v8567_v26 = vld.sshfl [vmem:[%s9132_s7 + $0x50] sm:$0x1 pattern:$0x75316420] }
 0x145   : > { %v7086_v46 = vunpack.c.l.b16 %v6268_v22  ;;  %v7087_v16 = vunpack.c.l.b16 %v6282_v9  ;;  %v7088_v18 = vunpack.c.l.b16 %v6296_v14  ;;  %v7089_v50 = vunpack.c.l.b16 %v6310_v55 }
 0x146   : > { %v7090_v43 = vunpack.c.l.b16 %v6324_v38  ;;  %v7091_v57 = vunpack.c.l.b16 %v6338_v35  ;;  %v7092_v40 = vunpack.c.l.b16 %v6352_v11  ;;  %v7093_v4 = vunpack.c.l.b16 %v6366_v1 }
 0x147   : > { %v7094_v51 = vunpack.c.l.b16 %v6380_v25  ;;  %v7095_v32 = vunpack.c.l.b16 %v6394_v37  ;;  %v7096_v41 = vunpack.c.l.b16 %v6408_v53  ;;  %v7145_v17 = vrot.slane %v7082_v61, 7 }
 0x148   : > { %v7147_v12 = vrot.slane %v7083_v13, 6  ;;  %v7149_v10 = vrot.slane %v7084_v0, 5  ;;  %v7151_v29 = vrot.slane %v7085_v30, 4  ;;  %v7153_v49 = vrot.slane %v7086_v46, 3 }
 0x149   : > { %v7146_v6 = vsel %vm13568_vm15, %v7145_v17, %v7081_v31  ;;  %v7155_v22 = vrot.slane %v7087_v16, 2  ;;  %v7157_v9 = vrot.slane %v7088_v18, 1  ;;  %v7159_v14 = vrot.slane %v7090_v43, 7  ;;  %vm13603_vm15 = vmmov %vm13572_vm1 }
 0x14a   : > { %v7148_v55 = vsel %vm13569_vm9, %v7147_v12, %v7146_v6  ;;  %v7161_v38 = vrot.slane %v7091_v57, 6  ;;  %v7163_v35 = vrot.slane %v7092_v40, 5  ;;  %v7165_v11 = vrot.slane %v7093_v4, 4  ;;  %vm13604_vm9 = vmmov %vm13573_vm3 }
 0x14b   : > { %v7150_v1 = vsel %vm13570_vm10, %v7149_v10, %v7148_v55  ;;  %v7160_v25 = vsel %vm13571_vm0, %v7159_v14, %v7089_v50  ;;  %v7167_v61 = vrot.slane %v7094_v51, 3  ;;  %v7169_v13 = vrot.slane %v7095_v32, 2  ;;  %v13574_v10 = vld [vmem:[#allocation152_spill] sm:$0xff]  ;;  %vm13635_vm10 = vmmov %vm13591_vm8 }
 0x14c   : > { %v7152_v37 = vsel %vm2063_vm4, %v7151_v29, %v7150_v1  ;;  %v7162_v53 = vsel %vm13572_vm1, %v7161_v38, %v7160_v25  ;;  %v7171_v0 = vrot.slane %v7096_v41, 1  ;;  %v11378_v31 = vrot.slane %v8565_v63, %v9127_v8 }
 0x14d   : > { %v7154_v30 = vsel %vm2066_vm5, %v7153_v49, %v7152_v37  ;;  %v7164_v46 = vsel %vm13573_vm3, %v7163_v35, %v7162_v53  ;;  %v11383_v16 = vrot.slane %v8567_v26, %v9127_v8  ;;  %v4178_v18 = vshll.u32 %v13574_v10, 16 }
 0x14e   : > { %v7156_v50 = vsel %vm2069_vm6, %v7155_v22, %v7154_v30  ;;  %v7166_v43 = vsel %vm2063_vm4, %v7165_v11, %v7164_v46  ;;  %v4181_v29 = vshrl.u32 %v13574_v10, 16  ;;  %v13575_v57 = vshll.u32 %v10349_v62, 16  ;;  %v13583_v11 = vld [vmem:[#allocation154_spill] sm:$0xff] }
 0x14f   : > { %v13576_v40 = vshrl.u32 %v10333_v60, 16  ;;  %v7158_v51 = vsel %vm2072_vm7, %v7157_v9, %v7156_v50  ;;  %v7168_v32 = vsel %vm2066_vm5, %v7167_v61, %v7166_v43  ;;  %v13577_v41 = vshrl.u32 %v10317_v2, 16 }
 0x150   : > { %v13578_v63 = vshll.u32 %v10323_v33, 16  ;;  %v13579_v12 = vshrl.u32 %v10349_v62, 16  ;;  %v7170_v26 = vsel %vm2069_vm6, %v7169_v13, %v7168_v32  ;;  %v13580_v6 = vshll.u32 %v10333_v60, 16 }
 0x151   : > { %v4196_v4 = vsel %vm11138_vm2, %v13576_v40, %v13575_v57  ;;  %v4180_v17 = vsel %vm11138_vm2, %v13577_v41, %v4178_v18  ;;  %v4205_v9 = vshrl.u32 %v10323_v33, 16  ;;  %v4213_v2 = vshrl.u32 %v10339_v3, 16  ;;  %v13590_v18 = vld [vmem:[#allocation153_spill] sm:$0xff] }
 0x152   : > { %v4204_v49 = vsel %vm11138_vm2, %v13579_v12, %v13578_v63  ;;  %v4188_v22 = vsel %vm11138_vm2, %v4181_v29, %v13580_v6  ;;  %v7172_v14 = vsel %vm2072_vm7, %v7171_v0, %v7170_v26  ;;  %v13581_v55 = vshll.u32 %v10359_v56, 16  ;;  %v13593_v29 = vld [vmem:[#allocation155_spill] sm:$0xff] }
 0x153   : > { %v13582_v62 = vshrl.u32 %v10343_v5, 16  ;;  %v4234_v35 = vshll.u32 %v11378_v31, 16  ;;  %v4308_v60 = vshll.u32 %v13583_v11, 16  ;;  %v7257_v1 = vpack.c.b16 %v7172_v14, %v7158_v51 }
 0x154   : > { %v13584_v25 = vshll.u32 %v10339_v3, 16  ;;  %v13585_v61 = vshll.u32 %v10343_v5, 16  ;;  %v4311_v37 = vshrl.u32 %v13583_v11, 16  ;;  %v13586_v53 = vshrl.u32 %v10359_v56, 16 }
 0x155   : > { %v4228_v38 = vsel %vm11138_vm2, %v13582_v62, %v13581_v55  ;;  %v13587_v30 = vshrl.u32 %v10352_v54, 16  ;;  %v13588_v46 = vshll.u32 %v10385_v42, 16  ;;  %v13589_v10 = vshrl.u32 %v10370_v48, 16  ;;  %8838 = vmatprep.mubr.msk.bf16.mxu0 %vm13591_vm8, %v7257_v1  ;;  %vm13644_vm8 = vmmov %vm13571_vm0 }
 0x156   : > { %v4212_v33 = vsel %vm11138_vm2, %v4205_v9, %v13584_v25  ;;  %v4220_v13 = vsel %vm11138_vm2, %v4213_v2, %v13585_v61  ;;  %v4236_v0 = vsel %vm11138_vm2, %v13586_v53, %v4234_v35  ;;  %v4332_v50 = vshll.u32 %v13590_v18, 16 }
 0x157   : > { %v4310_v3 = vsel %vm11138_vm2, %v13587_v30, %v4308_v60  ;;  %v4326_v5 = vsel %vm11138_vm2, %v13589_v10, %v13588_v46  ;;  %v13592_v56 = vshll.u32 %v10370_v48, 16  ;;  %v4335_v54 = vshrl.u32 %v13590_v18, 16 }
 0x158   : > { %v4340_v57 = vshll.u32 %v13593_v29, 16  ;;  %v4343_v40 = vshrl.u32 %v13593_v29, 16  ;;  %v13594_v51 = vshrl.u32 %v10385_v42, 16  ;;  %v13595_v41 = vshll.u32 %v10397_v24, 16 }
 0x159   : > { %v4318_v43 = vsel %vm11138_vm2, %v4311_v37, %v13592_v56  ;;  %v13596_v63 = vshrl.u32 %v10377_v52, 16  ;;  %v4364_v12 = vshll.u32 %v11383_v16, 16  ;;  %v5249_v26 = vrot.slane %v4180_v17, %v9127_v8 }
 0x15a   : > { %v4334_v32 = vsel %vm11138_vm2, %v13594_v51, %v4332_v50  ;;  %v4342_v6 = vsel %vm11138_vm2, %v4335_v54, %v4340_v57  ;;  %v13597_v9 = vshll.u32 %v10377_v52, 16  ;;  %v5263_v2 = vrot.slane %v4188_v22, %v9127_v8 }
 0x15b   : > { %v4358_v48 = vsel %vm11138_vm2, %v13596_v63, %v13595_v41  ;;  %v5277_v14 = vrot.slane %v4196_v4, %v9127_v8  ;;  %v13598_v55 = vshrl.u32 %v10397_v24, 16  ;;  %v5256_v35 = vrot.slane %v5249_v26, %v9127_v8 }
 0x15c   : > { %v4350_v42 = vsel %vm11138_vm2, %v4343_v40, %v13597_v9  ;;  %v5291_v17 = vrot.slane %v4204_v49, %v9127_v8  ;;  %v5305_v11 = vrot.slane %v4212_v33, %v9127_v8  ;;  %v5270_v52 = vrot.slane %v5263_v2, %v9127_v8 }
 0x15d   : > { %v4366_v62 = vsel %vm11138_vm2, %v13598_v55, %v4364_v12  ;;  %v5284_v60 = vrot.slane %v5277_v14, %v9127_v8  ;;  %v5319_v1 = vrot.slane %v4220_v13, %v9127_v8  ;;  %v5333_v22 = vrot.slane %v4228_v38, %v9127_v8 }
 0x15e   : > { %v5298_v4 = vrot.slane %v5291_v17, %v9127_v8  ;;  %v5312_v24 = vrot.slane %v5305_v11, %v9127_v8  ;;  %v5347_v25 = vrot.slane %v4236_v0, %v9127_v8  ;;  %v5361_v61 = vrot.slane %v4310_v3, %v9127_v8  ;;  %v8566_v11 = vld.sshfl [vmem:[%s9132_s7 + $0x44] sm:$0x1 pattern:$0x75316420] }
 0x15f   : > { %v5326_v49 = vrot.slane %v5319_v1, %v9127_v8  ;;  %v5340_v33 = vrot.slane %v5333_v22, %v9127_v8  ;;  %v5375_v37 = vrot.slane %v4318_v43, %v9127_v8  ;;  %v5389_v53 = vrot.slane %v4326_v5, %v9127_v8 }
 0x160   : > { %v5354_v13 = vrot.slane %v5347_v25, %v9127_v8  ;;  %v5368_v38 = vrot.slane %v5361_v61, %v9127_v8  ;;  %v5403_v30 = vrot.slane %v4334_v32, %v9127_v8  ;;  %v5417_v46 = vrot.slane %v4342_v6, %v9127_v8 }
 0x161   : > { %v5382_v0 = vrot.slane %v5375_v37, %v9127_v8  ;;  %v5396_v3 = vrot.slane %v5389_v53, %v9127_v8  ;;  %v5431_v10 = vrot.slane %v4350_v42, %v9127_v8  ;;  %v5445_v18 = vrot.slane %v4358_v48, %v9127_v8 }
 0x162   : > { %v5410_v50 = vrot.slane %v5403_v30, %v9127_v8  ;;  %v5424_v5 = vrot.slane %v5417_v46, %v9127_v8  ;;  %v5459_v56 = vrot.slane %v4366_v62, %v9127_v8  ;;  %v5931_v43 = vunpack.c.l.b16 %v5256_v35 }
 0x163   : > { %v5438_v54 = vrot.slane %v5431_v10, %v9127_v8  ;;  %v5452_v29 = vrot.slane %v5445_v18, %v9127_v8  ;;  %v5932_v57 = vunpack.c.l.b16 %v5270_v52  ;;  %v5933_v40 = vunpack.c.l.b16 %v5284_v60  ;;  %v8568_v52 = vld.sshfl [vmem:[%s9132_s7 + $0x5c] sm:$0x1 pattern:$0x75316420] }
 0x164   : > { %v5466_v51 = vrot.slane %v5459_v56, %v9127_v8  ;;  %v5934_v32 = vunpack.c.l.b16 %v5298_v4  ;;  %v5935_v41 = vunpack.c.l.b16 %v5312_v24  ;;  %v5936_v63 = vunpack.c.l.b16 %v5326_v49 }
 0x165   : > { %v5937_v48 = vunpack.c.l.b16 %v5340_v33  ;;  %v5938_v12 = vunpack.c.l.b16 %v5354_v13  ;;  %v5939_v26 = vunpack.c.l.b16 %v5368_v38  ;;  %v5940_v6 = vunpack.c.l.b16 %v5382_v0 }
 0x166   : > { %v5941_v9 = vunpack.c.l.b16 %v5396_v3  ;;  %v5942_v42 = vunpack.c.l.b16 %v5410_v50  ;;  %v5943_v2 = vunpack.c.l.b16 %v5424_v5  ;;  %v5944_v14 = vunpack.c.l.b16 %v5438_v54 }
 0x167   : > { %v5945_v55 = vunpack.c.l.b16 %v5452_v29  ;;  %v5946_v62 = vunpack.c.l.b16 %v5466_v51  ;;  %v6007_v35 = vrot.slane %v5932_v57, 7  ;;  %v6009_v17 = vrot.slane %v5933_v40, 6  ;;  %v13606_v51 = vld [vmem:[#allocation74_spill] sm:$0xff] }
 0x168   : > { %v6011_v60 = vrot.slane %v5934_v32, 5  ;;  %v6013_v1 = vrot.slane %v5935_v41, 4  ;;  %v6015_v22 = vrot.slane %v5936_v63, 3  ;;  %v6017_v4 = vrot.slane %v5937_v48, 2  ;;  %v13608_v41 = vld [vmem:[#allocation68_spill] sm:$0xff] }
 0x169   : > { %v6008_v24 = vsel %vm13599_vm11, %v6007_v35, %v5931_v43  ;;  %v6019_v25 = vrot.slane %v5938_v12, 1  ;;  %v6021_v61 = vrot.slane %v5940_v6, 7  ;;  %v6023_v49 = vrot.slane %v5941_v9, 6  ;;  %v13605_v43 = vld [vmem:[#allocation67_spill] sm:$0xff]  ;;  %v13610_v12 = vld [vmem:[#allocation65_spill] sm:$0xff]  ;;  %vm13645_vm11 = vmmov %vm13572_vm1 }
 0x16a   : > { %v6010_v33 = vsel %vm13600_vm12, %v6009_v17, %v6008_v24  ;;  %v6025_v37 = vrot.slane %v5942_v42, 5  ;;  %v6027_v53 = vrot.slane %v5943_v2, 4  ;;  %v6029_v13 = vrot.slane %v5944_v14, 3  ;;  %v13613_v14 = vld [vmem:[#allocation64_spill] sm:$0xff] }
 0x16b   : > { %v6012_v38 = vsel %vm13601_vm13, %v6011_v60, %v6010_v33  ;;  %v6022_v30 = vsel %vm13602_vm14, %v6021_v61, %v5939_v26  ;;  %v6031_v46 = vrot.slane %v5945_v55, 2  ;;  %v6033_v0 = vrot.slane %v5946_v62, 1  ;;  %v13616_v60 = vld [vmem:[#allocation71_spill] sm:$0xff]  ;;  %v13619_v24 = vld [vmem:[#allocation72_spill] sm:$0xff]  ;;  %vm13647_vm13 = vmmov %vm13573_vm3 }
 0x16c   : > { %v6014_v3 = vsel %vm2063_vm4, %v6013_v1, %v6012_v38  ;;  %v6024_v10 = vsel %vm13603_vm15, %v6023_v49, %v6022_v30  ;;  %v11517_v18 = vrot.slane %v8566_v11, %v9127_v8  ;;  %v11520_v50 = vrot.slane %v8568_v52, %v9127_v8  ;;  %vm13656_vm15 = vmmov %vm13635_vm10 }
 0x16d   : > { %v6016_v5 = vsel %vm2066_vm5, %v6015_v22, %v6014_v3  ;;  %v6026_v56 = vsel %vm13604_vm9, %v6025_v37, %v6024_v10  ;;  %v4243_v54 = vshll.u32 %v13605_v43, 16  ;;  %v4246_v29 = vshrl.u32 %v13605_v43, 16  ;;  %v13617_v22 = vld [vmem:[#allocation77_spill] sm:$0xff]  ;;  %v13624_v10 = vld [vmem:[#allocation79_spill] sm:$0xff] }
 0x16e   : > { %v6018_v57 = vsel %vm2069_vm6, %v6017_v4, %v6016_v5  ;;  %v6028_v40 = vsel %vm2063_vm4, %v6027_v53, %v6026_v56  ;;  %v13607_v32 = vshll.u32 %v13606_v51, 16  ;;  %v13609_v63 = vshrl.u32 %v13608_v41, 16  ;;  %v13621_v37 = vld [vmem:[#allocation73_spill] sm:$0xff]  ;;  %v13626_v56 = vld [vmem:[#allocation75_spill] sm:$0xff] }
 0x16f   : > { %v13611_v26 = vshll.u32 %v13610_v12, 16  ;;  %v13612_v6 = vshrl.u32 %v13606_v51, 16  ;;  %v11541_v42 = vsel %vm2072_vm7, %v6019_v25, %v6018_v57  ;;  %v6030_v2 = vsel %vm2066_vm5, %v6029_v13, %v6028_v40  ;;  %v13629_v40 = vld [vmem:[#allocation66_spill] sm:$0xff] }
 0x170   : > { %v4261_v48 = vsel %vm11138_vm2, %v13609_v63, %v13607_v32  ;;  %v13614_v55 = vshrl.u32 %v13613_v14, 16  ;;  %v13615_v35 = vshll.u32 %v13608_v41, 16  ;;  %v6032_v11 = vsel %vm2069_vm6, %v6031_v46, %v6030_v2 }
 0x171   : > { %v4269_v9 = vsel %vm11138_vm2, %v13612_v6, %v13611_v26  ;;  %v4270_v52 = vshrl.u32 %v13610_v12, 16  ;;  %v4278_v1 = vshrl.u32 %v13616_v60, 16  ;;  %v13618_v4 = vshll.u32 %v13617_v22, 16  ;;  %v13632_v12 = vld [vmem:[#allocation69_spill] sm:$0xff] }
 0x172   : > { %v4245_v62 = vsel %vm11138_vm2, %v13614_v55, %v4243_v54  ;;  %v4253_v17 = vsel %vm11138_vm2, %v4246_v29, %v13615_v35  ;;  %v13620_v25 = vshrl.u32 %v13619_v24, 16  ;;  %v11562_v49 = vsel %vm2072_vm7, %v6033_v0, %v6032_v11  ;;  %v13636_v55 = vld [vmem:[#allocation76_spill] sm:$0xff] }
 0x173   : > { %v4299_v33 = vshll.u32 %v11517_v18, 16  ;;  %v4373_v53 = vshll.u32 %v13621_v37, 16  ;;  %v4376_v13 = vshrl.u32 %v13621_v37, 16  ;;  %v6092_v38 = vpack.c.b16 %v11562_v49, %v11541_v42  ;;  %v13637_v11 = vld [vmem:[#allocation80_spill] sm:$0xff] }
 0x174   : > { %v4293_v61 = vsel %vm11138_vm2, %v13620_v25, %v13618_v4  ;;  %v13622_v30 = vshll.u32 %v13616_v60, 16  ;;  %v13623_v3 = vshll.u32 %v13619_v24, 16  ;;  %v13625_v5 = vshll.u32 %v13624_v10, 16  ;;  %v13639_v60 = vld [vmem:[#allocation78_spill] sm:$0xff] }
 0x175   : > { %v13627_v43 = vshrl.u32 %v13626_v56, 16  ;;  %v13628_v29 = vshrl.u32 %v13617_v22, 16  ;;  %v13630_v51 = vshrl.u32 %v13629_v40, 16  ;;  %v13631_v41 = vshll.u32 %v13626_v56, 16  ;;  %8829 = vmatmul.mubr.msk.bf16.vlgmr.msra.gmra.mxu1 %vm13635_vm10, %v6092_v38 }
 0x176   : > { %v4277_v46 = vsel %vm11138_vm2, %v4270_v52, %v13622_v30  ;;  %v4285_v0 = vsel %vm11138_vm2, %v4278_v1, %v13623_v3  ;;  %v13633_v26 = vshll.u32 %v13632_v12, 16  ;;  %v13634_v6 = vshrl.u32 %v13624_v10, 16 }
 0x177   : > { %v4391_v54 = vsel %vm11138_vm2, %v13627_v43, %v13625_v5  ;;  %v4301_v57 = vsel %vm11138_vm2, %v13628_v29, %v4299_v33  ;;  %v4375_v32 = vsel %vm11138_vm2, %v13630_v51, %v4373_v53  ;;  %v4383_v63 = vsel %vm11138_vm2, %v4376_v13, %v13631_v41 }
 0x178   : > { %v4399_v2 = vsel %vm11138_vm2, %v13634_v6, %v13633_v26  ;;  %v4400_v14 = vshrl.u32 %v13632_v12, 16  ;;  %v4408_v35 = vshrl.u32 %v13636_v55, 16  ;;  %v13638_v52 = vshll.u32 %v13637_v11, 16 }
 0x179   : > { %v13640_v1 = vshrl.u32 %v13639_v60, 16  ;;  %v4429_v4 = vshll.u32 %v11520_v50, 16  ;;  %v6415_v24 = vrot.slane %v4245_v62, %v9127_v8  ;;  %v6429_v25 = vrot.slane %v4253_v17, %v9127_v8 }
 0x17a   : > { %v6443_v33 = vrot.slane %v4261_v48, %v9127_v8  ;;  %v6457_v37 = vrot.slane %v4269_v9, %v9127_v8  ;;  %v13641_v53 = vshll.u32 %v13636_v55, 16  ;;  %v13642_v38 = vshll.u32 %v13639_v60, 16 }
 0x17b   : > { %v4423_v22 = vsel %vm11138_vm2, %v13640_v1, %v13638_v52  ;;  %v13643_v3 = vshrl.u32 %v13637_v11, 16  ;;  %v6471_v17 = vrot.slane %v4277_v46, %v9127_v8  ;;  %v6422_v48 = vrot.slane %v6415_v24, %v9127_v8 }
 0x17c   : > { %v4407_v13 = vsel %vm11138_vm2, %v4400_v14, %v13641_v53  ;;  %v4415_v30 = vsel %vm11138_vm2, %v4408_v35, %v13642_v38  ;;  %v6436_v9 = vrot.slane %v6429_v25, %v9127_v8  ;;  %v6450_v10 = vrot.slane %v6443_v33, %v9127_v8 }
 0x17d   : > { %v4431_v62 = vsel %vm11138_vm2, %v13643_v3, %v4429_v4  ;;  %v6464_v5 = vrot.slane %v6457_v37, %v9127_v8  ;;  %v6478_v56 = vrot.slane %v6471_v17, %v9127_v8  ;;  %v6485_v43 = vrot.slane %v4285_v0, %v9127_v8 }
 0x17e   : > { %v6499_v29 = vrot.slane %v4293_v61, %v9127_v8  ;;  %v6513_v40 = vrot.slane %v4301_v57, %v9127_v8  ;;  %v6527_v51 = vrot.slane %v4375_v32, %v9127_v8  ;;  %v6541_v46 = vrot.slane %v4383_v63, %v9127_v8 }
 0x17f   : > { %v6555_v41 = vrot.slane %v4391_v54, %v9127_v8  ;;  %v6569_v12 = vrot.slane %v4399_v2, %v9127_v8  ;;  %v6492_v26 = vrot.slane %v6485_v43, %v9127_v8  ;;  %v6583_v0 = vrot.slane %v4407_v13, %v9127_v8 }
 0x180   : > { %v6506_v6 = vrot.slane %v6499_v29, %v9127_v8  ;;  %v6520_v14 = vrot.slane %v6513_v40, %v9127_v8  ;;  %v6534_v61 = vrot.slane %v6527_v51, %v9127_v8  ;;  %v6548_v57 = vrot.slane %v6541_v46, %v9127_v8  ;;  %v8569_v51 = vld.sshfl [vmem:[%s9132_s7 + $0x68] sm:$0x1 pattern:$0x75316420] }
 0x181   : > { %v6562_v32 = vrot.slane %v6555_v41, %v9127_v8  ;;  %v6576_v63 = vrot.slane %v6569_v12, %v9127_v8  ;;  %v6590_v54 = vrot.slane %v6583_v0, %v9127_v8  ;;  %v6597_v2 = vrot.slane %v4415_v30, %v9127_v8 }
 0x182   : > { %v6611_v55 = vrot.slane %v4423_v22, %v9127_v8  ;;  %v6625_v35 = vrot.slane %v4431_v62, %v9127_v8  ;;  %v7097_v11 = vunpack.c.l.b16 %v6422_v48  ;;  %v7098_v52 = vunpack.c.l.b16 %v6436_v9 }
 0x183   : > { %v7099_v60 = vunpack.c.l.b16 %v6450_v10  ;;  %v7100_v1 = vunpack.c.l.b16 %v6464_v5  ;;  %v6604_v4 = vrot.slane %v6597_v2, %v9127_v8  ;;  %v7101_v33 = vunpack.c.l.b16 %v6478_v56 }
 0x184   : > { %v6618_v24 = vrot.slane %v6611_v55, %v9127_v8  ;;  %v6632_v25 = vrot.slane %v6625_v35, %v9127_v8  ;;  %v7102_v37 = vunpack.c.l.b16 %v6492_v26  ;;  %v7103_v53 = vunpack.c.l.b16 %v6506_v6 }
 0x185   : > { %v7104_v13 = vunpack.c.l.b16 %v6520_v14  ;;  %v7105_v38 = vunpack.c.l.b16 %v6534_v61  ;;  %v7106_v30 = vunpack.c.l.b16 %v6548_v57  ;;  %v7107_v22 = vunpack.c.l.b16 %v6562_v32 }
 0x186   : > { %v7108_v3 = vunpack.c.l.b16 %v6576_v63  ;;  %v7109_v62 = vunpack.c.l.b16 %v6590_v54  ;;  %v7110_v17 = vunpack.c.l.b16 %v6604_v4  ;;  %v7111_v48 = vunpack.c.l.b16 %v6618_v24  ;;  %v8571_v54 = vld.sshfl [vmem:[%s9132_s7 + $0x80] sm:$0x1 pattern:$0x75316420] }
 0x187   : > { %v7112_v9 = vunpack.c.l.b16 %v6632_v25  ;;  %v7173_v10 = vrot.slane %v7098_v52, 7  ;;  %v7175_v5 = vrot.slane %v7099_v60, 6  ;;  %v7177_v43 = vrot.slane %v7100_v1, 5 }
 0x188   : > { %v7179_v29 = vrot.slane %v7101_v33, 4  ;;  %v7181_v40 = vrot.slane %v7102_v37, 3  ;;  %v7183_v46 = vrot.slane %v7103_v53, 2  ;;  %v7185_v41 = vrot.slane %v7104_v13, 1  ;;  %v13649_v53 = vld [vmem:[#allocation156_spill] sm:$0xff] }
 0x189   : > { %v7174_v56 = vsel %vm13571_vm0, %v7173_v10, %v7097_v11  ;;  %v7187_v12 = vrot.slane %v7106_v30, 7  ;;  %v7189_v6 = vrot.slane %v7107_v22, 6  ;;  %v7191_v14 = vrot.slane %v7108_v3, 5  ;;  %v8957_v11 = vld [vmem:[%s12840_s1 + $0xe] sm:$0x3]  ;;  %v13650_v22 = vld [vmem:[#allocation157_spill] sm:$0xff] }
 0x18a   : > { %v7176_v26 = vsel %vm13572_vm1, %v7175_v5, %v7174_v56  ;;  %v7193_v0 = vrot.slane %v7109_v62, 4  ;;  %v7195_v32 = vrot.slane %v7110_v17, 3  ;;  %v7197_v63 = vrot.slane %v7111_v48, 2  ;;  %v13651_v17 = vld [vmem:[#allocation159_spill] sm:$0xff]  ;;  %v13652_v10 = vld [vmem:[#allocation161_spill] sm:$0xff] }
 0x18b   : > { %v7178_v61 = vsel %vm13573_vm3, %v7177_v43, %v7176_v26  ;;  %v7188_v57 = vsel %vm13644_vm8, %v7187_v12, %v7105_v38  ;;  %v7199_v35 = vrot.slane %v7112_v9, 1  ;;  %vm13646_vm12 = vcmask 1041408   ;;  %vm13660_vm3 = vmmov %vm13571_vm0 }
 0x18c   : > { %v7180_v2 = vsel %vm2063_vm4, %v7179_v29, %v7178_v61  ;;  %v7190_v55 = vsel %vm13645_vm11, %v7189_v6, %v7188_v57  ;;  %v7502_v52 = vsel %vm13646_vm12, %v8957_v11, 0  ;;  %vm13648_vm14 = vmmov %vm13646_vm12  ;;  %v11672_v24 = vrot.slane %v8569_v51, %v9127_v8  ;;  %v13653_v51 = vld [vmem:[#allocation158_spill] sm:$0xff] }
 0x18d   : > { %v7182_v60 = vsel %vm2066_vm5, %v7181_v40, %v7180_v2  ;;  %v7192_v1 = vsel %vm13647_vm13, %v7191_v14, %v7190_v55  ;;  %8847 = vmatpush3.bf16.msra.mxu1 %v7502_v52  ;;  %v7828_v4 = vsel %vm13648_vm14, %v11059_v44, 0  ;;  %v11677_v37 = vrot.slane %v8571_v54, %v9127_v8  ;;  %v13654_v14 = vld [vmem:[#allocation160_spill] sm:$0xff]  ;;  %v13655_v57 = vld [vmem:[#allocation162_spill] sm:$0xff]  ;;  %v13657_v54 = vld [vmem:[#allocation163_spill] sm:$0xff] }
 0x18e   : > { %v7184_v25 = vsel %vm2069_vm6, %v7183_v46, %v7182_v60  ;;  %v7194_v33 = vsel %vm2063_vm4, %v7193_v0, %v7192_v1  ;;  %v4433_v13 = vshrl.u32 %v13649_v53, 16  ;;  %v4438_v3 = vshll.u32 %v13650_v22, 16  ;;  %vm13658_vm9 = vmmov %vm13646_vm12 }
 0x18f   : > { %v7186_v38 = vsel %vm2072_vm7, %v7185_v41, %v7184_v25  ;;  %v7196_v30 = vsel %vm2066_vm5, %v7195_v32, %v7194_v33  ;;  %v4441_v44 = vshrl.u32 %v13650_v22, 16  ;;  %v4446_v48 = vshll.u32 %v13651_v17, 16  ;;  %vm13659_vm10 = vmmov %vm13658_vm9 }
 0x190   : > { %v7198_v62 = vsel %vm2069_vm6, %v7197_v63, %v7196_v30  ;;  %v4449_v9 = vshrl.u32 %v13651_v17, 16  ;;  %v4454_v5 = vshll.u32 %v13652_v10, 16  ;;  %v4440_v29 = vsel %vm11138_vm2, %v4433_v13, %v4438_v3  ;;  %vm13661_vm8 = vmmov %vm13647_vm13 }
 0x191   : > { %v7200_v43 = vsel %vm2072_vm7, %v7199_v35, %v7198_v62  ;;  %v4457_v40 = vshrl.u32 %v13652_v10, 16  ;;  %v4462_v56 = vshll.u32 %v13653_v51, 16  ;;  %v4448_v41 = vsel %vm11138_vm2, %v4441_v44, %v4446_v48  ;;  %vm13662_vm11 = vmmov %vm13572_vm1 }
 0x192   : > { %v7258_v46 = vpack.c.b16 %v7200_v43, %v7186_v38  ;;  %v4456_v12 = vsel %vm11138_vm2, %v4449_v9, %v4454_v5  ;;  %v4465_v26 = vshrl.u32 %v13653_v51, 16  ;;  %v4470_v0 = vshll.u32 %v13654_v14, 16  ;;  %vm13663_vm12 = vmmov %vm13661_vm8 }
 0x193   : > { %v4464_v6 = vsel %vm11138_vm2, %v4457_v40, %v4462_v56  ;;  %v4473_v61 = vshrl.u32 %v13654_v14, 16  ;;  %v4478_v32 = vshll.u32 %v13655_v57, 16  ;;  %v4481_v63 = vshrl.u32 %v13655_v57, 16  ;;  %vm13684_vm13 = vmmov %vm13656_vm15 }
 0x194   : > { %8839 = vmatmul.mubr.msk.bf16.vlgmr.msra.gmra.mxu0 %vm13656_vm15, %v7258_v46  ;;  %v4486_v2 = vshll.u32 %v13657_v54, 16  ;;  %v4489_v55 = vshrl.u32 %v13657_v54, 16  ;;  %v4494_v35 = vshll.u32 %v11672_v24, 16  ;;  %v4472_v11 = vsel %vm11138_vm2, %v4465_v26, %v4470_v0  ;;  %vm13699_vm14 = vmmov %vm13571_vm0 }
 0x195   : > { %8857 = vmatpush3.bf16.msra.mxu0 %v7828_v4  ;;  %v4480_v52 = vsel %vm11138_vm2, %v4473_v61, %v4478_v32  ;;  %v4563_v60 = vshrl.u32 %v10716_v7, 16  ;;  %v4568_v1 = vshll.u32 %v10728_v19, 16  ;;  %v4571_v53 = vshrl.u32 %v10728_v19, 16  ;;  %vm13700_vm15 = vmmov %vm13572_vm1 }
 0x196   : > { %v4488_v25 = vsel %vm11138_vm2, %v4481_v63, %v4486_v2  ;;  %v4496_v33 = vsel %vm11138_vm2, %v4489_v55, %v4494_v35  ;;  %v4576_v4 = vshll.u32 %v10732_v45, 16  ;;  %v4579_v38 = vshrl.u32 %v10732_v45, 16 }
 0x197   : > { %v4570_v13 = vsel %vm11138_vm2, %v4563_v60, %v4568_v1  ;;  %v4584_v30 = vshll.u32 %v10754_v28, 16  ;;  %v4587_v7 = vshrl.u32 %v10754_v28, 16  ;;  %v4592_v3 = vshll.u32 %v10719_v27, 16  ;;  %v11738_v28 = vld [vmem:[%s12840_s1 + $0xa] sm:$0x3] }
 0x198   : > { %v4578_v22 = vsel %vm11138_vm2, %v4571_v53, %v4576_v4  ;;  %v4595_v44 = vshrl.u32 %v10719_v27, 16  ;;  %v4600_v19 = vshll.u32 %v10735_v39, 16  ;;  %v4603_v17 = vshrl.u32 %v10735_v39, 16  ;;  %8896 = vmatprep.subr.msk.bf16.mxu1 %vm13658_vm9, %v11738_v28  ;;  %vm13701_vm9 = vmmov %vm13661_vm8 }
 0x199   : > { %v4586_v62 = vsel %vm11138_vm2, %v4579_v38, %v4584_v30  ;;  %v4608_v45 = vshll.u32 %v10741_v21, 16  ;;  %v4611_v48 = vshrl.u32 %v10741_v21, 16  ;;  %v4594_v9 = vsel %vm11138_vm2, %v4587_v7, %v4592_v3 }
 0x19a   : > { %v4602_v27 = vsel %vm11138_vm2, %v4595_v44, %v4600_v19  ;;  %v4616_v10 = vshll.u32 %v10758_v23, 16  ;;  %v4619_v5 = vshrl.u32 %v10758_v23, 16  ;;  %v4624_v21 = vshll.u32 %v11677_v37, 16 }
 0x19b   : > { %v4610_v39 = vsel %vm11138_vm2, %v4603_v17, %v4608_v45  ;;  %v5473_v43 = vrot.slane %v4440_v29, %v9127_v8  ;;  %v5487_v40 = vrot.slane %v4448_v41, %v9127_v8  ;;  %v5501_v56 = vrot.slane %v4456_v12, %v9127_v8  ;;  %v11766_v41 = vld [vmem:[%s12840_s1 + $0x10] sm:$0x3] }
 0x19c   : > { %v4618_v51 = vsel %vm11138_vm2, %v4611_v48, %v4616_v10  ;;  %v5515_v46 = vrot.slane %v4464_v6, %v9127_v8  ;;  %v5529_v23 = vrot.slane %v4472_v11, %v9127_v8  ;;  %v4626_v26 = vsel %vm11138_vm2, %v4619_v5, %v4624_v21  ;;  %8897 = vmatprep.subr.msk.bf16.mxu0 %vm13659_vm10, %v11766_v41  ;;  %vm13702_vm10 = vmmov %vm13571_vm0 }
 0x19d   : > { %v5480_v14 = vrot.slane %v5473_v43, %v9127_v8  ;;  %v5494_v0 = vrot.slane %v5487_v40, %v9127_v8  ;;  %v5543_v29 = vrot.slane %v4480_v52, %v9127_v8  ;;  %v5508_v12 = vrot.slane %v5501_v56, %v9127_v8 }
 0x19e   : > { %v5522_v6 = vrot.slane %v5515_v46, %v9127_v8  ;;  %v5536_v61 = vrot.slane %v5529_v23, %v9127_v8  ;;  %v5557_v57 = vrot.slane %v4488_v25, %v9127_v8  ;;  %v5571_v63 = vrot.slane %v4496_v33, %v9127_v8  ;;  %v8570_v46 = vld.sshfl [vmem:[%s9132_s7 + $0x74] sm:$0x1 pattern:$0x75316420] }
 0x19f   : > { %v5550_v32 = vrot.slane %v5543_v29, %v9127_v8  ;;  %v5585_v54 = vrot.slane %v4570_v13, %v9127_v8  ;;  %v5599_v2 = vrot.slane %v4578_v22, %v9127_v8  ;;  %v5613_v35 = vrot.slane %v4586_v62, %v9127_v8  ;;  %v8572_v29 = vld.sshfl [vmem:[%s9132_s7 + $0x8c] sm:$0x1 pattern:$0x75316420] }
 0x1a0   : > { %v5564_v55 = vrot.slane %v5557_v57, %v9127_v8  ;;  %v5627_v11 = vrot.slane %v4594_v9, %v9127_v8  ;;  %v5641_v52 = vrot.slane %v4602_v27, %v9127_v8  ;;  %v5578_v60 = vrot.slane %v5571_v63, %v9127_v8 }
 0x1a1   : > { %v5592_v1 = vrot.slane %v5585_v54, %v9127_v8  ;;  %v5606_v25 = vrot.slane %v5599_v2, %v9127_v8  ;;  %v5655_v33 = vrot.slane %v4610_v39, %v9127_v8  ;;  %v5620_v53 = vrot.slane %v5613_v35, %v9127_v8 }
 0x1a2   : > { %v5634_v4 = vrot.slane %v5627_v11, %v9127_v8  ;;  %v5648_v13 = vrot.slane %v5641_v52, %v9127_v8  ;;  %v5669_v38 = vrot.slane %v4618_v51, %v9127_v8  ;;  %v5683_v7 = vrot.slane %v4626_v26, %v9127_v8 }
 0x1a3   : > { %v5662_v30 = vrot.slane %v5655_v33, %v9127_v8  ;;  %v5947_v22 = vunpack.c.l.b16 %v5480_v14  ;;  %v5948_v3 = vunpack.c.l.b16 %v5494_v0  ;;  %v5949_v19 = vunpack.c.l.b16 %v5508_v12 }
 0x1a4   : > { %v5676_v44 = vrot.slane %v5669_v38, %v9127_v8  ;;  %v5950_v62 = vunpack.c.l.b16 %v5522_v6  ;;  %v5951_v17 = vunpack.c.l.b16 %v5536_v61  ;;  %v5690_v45 = vrot.slane %v5683_v7, %v9127_v8  ;;  %v13664_v38 = vld [vmem:[#allocation36_spill] sm:$0xff] }
 0x1a5   : > { %v5952_v48 = vunpack.c.l.b16 %v5550_v32  ;;  %v5953_v9 = vunpack.c.l.b16 %v5564_v55  ;;  %v5954_v27 = vunpack.c.l.b16 %v5578_v60  ;;  %v5955_v10 = vunpack.c.l.b16 %v5592_v1 }
 0x1a6   : > { %v5956_v5 = vunpack.c.l.b16 %v5606_v25  ;;  %v5957_v39 = vunpack.c.l.b16 %v5620_v53  ;;  %v5958_v21 = vunpack.c.l.b16 %v5634_v4  ;;  %v5959_v43 = vunpack.c.l.b16 %v5648_v13 }
 0x1a7   : > { %v5960_v40 = vunpack.c.l.b16 %v5662_v30  ;;  %v5961_v51 = vunpack.c.l.b16 %v5676_v44  ;;  %v5962_v56 = vunpack.c.l.b16 %v5690_v45  ;;  %v6035_v23 = vrot.slane %v5948_v3, 7  ;;  %v13665_v44 = vld [vmem:[#allocation44_spill] sm:$0xff] }
 0x1a8   : > { %v6037_v26 = vrot.slane %v5949_v19, 6  ;;  %v6039_v14 = vrot.slane %v5950_v62, 5  ;;  %v6041_v0 = vrot.slane %v5951_v17, 4  ;;  %v6043_v12 = vrot.slane %v5952_v48, 3  ;;  %v13667_v62 = vld [vmem:[#allocation39_spill] sm:$0xff] }
 0x1a9   : > { %v6045_v6 = vrot.slane %v5953_v9, 2  ;;  %v6047_v61 = vrot.slane %v5954_v27, 1  ;;  %v6049_v57 = vrot.slane %v5956_v5, 7  ;;  %v6036_v32 = vsel %vm13571_vm0, %v6035_v23, %v5947_v22  ;;  %v13669_v27 = vld [vmem:[#allocation34_spill] sm:$0xff]  ;;  %vm13703_vm0 = vmmov %vm13572_vm1 }
 0x1aa   : > { %v6051_v63 = vrot.slane %v5957_v39, 6  ;;  %v6053_v54 = vrot.slane %v5958_v21, 5  ;;  %v6055_v2 = vrot.slane %v5959_v43, 4  ;;  %v6038_v55 = vsel %vm13572_vm1, %v6037_v26, %v6036_v32  ;;  %v13671_v39 = vld [vmem:[#allocation35_spill] sm:$0xff]  ;;  %vm13704_vm1 = vmmov %vm13661_vm8 }
 0x1ab   : > { %v6050_v35 = vsel %vm13660_vm3, %v6049_v57, %v5955_v10  ;;  %v6057_v11 = vrot.slane %v5960_v40, 3  ;;  %v6059_v52 = vrot.slane %v5961_v51, 2  ;;  %v6040_v60 = vsel %vm13661_vm8, %v6039_v14, %v6038_v55  ;;  %v13675_v57 = vld [vmem:[#allocation47_spill] sm:$0xff]  ;;  %vm13708_vm3 = vmmov %vm13684_vm13 }
 0x1ac   : > { %v6052_v1 = vsel %vm13662_vm11, %v6051_v63, %v6050_v35  ;;  %v6061_v25 = vrot.slane %v5962_v56, 1  ;;  %v11802_v33 = vrot.slane %v8570_v46, %v9127_v8  ;;  %v6042_v53 = vsel %vm2063_vm4, %v6041_v0, %v6040_v60  ;;  %v13677_v63 = vld [vmem:[#allocation41_spill] sm:$0xff]  ;;  %vm13717_vm8 = vmmov %vm13702_vm10 }
 0x1ad   : > { %v6054_v4 = vsel %vm13663_vm12, %v6053_v54, %v6052_v1  ;;  %v11807_v13 = vrot.slane %v8572_v29, %v9127_v8  ;;  %v4503_v30 = vshll.u32 %v13664_v38, 16  ;;  %v6044_v7 = vsel %vm2066_vm5, %v6043_v12, %v6042_v53  ;;  %v13674_v29 = vld [vmem:[#allocation40_spill] sm:$0xff]  ;;  %v13680_v1 = vld [vmem:[#allocation49_spill] sm:$0xff]  ;;  %vm13718_vm11 = vmmov %vm13703_vm0 }
 0x1ae   : > { %v6056_v22 = vsel %vm2063_vm4, %v6055_v2, %v6054_v4  ;;  %v4506_v3 = vshrl.u32 %v13664_v38, 16  ;;  %v13666_v19 = vshll.u32 %v13665_v44, 16  ;;  %v13668_v17 = vshrl.u32 %v13667_v62, 16  ;;  %v13682_v53 = vld [vmem:[#allocation45_spill] sm:$0xff]  ;;  %vm13719_vm12 = vmmov %vm13704_vm1 }
 0x1af   : > { %v6046_v48 = vsel %vm2069_vm6, %v6045_v6, %v6044_v7  ;;  %v6058_v9 = vsel %vm2066_vm5, %v6057_v11, %v6056_v22  ;;  %v13670_v10 = vshrl.u32 %v13669_v27, 16  ;;  %v4527_v21 = vshll.u32 %v13671_v39, 16  ;;  %v13679_v11 = vld [vmem:[#allocation42_spill] sm:$0xff] }
 0x1b0   : > { %v4521_v45 = vsel %vm11138_vm2, %v13668_v17, %v13666_v19  ;;  %v11827_v43 = vsel %vm2072_vm7, %v6047_v61, %v6046_v48  ;;  %v6060_v40 = vsel %vm2069_vm6, %v6059_v52, %v6058_v9  ;;  %v13672_v51 = vshll.u32 %v13667_v62, 16  ;;  %v13688_v17 = vld [vmem:[#allocation37_spill] sm:$0xff] }
 0x1b1   : > { %v4505_v5 = vsel %vm11138_vm2, %v13670_v10, %v4503_v30  ;;  %v4530_v46 = vshrl.u32 %v13671_v39, 16  ;;  %v11836_v23 = vsel %vm2072_vm7, %v6061_v25, %v6060_v40  ;;  %v7486_v26 = vpack.c.b16 %v11827_v43, %v11562_v49  ;;  %v13691_v39 = vld [vmem:[#allocation46_spill] sm:$0xff] }
 0x1b2   : > { %v4513_v56 = vsel %vm11138_vm2, %v4506_v3, %v13672_v51  ;;  %v13673_v14 = vshrl.u32 %v13665_v44, 16  ;;  %v4535_v12 = vshll.u32 %v13674_v29, 16  ;;  %v6093_v6 = vpack.c.b16 %v11836_v23, %v11827_v43  ;;  %v13687_v44 = vld [vmem:[#allocation38_spill] sm:$0xff] }
 0x1b3   : > { %v4538_v61 = vshrl.u32 %v13674_v29, 16  ;;  %v13676_v32 = vshll.u32 %v13675_v57, 16  ;;  %v13678_v54 = vshrl.u32 %v13677_v63, 16  ;;  %v4559_v55 = vshll.u32 %v11802_v33, 16 }
 0x1b4   : > { %v4529_v0 = vsel %vm11138_vm2, %v13673_v14, %v4527_v21  ;;  %v4537_v35 = vsel %vm11138_vm2, %v4530_v46, %v4535_v12  ;;  %v4633_v52 = vshll.u32 %v13679_v11, 16  ;;  %v4636_v60 = vshrl.u32 %v13679_v11, 16  ;;  %8832 = vmatprep.mubr.msk.bf16.mxu1 %vm13684_vm13, %v6093_v6  ;;  %v13693_v14 = vld [vmem:[#allocation50_spill] sm:$0xff]  ;;  %v13695_v12 = vld [vmem:[#allocation48_spill] sm:$0xff]  ;;  %vm13720_vm13 = vmmov %vm13717_vm8 }
 0x1b5   : > { %v4553_v2 = vsel %vm11138_vm2, %v13678_v54, %v13676_v32  ;;  %v13681_v25 = vshll.u32 %v13680_v1, 16  ;;  %v13683_v4 = vshrl.u32 %v13682_v53, 16  ;;  %v13685_v30 = vshll.u32 %v13677_v63, 16 }
 0x1b6   : > { %v13686_v22 = vshrl.u32 %v13675_v57, 16  ;;  %v4657_v19 = vshll.u32 %v13687_v44, 16  ;;  %v4660_v62 = vshrl.u32 %v13687_v44, 16  ;;  %v13689_v48 = vshrl.u32 %v13688_v17, 16 }
 0x1b7   : > { %v4651_v38 = vsel %vm11138_vm2, %v13683_v4, %v13681_v25  ;;  %v4545_v7 = vsel %vm11138_vm2, %v4538_v61, %v13685_v30  ;;  %v13690_v27 = vshll.u32 %v13682_v53, 16  ;;  %v4665_v21 = vshll.u32 %v13691_v39, 16 }
 0x1b8   : > { %v4561_v3 = vsel %vm11138_vm2, %v13686_v22, %v4559_v55  ;;  %v4635_v9 = vsel %vm11138_vm2, %v13689_v48, %v4633_v52  ;;  %v4668_v40 = vshrl.u32 %v13691_v39, 16  ;;  %v13692_v51 = vshrl.u32 %v13680_v1, 16 }
 0x1b9   : > { %v4643_v10 = vsel %vm11138_vm2, %v4636_v60, %v13690_v27  ;;  %v13694_v29 = vshll.u32 %v13693_v14, 16  ;;  %v13696_v6 = vshrl.u32 %v13695_v12, 16  ;;  %v4689_v57 = vshll.u32 %v11807_v13, 16 }
 0x1ba   : > { %v4659_v46 = vsel %vm11138_vm2, %v13692_v51, %v4657_v19  ;;  %v6639_v32 = vrot.slane %v4505_v5, %v9127_v8  ;;  %v4667_v63 = vsel %vm11138_vm2, %v4660_v62, %v4665_v21  ;;  %v13697_v54 = vshll.u32 %v13695_v12, 16 }
 0x1bb   : > { %v4683_v61 = vsel %vm11138_vm2, %v13696_v6, %v13694_v29  ;;  %v6653_v11 = vrot.slane %v4513_v56, %v9127_v8  ;;  %v6667_v52 = vrot.slane %v4521_v45, %v9127_v8  ;;  %v13698_v60 = vshrl.u32 %v13693_v14, 16 }
 0x1bc   : > { %v4675_v55 = vsel %vm11138_vm2, %v4668_v40, %v13697_v54  ;;  %v6646_v25 = vrot.slane %v6639_v32, %v9127_v8  ;;  %v6681_v5 = vrot.slane %v4529_v0, %v9127_v8  ;;  %v6695_v53 = vrot.slane %v4537_v35, %v9127_v8 }
 0x1bd   : > { %v4691_v1 = vsel %vm11138_vm2, %v13698_v60, %v4689_v57  ;;  %v6660_v4 = vrot.slane %v6653_v11, %v9127_v8  ;;  %v6674_v30 = vrot.slane %v6667_v52, %v9127_v8  ;;  %v6709_v22 = vrot.slane %v4545_v7, %v9127_v8 }
 0x1be   : > { %v6723_v56 = vrot.slane %v4553_v2, %v9127_v8  ;;  %v6688_v45 = vrot.slane %v6681_v5, %v9127_v8  ;;  %v6702_v44 = vrot.slane %v6695_v53, %v9127_v8  ;;  %v6737_v19 = vrot.slane %v4561_v3, %v9127_v8 }
 0x1bf   : > { %v6751_v62 = vrot.slane %v4635_v9, %v9127_v8  ;;  %v6716_v0 = vrot.slane %v6709_v22, %v9127_v8  ;;  %v6765_v17 = vrot.slane %v4643_v10, %v9127_v8  ;;  %v6779_v48 = vrot.slane %v4651_v38, %v9127_v8 }
 0x1c0   : > { %v6730_v35 = vrot.slane %v6723_v56, %v9127_v8  ;;  %v6744_v7 = vrot.slane %v6737_v19, %v9127_v8  ;;  %v6793_v27 = vrot.slane %v4659_v46, %v9127_v8  ;;  %v6807_v39 = vrot.slane %v4667_v63, %v9127_v8  ;;  %v8575_v19 = vld.sshfl [vmem:[%s9132_s7 + $0xb0] sm:$0x1 pattern:$0x75316420] }
 0x1c1   : > { %v6758_v2 = vrot.slane %v6751_v62, %v9127_v8  ;;  %v6772_v3 = vrot.slane %v6765_v17, %v9127_v8  ;;  %v6786_v9 = vrot.slane %v6779_v48, %v9127_v8  ;;  %v6821_v21 = vrot.slane %v4675_v55, %v9127_v8 }
 0x1c2   : > { %v6835_v40 = vrot.slane %v4683_v61, %v9127_v8  ;;  %v6800_v10 = vrot.slane %v6793_v27, %v9127_v8  ;;  %v6814_v38 = vrot.slane %v6807_v39, %v9127_v8  ;;  %v6849_v51 = vrot.slane %v4691_v1, %v9127_v8 }
 0x1c3   : > { %v7113_v14 = vunpack.c.l.b16 %v6646_v25  ;;  %v6828_v29 = vrot.slane %v6821_v21, %v9127_v8  ;;  %v7114_v12 = vunpack.c.l.b16 %v6660_v4  ;;  %v7115_v6 = vunpack.c.l.b16 %v6674_v30  ;;  %v8573_v30 = vld.sshfl [vmem:[%s9132_s7 + $0x98] sm:$0x1 pattern:$0x75316420] }
 0x1c4   : > { %v6842_v46 = vrot.slane %v6835_v40, %v9127_v8  ;;  %v6856_v57 = vrot.slane %v6849_v51, %v9127_v8  ;;  %v7116_v32 = vunpack.c.l.b16 %v6688_v45  ;;  %v7117_v63 = vunpack.c.l.b16 %v6702_v44 }
 0x1c5   : > { %v7118_v61 = vunpack.c.l.b16 %v6716_v0  ;;  %v7119_v54 = vunpack.c.l.b16 %v6730_v35  ;;  %v7120_v55 = vunpack.c.l.b16 %v6744_v7  ;;  %v7121_v11 = vunpack.c.l.b16 %v6758_v2 }
 0x1c6   : > { %v7122_v52 = vunpack.c.l.b16 %v6772_v3  ;;  %v7123_v60 = vunpack.c.l.b16 %v6786_v9  ;;  %v7124_v1 = vunpack.c.l.b16 %v6800_v10  ;;  %v7125_v25 = vunpack.c.l.b16 %v6814_v38 }
 0x1c7   : > { %v7126_v5 = vunpack.c.l.b16 %v6828_v29  ;;  %v7127_v53 = vunpack.c.l.b16 %v6842_v46  ;;  %v7128_v22 = vunpack.c.l.b16 %v6856_v57  ;;  %v7201_v56 = vrot.slane %v7114_v12, 7 }
 0x1c8   : > { %v7203_v4 = vrot.slane %v7115_v6, 6  ;;  %v7205_v62 = vrot.slane %v7116_v32, 5  ;;  %v7207_v17 = vrot.slane %v7117_v63, 4  ;;  %v7209_v45 = vrot.slane %v7118_v61, 3 }
 0x1c9   : > { %v7211_v48 = vrot.slane %v7119_v54, 2  ;;  %v7202_v44 = vsel %vm13699_vm14, %v7201_v56, %v7113_v14  ;;  %v7213_v0 = vrot.slane %v7120_v55, 1  ;;  %v7215_v35 = vrot.slane %v7122_v52, 7  ;;  %v13705_v56 = vld [vmem:[#allocation193_spill] sm:$0xff]  ;;  %vm13721_vm14 = vmmov %vm13703_vm0 }
 0x1ca   : > { %v7217_v7 = vrot.slane %v7123_v60, 6  ;;  %v7204_v2 = vsel %vm13700_vm15, %v7203_v4, %v7202_v44  ;;  %v7219_v27 = vrot.slane %v7124_v1, 5  ;;  %v7221_v39 = vrot.slane %v7125_v25, 4  ;;  %v13707_v44 = vld [vmem:[#allocation195_spill] sm:$0xff]  ;;  %vm13723_vm15 = vmmov %vm13704_vm1 }
 0x1cb   : > { %v7223_v3 = vrot.slane %v7126_v5, 3  ;;  %v7206_v9 = vsel %vm13701_vm9, %v7205_v62, %v7204_v2  ;;  %v7216_v21 = vsel %vm13702_vm10, %v7215_v35, %v7121_v11  ;;  %v7225_v40 = vrot.slane %v7127_v53, 2  ;;  %v13706_v62 = vld [vmem:[#allocation194_spill] sm:$0xff]  ;;  %v13709_v2 = vld [vmem:[#allocation203_spill] sm:$0xff]  ;;  %vm13731_vm9 = vmmov %vm13708_vm3 }
 0x1cc   : > { %v7227_v10 = vrot.slane %v7128_v22, 1  ;;  %v7208_v38 = vsel %vm2063_vm4, %v7207_v17, %v7206_v9  ;;  %v7218_v51 = vsel %vm13703_vm0, %v7217_v7, %v7216_v21  ;;  %v11948_v14 = vrot.slane %v8573_v30, %v9127_v8  ;;  %vm13740_vm10 = vmmov %vm13717_vm8 }
 0x1cd   : > { %v11951_v29 = vrot.slane %v8575_v19, %v9127_v8  ;;  %v7210_v46 = vsel %vm2066_vm5, %v7209_v45, %v7208_v38  ;;  %v7220_v12 = vsel %vm13704_vm1, %v7219_v27, %v7218_v51  ;;  %v4693_v6 = vshrl.u32 %v10722_v47, 16  ;;  %vm13741_vm1 = vmmov %vm13717_vm8 }
 0x1ce   : > { %v4698_v57 = vshll.u32 %v10746_v20, 16  ;;  %v7212_v32 = vsel %vm2069_vm6, %v7211_v48, %v7210_v46  ;;  %v7222_v63 = vsel %vm2063_vm4, %v7221_v39, %v7220_v12  ;;  %v4701_v61 = vshrl.u32 %v10746_v20, 16  ;;  %v13712_v46 = vld [vmem:[#allocation207_spill] sm:$0xff] }
 0x1cf   : > { %v4706_v54 = vshll.u32 %v10750_v58, 16  ;;  %v7214_v55 = vsel %vm2072_vm7, %v7213_v0, %v7212_v32  ;;  %v7224_v11 = vsel %vm2066_vm5, %v7223_v3, %v7222_v63  ;;  %v4709_v60 = vshrl.u32 %v10750_v58, 16  ;;  %v13710_v3 = vld [vmem:[#allocation204_spill] sm:$0xff]  ;;  %v13713_v63 = vld [vmem:[#allocation206_spill] sm:$0xff] }
 0x1d0   : > { %v4700_v52 = vsel %vm11138_vm2, %v4693_v6, %v4698_v57  ;;  %v7226_v47 = vsel %vm2069_vm6, %v7225_v40, %v7224_v11  ;;  %v4714_v25 = vshll.u32 %v10798_v59, 16  ;;  %v4717_v20 = vshrl.u32 %v10798_v59, 16  ;;  %v13711_v40 = vld [vmem:[#allocation205_spill] sm:$0xff]  ;;  %v13714_v11 = vld [vmem:[#allocation208_spill] sm:$0xff] }
 0x1d1   : > { %v4708_v1 = vsel %vm11138_vm2, %v4701_v61, %v4706_v54  ;;  %v7228_v5 = vsel %vm2072_vm7, %v7227_v10, %v7226_v47  ;;  %v4722_v53 = vshll.u32 %v10811_v15, 16  ;;  %v4725_v22 = vshrl.u32 %v10811_v15, 16 }
 0x1d2   : > { %v4730_v4 = vshll.u32 %v13705_v56, 16  ;;  %v7259_v30 = vpack.c.b16 %v7228_v5, %v7214_v55  ;;  %v4716_v58 = vsel %vm11138_vm2, %v4709_v60, %v4714_v25  ;;  %v4733_v19 = vshrl.u32 %v13705_v56, 16  ;;  %v13715_v25 = vld [vmem:[#allocation209_spill] sm:$0xff] }
 0x1d3   : > { %v4738_v17 = vshll.u32 %v13706_v62, 16  ;;  %v4724_v45 = vsel %vm11138_vm2, %v4717_v20, %v4722_v53  ;;  %v4741_v48 = vshrl.u32 %v13706_v62, 16  ;;  %v4746_v15 = vshll.u32 %v13707_v44, 16 }
 0x1d4   : > { %v4732_v59 = vsel %vm11138_vm2, %v4725_v22, %v4730_v4  ;;  %8842 = vmatprep.mubr.msk.bf16.mxu0 %vm13708_vm3, %v7259_v30  ;;  %v4749_v35 = vshrl.u32 %v13707_v44, 16  ;;  %v4754_v7 = vshll.u32 %v11948_v14, 16  ;;  %v4823_v27 = vshrl.u32 %v13709_v2, 16  ;;  %v13716_v22 = vld [vmem:[#allocation211_spill] sm:$0xff]  ;;  %vm13742_vm3 = vmmov %vm13719_vm12 }
 0x1d5   : > { %v4740_v0 = vsel %vm11138_vm2, %v4733_v19, %v4738_v17  ;;  %v4748_v39 = vsel %vm11138_vm2, %v4741_v48, %v4746_v15  ;;  %v4828_v9 = vshll.u32 %v13710_v3, 16  ;;  %v4831_v21 = vshrl.u32 %v13710_v3, 16 }
 0x1d6   : > { %v4836_v10 = vshll.u32 %v13711_v40, 16  ;;  %v4756_v38 = vsel %vm11138_vm2, %v4749_v35, %v4754_v7  ;;  %v4839_v51 = vshrl.u32 %v13711_v40, 16  ;;  %v4844_v12 = vshll.u32 %v13712_v46, 16 }
 0x1d7   : > { %v4847_v6 = vshrl.u32 %v13712_v46, 16  ;;  %v4830_v57 = vsel %vm11138_vm2, %v4823_v27, %v4828_v9  ;;  %v4852_v61 = vshll.u32 %v13713_v63, 16  ;;  %v4855_v54 = vshrl.u32 %v13713_v63, 16 }
 0x1d8   : > { %v4838_v32 = vsel %vm11138_vm2, %v4831_v21, %v4836_v10  ;;  %v4846_v55 = vsel %vm11138_vm2, %v4839_v51, %v4844_v12  ;;  %v4860_v60 = vshll.u32 %v13714_v11, 16  ;;  %v4863_v47 = vshrl.u32 %v13714_v11, 16 }
 0x1d9   : > { %v4868_v20 = vshll.u32 %v13715_v25, 16  ;;  %v4854_v5 = vsel %vm11138_vm2, %v4847_v6, %v4852_v61  ;;  %v4871_v53 = vshrl.u32 %v13715_v25, 16  ;;  %v4876_v56 = vshll.u32 %v13716_v22, 16 }
 0x1da   : > { %v4879_v4 = vshrl.u32 %v13716_v22, 16  ;;  %v4862_v30 = vsel %vm11138_vm2, %v4855_v54, %v4860_v60  ;;  %v4884_v62 = vshll.u32 %v11951_v29, 16  ;;  %v5697_v17 = vrot.slane %v4700_v52, %v9127_v8 }
 0x1db   : > { %v4870_v19 = vsel %vm11138_vm2, %v4863_v47, %v4868_v20  ;;  %v4878_v48 = vsel %vm11138_vm2, %v4871_v53, %v4876_v56  ;;  %v5711_v44 = vrot.slane %v4708_v1, %v9127_v8  ;;  %v5725_v15 = vrot.slane %v4716_v58, %v9127_v8 }
 0x1dc   : > { %v5739_v35 = vrot.slane %v4724_v45, %v9127_v8  ;;  %v4886_v7 = vsel %vm11138_vm2, %v4879_v4, %v4884_v62  ;;  %v5704_v2 = vrot.slane %v5697_v17, %v9127_v8  ;;  %v5753_v27 = vrot.slane %v4732_v59, %v9127_v8 }
 0x1dd   : > { %v5767_v3 = vrot.slane %v4740_v0, %v9127_v8  ;;  %v5718_v52 = vrot.slane %v5711_v44, %v9127_v8  ;;  %v5732_v9 = vrot.slane %v5725_v15, %v9127_v8  ;;  %v5781_v1 = vrot.slane %v4748_v39, %v9127_v8 }
 0x1de   : > { %v5746_v21 = vrot.slane %v5739_v35, %v9127_v8  ;;  %v5760_v58 = vrot.slane %v5753_v27, %v9127_v8  ;;  %v5795_v40 = vrot.slane %v4756_v38, %v9127_v8  ;;  %v5809_v10 = vrot.slane %v4830_v57, %v9127_v8 }
 0x1df   : > { %v5774_v45 = vrot.slane %v5767_v3, %v9127_v8  ;;  %v5788_v59 = vrot.slane %v5781_v1, %v9127_v8  ;;  %v5823_v0 = vrot.slane %v4838_v32, %v9127_v8  ;;  %v5837_v51 = vrot.slane %v4846_v55, %v9127_v8 }
 0x1e0   : > { %v5851_v46 = vrot.slane %v4854_v5, %v9127_v8  ;;  %v5802_v12 = vrot.slane %v5795_v40, %v9127_v8  ;;  %v5816_v39 = vrot.slane %v5809_v10, %v9127_v8  ;;  %v5865_v6 = vrot.slane %v4862_v30, %v9127_v8 }
 0x1e1   : > { %v5879_v63 = vrot.slane %v4870_v19, %v9127_v8  ;;  %v5830_v38 = vrot.slane %v5823_v0, %v9127_v8  ;;  %v5844_v57 = vrot.slane %v5837_v51, %v9127_v8  ;;  %v5893_v32 = vrot.slane %v4878_v48, %v9127_v8 }
 0x1e2   : > { %v5858_v61 = vrot.slane %v5851_v46, %v9127_v8  ;;  %v5872_v54 = vrot.slane %v5865_v6, %v9127_v8  ;;  %v5907_v11 = vrot.slane %v4886_v7, %v9127_v8  ;;  %v5963_v60 = vunpack.c.l.b16 %v5704_v2  ;;  %v8574_v7 = vld.sshfl [vmem:[%s9132_s7 + $0xa4] sm:$0x1 pattern:$0x75316420] }
 0x1e3   : > { %v5886_v55 = vrot.slane %v5879_v63, %v9127_v8  ;;  %v5900_v47 = vrot.slane %v5893_v32, %v9127_v8  ;;  %v5964_v25 = vunpack.c.l.b16 %v5718_v52  ;;  %v5965_v20 = vunpack.c.l.b16 %v5732_v9  ;;  %v8576_v9 = vld.sshfl [vmem:[%s9132_s7 + $0xbc] sm:$0x1 pattern:$0x75316420] }
 0x1e4   : > { %v5966_v5 = vunpack.c.l.b16 %v5746_v21  ;;  %v5914_v53 = vrot.slane %v5907_v11, %v9127_v8  ;;  %v5967_v22 = vunpack.c.l.b16 %v5760_v58  ;;  %v5968_v56 = vunpack.c.l.b16 %v5774_v45 }
 0x1e5   : > { %v5969_v4 = vunpack.c.l.b16 %v5788_v59  ;;  %v5970_v30 = vunpack.c.l.b16 %v5802_v12  ;;  %v5971_v19 = vunpack.c.l.b16 %v5816_v39  ;;  %v5972_v62 = vunpack.c.l.b16 %v5830_v38 }
 0x1e6   : > { %v5973_v17 = vunpack.c.l.b16 %v5844_v57  ;;  %v5974_v48 = vunpack.c.l.b16 %v5858_v61  ;;  %v5975_v44 = vunpack.c.l.b16 %v5872_v54  ;;  %v5976_v15 = vunpack.c.l.b16 %v5886_v55  ;;  %v13722_v55 = vld [vmem:[#allocation94_spill] sm:$0xff] }
 0x1e7   : > { %v5977_v35 = vunpack.c.l.b16 %v5900_v47  ;;  %v5978_v2 = vunpack.c.l.b16 %v5914_v53  ;;  %v6063_v27 = vrot.slane %v5964_v25, 7  ;;  %v6065_v3 = vrot.slane %v5965_v20, 6  ;;  %v13724_v25 = vld [vmem:[#allocation97_spill] sm:$0xff] }
 0x1e8   : > { %v6067_v52 = vrot.slane %v5966_v5, 5  ;;  %v6069_v21 = vrot.slane %v5967_v22, 4  ;;  %v6071_v1 = vrot.slane %v5968_v56, 3  ;;  %v6073_v58 = vrot.slane %v5969_v4, 2  ;;  %v13725_v56 = vld [vmem:[#allocation98_spill] sm:$0xff] }
 0x1e9   : > { %v6075_v40 = vrot.slane %v5970_v30, 1  ;;  %v6064_v45 = vsel %vm13717_vm8, %v6063_v27, %v5963_v60  ;;  %v6077_v10 = vrot.slane %v5972_v62, 7  ;;  %v6079_v59 = vrot.slane %v5973_v17, 6  ;;  %vm13743_vm8 = vmmov %vm13703_vm0 }
 0x1ea   : > { %v6081_v0 = vrot.slane %v5974_v48, 5  ;;  %v6066_v51 = vsel %vm13718_vm11, %v6065_v3, %v6064_v45  ;;  %v6083_v46 = vrot.slane %v5975_v44, 4  ;;  %v6085_v12 = vrot.slane %v5976_v15, 3  ;;  %v13726_v48 = vld [vmem:[#allocation105_spill] sm:$0xff]  ;;  %vm13744_vm11 = vmmov %vm13742_vm3 }
 0x1eb   : > { %v6087_v39 = vrot.slane %v5977_v35, 2  ;;  %v6068_v6 = vsel %vm13719_vm12, %v6067_v52, %v6066_v51  ;;  %v6078_v63 = vsel %vm13720_vm13, %v6077_v10, %v5971_v19  ;;  %v6089_v38 = vrot.slane %v5978_v2, 1  ;;  %v13727_v2 = vld [vmem:[#allocation95_spill] sm:$0xff]  ;;  %v13729_v10 = vld [vmem:[#allocation101_spill] sm:$0xff]  ;;  %vm13747_vm12 = vmmov %vm13731_vm9 }
 0x1ec   : > { %v12065_v57 = vrot.slane %v8574_v7, %v9127_v8  ;;  %v6070_v61 = vsel %vm2063_vm4, %v6069_v21, %v6068_v6  ;;  %v6080_v32 = vsel %vm13721_vm14, %v6079_v59, %v6078_v63  ;;  %v12070_v54 = vrot.slane %v8576_v9, %v9127_v8  ;;  %v13728_v21 = vld [vmem:[#allocation99_spill] sm:$0xff]  ;;  %vm13752_vm13 = vmmov %vm13731_vm9 }
 0x1ed   : > { %v4758_v11 = vshrl.u32 %v13722_v55, 16  ;;  %v6072_v60 = vsel %vm2066_vm5, %v6071_v1, %v6070_v61  ;;  %v6082_v47 = vsel %vm13723_vm15, %v6081_v0, %v6080_v32  ;;  %v4763_v20 = vshll.u32 %v13724_v25, 16  ;;  %v13733_v32 = vld [vmem:[#allocation102_spill] sm:$0xff]  ;;  %vm13755_vm14 = vmmov %vm13741_vm1 }
 0x1ee   : > { %v4766_v5 = vshrl.u32 %v13724_v25, 16  ;;  %v6074_v53 = vsel %vm2069_vm6, %v6073_v58, %v6072_v60  ;;  %v6084_v22 = vsel %vm2063_vm4, %v6083_v46, %v6082_v47  ;;  %v4771_v4 = vshll.u32 %v13725_v56, 16  ;;  %v13730_v46 = vld [vmem:[#allocation106_spill] sm:$0xff]  ;;  %v13734_v47 = vld [vmem:[#allocation103_spill] sm:$0xff]  ;;  %vm13758_vm15 = vmmov %vm13703_vm0 }
 0x1ef   : > { %v4774_v30 = vshrl.u32 %v13725_v56, 16  ;;  %v12082_v19 = vsel %vm2072_vm7, %v6075_v40, %v6074_v53  ;;  %v6086_v62 = vsel %vm2066_vm5, %v6085_v12, %v6084_v22  ;;  %v4765_v17 = vsel %vm11138_vm2, %v4758_v11, %v4763_v20  ;;  %v13735_v22 = vld [vmem:[#allocation108_spill] sm:$0xff] }
 0x1f0   : > { %v4779_v44 = vshll.u32 %v13726_v48, 16  ;;  %v6088_v15 = vsel %vm2069_vm6, %v6087_v39, %v6086_v62  ;;  %v4773_v35 = vsel %vm11138_vm2, %v4766_v5, %v4771_v4  ;;  %v4782_v7 = vshrl.u32 %v13726_v48, 16  ;;  %v13736_v62 = vld [vmem:[#allocation100_spill] sm:$0xff] }
 0x1f1   : > { %v4787_v27 = vshll.u32 %v13727_v2, 16  ;;  %v12094_v3 = vsel %vm2072_vm7, %v6089_v38, %v6088_v15  ;;  %v4790_v9 = vshrl.u32 %v13727_v2, 16  ;;  %v4795_v1 = vshll.u32 %v13728_v21, 16  ;;  %v13732_v38 = vld [vmem:[#allocation96_spill] sm:$0xff] }
 0x1f2   : > { %v4781_v52 = vsel %vm11138_vm2, %v4774_v30, %v4779_v44  ;;  %v6094_v58 = vpack.c.b16 %v12094_v3, %v12082_v19  ;;  %v4798_v45 = vshrl.u32 %v13728_v21, 16  ;;  %v4803_v59 = vshll.u32 %v13729_v10, 16  ;;  %v13737_v15 = vld [vmem:[#allocation104_spill] sm:$0xff] }
 0x1f3   : > { %v4789_v40 = vsel %vm11138_vm2, %v4782_v7, %v4787_v27  ;;  %v4797_v0 = vsel %vm11138_vm2, %v4790_v9, %v4795_v1  ;;  %v4806_v51 = vshrl.u32 %v13729_v10, 16  ;;  %v4811_v12 = vshll.u32 %v13730_v46, 16  ;;  %v13738_v9 = vld [vmem:[#allocation107_spill] sm:$0xff]  ;;  %v13739_v10 = vld [vmem:[#allocation109_spill] sm:$0xff] }
 0x1f4   : > { %v4814_v39 = vshrl.u32 %v13730_v46, 16  ;;  %8833 = vmatmul.mubr.msk.bf16.gmra.mxu1 %vm13731_vm9, %v6094_v58  ;;  %v4805_v6 = vsel %vm11138_vm2, %v4798_v45, %v4803_v59  ;;  %v4819_v63 = vshll.u32 %v12065_v57, 16  ;;  %v4888_v61 = vshrl.u32 %v13732_v38, 16  ;;  %vm13759_vm9 = vmmov %vm13742_vm3 }
 0x1f5   : > { %v4893_v55 = vshll.u32 %v13733_v32, 16  ;;  %v4813_v11 = vsel %vm11138_vm2, %v4806_v51, %v4811_v12  ;;  %v4896_v60 = vshrl.u32 %v13733_v32, 16  ;;  %v4901_v25 = vshll.u32 %v13734_v47, 16 }
 0x1f6   : > { %v4904_v20 = vshrl.u32 %v13734_v47, 16  ;;  %v4821_v5 = vsel %vm11138_vm2, %v4814_v39, %v4819_v63  ;;  %v4909_v56 = vshll.u32 %v13735_v22, 16  ;;  %v4912_v4 = vshrl.u32 %v13735_v22, 16 }
 0x1f7   : > { %v4895_v53 = vsel %vm11138_vm2, %v4888_v61, %v4893_v55  ;;  %v4903_v30 = vsel %vm11138_vm2, %v4896_v60, %v4901_v25  ;;  %v4917_v48 = vshll.u32 %v13736_v62, 16  ;;  %v4920_v44 = vshrl.u32 %v13736_v62, 16 }
 0x1f8   : > { %v4925_v7 = vshll.u32 %v13737_v15, 16  ;;  %v4911_v2 = vsel %vm11138_vm2, %v4904_v20, %v4909_v56  ;;  %v4928_v27 = vshrl.u32 %v13737_v15, 16  ;;  %v4933_v21 = vshll.u32 %v13738_v9, 16 }
 0x1f9   : > { %v4936_v1 = vshrl.u32 %v13738_v9, 16  ;;  %v4919_v58 = vsel %vm11138_vm2, %v4912_v4, %v4917_v48  ;;  %v4941_v59 = vshll.u32 %v13739_v10, 16  ;;  %v4944_v51 = vshrl.u32 %v13739_v10, 16 }
 0x1fa   : > { %v4927_v45 = vsel %vm11138_vm2, %v4920_v44, %v4925_v7  ;;  %v4935_v46 = vsel %vm11138_vm2, %v4928_v27, %v4933_v21  ;;  %v4949_v12 = vshll.u32 %v12070_v54, 16  ;;  %v6863_v39 = vrot.slane %v4765_v17, %v9127_v8 }
 0x1fb   : > { %v6877_v63 = vrot.slane %v4773_v35, %v9127_v8  ;;  %v4943_v38 = vsel %vm11138_vm2, %v4936_v1, %v4941_v59  ;;  %v6891_v61 = vrot.slane %v4781_v52, %v9127_v8  ;;  %v6905_v32 = vrot.slane %v4789_v40, %v9127_v8 }
 0x1fc   : > { %v6919_v55 = vrot.slane %v4797_v0, %v9127_v8  ;;  %v4951_v60 = vsel %vm11138_vm2, %v4944_v51, %v4949_v12  ;;  %v6870_v47 = vrot.slane %v6863_v39, %v9127_v8  ;;  %v6933_v17 = vrot.slane %v4805_v6, %v9127_v8 }
 0x1fd   : > { %v6884_v25 = vrot.slane %v6877_v63, %v9127_v8  ;;  %v6898_v35 = vrot.slane %v6891_v61, %v9127_v8  ;;  %v6912_v20 = vrot.slane %v6905_v32, %v9127_v8  ;;  %v6947_v52 = vrot.slane %v4813_v11, %v9127_v8 }
 0x1fe   : > { %v6926_v22 = vrot.slane %v6919_v55, %v9127_v8  ;;  %v6940_v40 = vrot.slane %v6933_v17, %v9127_v8  ;;  %v6961_v0 = vrot.slane %v4821_v5, %v9127_v8  ;;  %v6975_v56 = vrot.slane %v4895_v53, %v9127_v8 }
 0x1ff   : > { %v6989_v4 = vrot.slane %v4903_v30, %v9127_v8  ;;  %v6954_v62 = vrot.slane %v6947_v52, %v9127_v8  ;;  %v7003_v6 = vrot.slane %v4911_v2, %v9127_v8  ;;  %v7017_v48 = vrot.slane %v4919_v58, %v9127_v8 }
 0x200   : > { %v7031_v44 = vrot.slane %v4927_v45, %v9127_v8  ;;  %v6968_v15 = vrot.slane %v6961_v0, %v9127_v8  ;;  %v6982_v11 = vrot.slane %v6975_v56, %v9127_v8  ;;  %v7045_v5 = vrot.slane %v4935_v46, %v9127_v8 }
 0x201   : > { %v6996_v7 = vrot.slane %v6989_v4, %v9127_v8  ;;  %v7010_v53 = vrot.slane %v7003_v6, %v9127_v8  ;;  %v7024_v30 = vrot.slane %v7017_v48, %v9127_v8  ;;  %v7059_v2 = vrot.slane %v4943_v38, %v9127_v8 }
 0x202   : > { %v7038_v27 = vrot.slane %v7031_v44, %v9127_v8  ;;  %v7052_v9 = vrot.slane %v7045_v5, %v9127_v8  ;;  %v7073_v21 = vrot.slane %v4951_v60, %v9127_v8  ;;  %v7129_v1 = vunpack.c.l.b16 %v6870_v47 }
 0x203   : > { %v7130_v58 = vunpack.c.l.b16 %v6884_v25  ;;  %v7066_v45 = vrot.slane %v7059_v2, %v9127_v8  ;;  %v7131_v10 = vunpack.c.l.b16 %v6898_v35  ;;  %v7132_v59 = vunpack.c.l.b16 %v6912_v20 }
 0x204   : > { %v7133_v51 = vunpack.c.l.b16 %v6926_v22  ;;  %v7080_v46 = vrot.slane %v7073_v21, %v9127_v8  ;;  %v7134_v12 = vunpack.c.l.b16 %v6940_v40  ;;  %v7135_v39 = vunpack.c.l.b16 %v6954_v62 }
 0x205   : > { %v7136_v63 = vunpack.c.l.b16 %v6968_v15  ;;  %v7137_v61 = vunpack.c.l.b16 %v6982_v11  ;;  %v7138_v32 = vunpack.c.l.b16 %v6996_v7  ;;  %v7139_v55 = vunpack.c.l.b16 %v7010_v53 }
 0x206   : > { %v7140_v38 = vunpack.c.l.b16 %v7024_v30  ;;  %v7141_v17 = vunpack.c.l.b16 %v7038_v27  ;;  %v7142_v52 = vunpack.c.l.b16 %v7052_v9  ;;  %v7143_v0 = vunpack.c.l.b16 %v7066_v45  ;;  %v13746_v45 = vld [vmem:[#allocation234_spill] sm:$0xff] }
 0x207   : > { %v7144_v60 = vunpack.c.l.b16 %v7080_v46  ;;  %v7229_v47 = vrot.slane %v7130_v58, 7  ;;  %v7231_v25 = vrot.slane %v7131_v10, 6  ;;  %v7233_v56 = vrot.slane %v7132_v59, 5  ;;  %v13748_v46 = vld [vmem:[#allocation139_spill] sm:$0xff] }
 0x208   : > { %v7235_v4 = vrot.slane %v7133_v51, 4  ;;  %v7237_v35 = vrot.slane %v7134_v12, 3  ;;  %v7239_v20 = vrot.slane %v7135_v39, 2  ;;  %v7241_v22 = vrot.slane %v7136_v63, 1 }
 0x209   : > { %v7243_v6 = vrot.slane %v7138_v32, 7  ;;  %v7230_v40 = vsel %vm13740_vm10, %v7229_v47, %v7129_v1  ;;  %v7245_v62 = vrot.slane %v7139_v55, 6  ;;  %v7247_v48 = vrot.slane %v7140_v38, 5  ;;  %v13745_v1 = vld [vmem:[#allocation233_spill] sm:$0xff]  ;;  %vm13770_vm10 = vmmov %vm13747_vm12 }
 0x20a   : > { %v7249_v44 = vrot.slane %v7141_v17, 4  ;;  %v7232_v15 = vsel %vm13703_vm0, %v7231_v25, %v7230_v40  ;;  %v7251_v7 = vrot.slane %v7142_v52, 3  ;;  %v7253_v5 = vrot.slane %v7143_v0, 2  ;;  %v13753_v0 = vld [vmem:[#allocation137_spill] sm:$0xff]  ;;  %vm13779_vm0 = vmmov %vm13741_vm1 }
 0x20b   : > { %v7244_v11 = vsel %vm13741_vm1, %v7243_v6, %v7137_v61  ;;  %v7234_v53 = vsel %vm13742_vm3, %v7233_v56, %v7232_v15  ;;  %v7255_v27 = vrot.slane %v7144_v60, 1  ;;  %v7485_v2 = vpack.c.b16 %v11541_v42, %v11274_v36  ;;  %v13750_v36 = vld [vmem:[#allocation140_spill] sm:$0xff]  ;;  %v13756_v25 = vld [vmem:[#allocation141_spill] sm:$0xff]  ;;  %vm13782_vm1 = vmmov %vm13743_vm8 }
 0x20c   : > { %v7246_v30 = vsel %vm13743_vm8, %v7245_v62, %v7244_v11  ;;  %v7236_v9 = vsel %vm2063_vm4, %v7235_v4, %v7234_v53  ;;  %v7585_v58 = vrot.slane %v13745_v1, %v9127_v8  ;;  %v7599_v10 = vrot.slane %v13746_v45, %v9127_v8  ;;  %v13764_v11 = vld [vmem:[#allocation144_spill] sm:$0xff]  ;;  %vm13786_vm8 = vmmov %vm13779_vm0 }
 0x20d   : > { %v7248_v21 = vsel %vm13744_vm11, %v7247_v48, %v7246_v30  ;;  %v7238_v59 = vsel %vm2066_vm5, %v7237_v35, %v7236_v9  ;;  %8848 = vmatprep.mubr.msk.bf16.mxu1 %vm13747_vm12, %v7485_v2  ;;  %v13749_v12 = vunpack.c.l.b16 %v13748_v46  ;;  %v13751_v42 = vunpack.c.l.b16 %v13750_v36  ;;  %v13762_v48 = vld [vmem:[#allocation143_spill] sm:$0xff]  ;;  %v13766_v30 = vld [vmem:[#allocation146_spill] sm:$0xff]  ;;  %v13771_v45 = vld [vmem:[#allocation148_spill] sm:$0xff] }
 0x20e   : > { %v7250_v51 = vsel %vm2063_vm4, %v7249_v44, %v7248_v21  ;;  %v7240_v61 = vsel %vm2069_vm6, %v7239_v20, %v7238_v59  ;;  %v7592_v55 = vrot.slane %v7585_v58, %v9127_v8  ;;  %v7606_v38 = vrot.slane %v7599_v10, %v9127_v8  ;;  %8849 = vmatmul.mubr.msk.bf16.vlgmr.msra.gmra.mxu1 %vm13752_vm13, %v7486_v26  ;;  %v13760_v26 = vld [vmem:[#allocation142_spill] sm:$0xff]  ;;  %v13768_v9 = vld [vmem:[#allocation147_spill] sm:$0xff]  ;;  %vm13790_vm11 = vmmov %vm13779_vm0 }
 0x20f   : > { %v7699_v39 = vrot.slane %v13749_v12, 7  ;;  %v7701_v63 = vrot.slane %v13751_v42, 6  ;;  %v7252_v32 = vsel %vm2066_vm5, %v7251_v7, %v7250_v51  ;;  %v7242_v17 = vsel %vm2072_vm7, %v7241_v22, %v7240_v61  ;;  %v13773_v51 = vld [vmem:[#allocation149_spill] sm:$0xff]  ;;  %vm13792_vm12 = vmmov %vm13782_vm1 }
 0x210   : > { %v7254_v52 = vsel %vm2069_vm6, %v7253_v5, %v7252_v32  ;;  %v13754_v60 = vunpack.c.l.b16 %v13753_v0  ;;  %v13757_v56 = vunpack.c.l.b16 %v13756_v25  ;;  %v7691_v20 = vunpack.c.l.b16 %v7592_v55  ;;  %v13777_v61 = vld [vmem:[#allocation145_spill] sm:$0xff]  ;;  %vm13794_vm13 = vmmov %vm13742_vm3 }
 0x211   : > { %v7256_v35 = vsel %vm2072_vm7, %v7255_v27, %v7254_v52  ;;  %v7692_v6 = vunpack.c.l.b16 %v7606_v38  ;;  %v13761_v22 = vunpack.c.l.b16 %v13760_v26  ;;  %v13763_v44 = vunpack.c.l.b16 %v13762_v48  ;;  %v13780_v38 = vld [vmem:[#allocation151_spill] sm:$0xff] }
 0x212   : > { %v7700_v47 = vsel %vm13755_vm14, %v7699_v39, %v13754_v60  ;;  %v7703_v4 = vrot.slane %v13757_v56, 5  ;;  %v7260_v49 = vpack.c.b16 %v7256_v35, %v7242_v17  ;;  %v13765_v7 = vunpack.c.l.b16 %v13764_v11  ;;  %v13775_v39 = vld [vmem:[#allocation150_spill] sm:$0xff]  ;;  %vm13796_vm14 = vmmov %vm13782_vm1 }
 0x213   : > { %v7702_v40 = vsel %vm13758_vm15, %v7701_v63, %v7700_v47  ;;  %v7705_v62 = vrot.slane %v13761_v22, 4  ;;  %v7707_v15 = vrot.slane %v13763_v44, 3  ;;  %v7711_v53 = vrot.slane %v7691_v20, 1  ;;  %v13783_v20 = vld [vmem:[#allocation164_spill] sm:$0xff]  ;;  %v13791_v44 = vld [vmem:[#allocation175_spill] sm:$0xff] }
 0x214   : > { %v7704_v43 = vsel %vm13759_vm9, %v7703_v4, %v7702_v40  ;;  %v7709_v5 = vrot.slane %v13765_v7, 2  ;;  %v13767_v2 = vunpack.c.l.b16 %v13766_v30  ;;  %v13769_v21 = vunpack.c.l.b16 %v13768_v9  ;;  %8843 = vmatmul.mubr.msk.bf16.gmra.mxu0 %vm13770_vm10, %v7260_v49  ;;  %v13785_v49 = vld [vmem:[#allocation174_spill] sm:$0xff]  ;;  %v13789_v22 = vld [vmem:[#allocation180_spill] sm:$0xff]  ;;  %vm13801_vm9 = vmmov %vm13742_vm3 }
 0x215   : > { %v7706_v58 = vsel %vm2063_vm4, %v7705_v62, %v7704_v43  ;;  %v13772_v10 = vunpack.c.l.b16 %v13771_v45  ;;  %v13774_v46 = vunpack.c.l.b16 %v13773_v51  ;;  %v13776_v36 = vunpack.c.l.b16 %v13775_v39  ;;  %v13793_v7 = vld [vmem:[#allocation176_spill] sm:$0xff]  ;;  %v13800_v51 = vld [vmem:[#allocation182_spill] sm:$0xff]  ;;  %v13803_v39 = vld [vmem:[#allocation179_spill] sm:$0xff] }
 0x216   : > { %v7713_v27 = vrot.slane %v13767_v2, 7  ;;  %v7715_v1 = vrot.slane %v13769_v21, 6  ;;  %v7708_v63 = vsel %vm2066_vm5, %v7707_v15, %v7706_v58  ;;  %v13778_v32 = vunpack.c.l.b16 %v13777_v61 }
 0x217   : > { %v7717_v59 = vrot.slane %v13772_v10, 5  ;;  %v7719_v12 = vrot.slane %v13774_v46, 4  ;;  %v7721_v42 = vrot.slane %v13776_v36, 3  ;;  %v13781_v17 = vunpack.c.l.b16 %v13780_v38  ;;  %v13799_v10 = vld [vmem:[#allocation178_spill] sm:$0xff] }
 0x218   : > { %v7714_v55 = vsel %vm13779_vm0, %v7713_v27, %v13778_v32  ;;  %v7725_v0 = vrot.slane %v7692_v6, 1  ;;  %v7710_v60 = vsel %vm2069_vm6, %v7709_v5, %v7708_v63  ;;  %v7613_v25 = vrot.slane %v11378_v31, %v9127_v8  ;;  %v13787_v6 = vld [vmem:[#allocation165_spill] sm:$0xff]  ;;  %v13804_v63 = vld [vmem:[#allocation183_spill] sm:$0xff]  ;;  %v13805_v32 = vld [vmem:[#allocation184_spill] sm:$0xff] }
 0x219   : > { %v7723_v52 = vrot.slane %v13781_v17, 2  ;;  %v7716_v47 = vsel %vm13782_vm1, %v7715_v1, %v7714_v55  ;;  %v7627_v56 = vrot.slane %v11383_v16, %v9127_v8  ;;  %v7712_v4 = vsel %vm2072_vm7, %v7711_v53, %v7710_v60  ;;  %v13795_v53 = vld [vmem:[#allocation181_spill] sm:$0xff] }
 0x21a   : > { %v7718_v35 = vsel %vm13742_vm3, %v7717_v59, %v7716_v47  ;;  %v13784_v40 = vunpack.c.l.b16 %v13783_v20  ;;  %v13788_v26 = vunpack.c.l.b16 %v13787_v6  ;;  %v7620_v31 = vrot.slane %v7613_v25, %v9127_v8  ;;  %v13798_v1 = vld [vmem:[#allocation177_spill] sm:$0xff]  ;;  %v13808_v25 = vld [vmem:[#allocation167_spill] sm:$0xff]  ;;  %vm13817_vm3 = vmmov %vm13786_vm8 }
 0x21b   : > { %v7720_v48 = vsel %vm2063_vm4, %v7719_v12, %v7718_v35  ;;  %v7634_v16 = vrot.slane %v7627_v56, %v9127_v8  ;;  %vm13797_vm15 = vcmask 1041408   ;;  %v7487_v17 = vpack.c.b16 %v12082_v19, %v11836_v23  ;;  %v13811_v23 = vld [vmem:[#allocation168_spill] sm:$0xff] }
 0x21c   : > { %v7728_v43 = vsel %vm13786_vm8, %v13785_v49, %v13784_v40  ;;  %v7742_v62 = vsel %vm13790_vm11, %v13789_v22, %v13788_v26  ;;  %v7722_v11 = vsel %vm2066_vm5, %v7721_v42, %v7720_v48  ;;  %v8154_v2 = vsel %vm13797_vm15, %v11738_v28, 0  ;;  %vm13802_vm10 = vmmov %vm13797_vm15  ;;  %v13813_v40 = vld [vmem:[#allocation169_spill] sm:$0xff]  ;;  %v13815_v26 = vld [vmem:[#allocation166_spill] sm:$0xff] }
 0x21d   : > { %v7730_v15 = vsel %vm13792_vm12, %v13791_v44, %v7728_v43  ;;  %v7744_v30 = vsel %vm13796_vm14, %v13795_v53, %v7742_v62  ;;  %v7724_v27 = vsel %vm2069_vm6, %v7723_v52, %v7722_v11  ;;  %v7693_v9 = vunpack.c.l.b16 %v7620_v31  ;;  %8867 = vmatpush3.bf16.msra.mxu1 %v8154_v2  ;;  %v13818_v48 = vld [vmem:[#allocation170_spill] sm:$0xff]  ;;  %vm13820_vm8 = vmmov %vm13792_vm12  ;;  %v13821_v11 = vld [vmem:[#allocation171_spill] sm:$0xff] }
 0x21e   : > { %v7732_v5 = vsel %vm13794_vm13, %v13793_v7, %v7730_v15  ;;  %v7694_v21 = vunpack.c.l.b16 %v7634_v16  ;;  %v12277_v45 = vsel %vm2072_vm7, %v7725_v0, %v7724_v27  ;;  %v7746_v46 = vsel %vm13801_vm9, %v13800_v51, %v7744_v30  ;;  %v13807_v0 = vld [vmem:[#allocation185_spill] sm:$0xff]  ;;  %v13823_v53 = vld [vmem:[#allocation172_spill] sm:$0xff]  ;;  %vm13826_vm12 = vmmov %vm13801_vm9 }
 0x21f   : > { %v7734_v58 = vsel %vm2063_vm4, %v13798_v1, %v7732_v5  ;;  %v8277_v28 = vsel %vm13802_vm10, %v11766_v41, 0  ;;  %v7811_v12 = vpack.c.b16 %v12277_v45, %v7712_v4  ;;  %v7739_v42 = vrot.slane %v7693_v9, 1  ;;  %vm13837_vm13 = vmmov %vm13817_vm3 }
 0x220   : > { %v7736_v59 = vsel %vm2066_vm5, %v13799_v10, %v7734_v58  ;;  %v7748_v61 = vsel %vm2063_vm4, %v13804_v63, %v7746_v46  ;;  %v7753_v38 = vrot.slane %v7694_v21, 1  ;;  %v7641_v52 = vrot.slane %v11672_v24, %v9127_v8  ;;  %v13827_v21 = vld [vmem:[#allocation188_spill] sm:$0xff]  ;;  %v13829_v10 = vld [vmem:[#allocation191_spill] sm:$0xff]  ;;  %vm13842_vm14 = vmmov %vm13820_vm8 }
 0x221   : > { %v7738_v36 = vsel %vm2069_vm6, %v13803_v39, %v7736_v59  ;;  %v7750_v55 = vsel %vm2066_vm5, %v13805_v32, %v7748_v61  ;;  %vm13806_vm0 = vcmask 31744   ;;  %v7655_v47 = vrot.slane %v11677_v37, %v9127_v8  ;;  %v8577_v46 = vld.sshfl [vmem:[%s9132_s7 + $0xc8] sm:$0x1 pattern:$0x75316420]  ;;  %v13833_v61 = vld [vmem:[#allocation189_spill] sm:$0xff]  ;;  %vm13843_vm15 = vmmov %vm13801_vm9 }
 0x222   : > { %8858 = vmatprep.mubr.msk.bf16.mxu0 %vm13806_vm0, %v7811_v12  ;;  %v12298_v41 = vsel %vm2072_vm7, %v7739_v42, %v7738_v36  ;;  %v7752_v60 = vsel %vm2069_vm6, %v13807_v0, %v7750_v55  ;;  %v13809_v56 = vunpack.c.l.b16 %v13808_v25  ;;  %vm13810_vm1 = vmmov %vm13806_vm0  ;;  %v7648_v24 = vrot.slane %v7641_v52, %v9127_v8  ;;  %v13831_v36 = vld [vmem:[#allocation186_spill] sm:$0xff] }
 0x223   : > { %v12307_v35 = vsel %vm2072_vm7, %v7753_v38, %v7752_v60  ;;  %8852 = vmatprep.mubr.msk.bf16.mxu1 %vm13810_vm1, %v7487_v17  ;;  %v13812_v19 = vunpack.c.l.b16 %v13811_v23  ;;  %v13814_v49 = vunpack.c.l.b16 %v13813_v40  ;;  %v7662_v6 = vrot.slane %v7655_v47, %v9127_v8  ;;  %vm13825_vm11 = vmmov %vm13806_vm0  ;;  %v13835_v17 = vld [vmem:[#allocation187_spill] sm:$0xff]  ;;  %v13838_v60 = vld [vmem:[#allocation190_spill] sm:$0xff] }
 0x224   : > { %v7755_v4 = vrot.slane %v13809_v56, 7  ;;  %v7812_v37 = vpack.c.b16 %v12307_v35, %v12298_v41  ;;  %v13816_v22 = vunpack.c.l.b16 %v13815_v26  ;;  %v13819_v31 = vunpack.c.l.b16 %v13818_v48  ;;  %v13840_v56 = vld [vmem:[#allocation192_spill] sm:$0xff]  ;;  %vm13852_vm9 = vmmov %vm13806_vm0 }
 0x225   : > { %v7757_v20 = vrot.slane %v13812_v19, 6  ;;  %v7759_v43 = vrot.slane %v13814_v49, 5  ;;  %v7695_v44 = vunpack.c.l.b16 %v7648_v24  ;;  %v13822_v7 = vunpack.c.l.b16 %v13821_v11  ;;  %vm13854_vm10 = vmmov %vm13820_vm8 }
 0x226   : > { %v7756_v62 = vsel %vm13817_vm3, %v7755_v4, %v13816_v22  ;;  %v7761_v16 = vrot.slane %v13819_v31, 4  ;;  %v13824_v30 = vunpack.c.l.b16 %v13823_v53  ;;  %8859 = vmatmul.mubr.msk.bf16.vlgmr.msra.gmra.mxu0 %vm13825_vm11, %v7812_v37  ;;  %v7696_v27 = vunpack.c.l.b16 %v7662_v6  ;;  %v13845_v6 = vld [vmem:[#allocation219_spill] sm:$0xff]  ;;  %v13846_v31 = vld [vmem:[#allocation220_spill] sm:$0xff]  ;;  %vm13857_vm0 = vmmov %vm13826_vm12 }
 0x227   : > { %v7758_v15 = vsel %vm13820_vm8, %v7757_v20, %v7756_v62  ;;  %v7763_v5 = vrot.slane %v13822_v7, 3  ;;  %v13828_v1 = vunpack.c.l.b16 %v13827_v21  ;;  %v13830_v59 = vunpack.c.l.b16 %v13829_v10  ;;  %8877 = vmatpush3.bf16.msra.mxu0 %v8277_v28  ;;  %v13847_v7 = vld [vmem:[#allocation221_spill] sm:$0xff]  ;;  %v13849_v10 = vld [vmem:[#allocation223_spill] sm:$0xff] }
 0x228   : > { %v7765_v2 = vrot.slane %v13824_v30, 2  ;;  %v7760_v9 = vsel %vm13826_vm12, %v7759_v43, %v7758_v15  ;;  %v7767_v39 = vrot.slane %v7695_v44, 1  ;;  %v13832_v42 = vunpack.c.l.b16 %v13831_v36  ;;  %v13844_v43 = vld [vmem:[#allocation218_spill] sm:$0xff]  ;;  %vm13886_vm12 = vmmov %vm13852_vm9 }
 0x229   : > { %v7769_v58 = vrot.slane %v13828_v1, 7  ;;  %v7771_v51 = vrot.slane %v13830_v59, 6  ;;  %v7762_v12 = vsel %vm2063_vm4, %v7761_v16, %v7760_v9  ;;  %v13834_v32 = vunpack.c.l.b16 %v13833_v61  ;;  %v13851_v61 = vld [vmem:[#allocation225_spill] sm:$0xff] }
 0x22a   : > { %v7773_v63 = vrot.slane %v13832_v42, 5  ;;  %v7764_v38 = vsel %vm2066_vm5, %v7763_v5, %v7762_v12  ;;  %v13836_v52 = vunpack.c.l.b16 %v13835_v17  ;;  %v13839_v47 = vunpack.c.l.b16 %v13838_v60 }
 0x22b   : > { %v7775_v55 = vrot.slane %v13834_v32, 4  ;;  %v13841_v28 = vunpack.c.l.b16 %v13840_v56  ;;  %v7766_v24 = vsel %vm2069_vm6, %v7765_v2, %v7764_v38  ;;  %v7781_v19 = vrot.slane %v7696_v27, 1  ;;  %v13848_v27 = vld [vmem:[#allocation222_spill] sm:$0xff] }
 0x22c   : > { %v7770_v0 = vsel %vm13837_vm13, %v7769_v58, %v13836_v52  ;;  %v7777_v25 = vrot.slane %v13839_v47, 3  ;;  %v12351_v20 = vrot.slane %v8577_v46, %v9127_v8  ;;  %v12354_v40 = vsel %vm2072_vm7, %v7767_v39, %v7766_v24  ;;  %v13850_v39 = vld [vmem:[#allocation224_spill] sm:$0xff] }
 0x22d   : > { %v7779_v4 = vrot.slane %v13841_v28, 2  ;;  %v7772_v23 = vsel %vm13842_vm14, %v7771_v51, %v7770_v0  ;;  %v4953_v37 = vshrl.u32 %v13844_v43, 16  ;;  %v4958_v26 = vshll.u32 %v13845_v6, 16  ;;  %vm13890_vm14 = vmmov %vm13857_vm0 }
 0x22e   : > { %v7774_v49 = vsel %vm13843_vm15, %v7773_v63, %v7772_v23  ;;  %v8261_v62 = vpack.c.b16 %v12354_v40, %v12307_v35  ;;  %v4961_v48 = vshrl.u32 %v13845_v6, 16  ;;  %v4966_v16 = vshll.u32 %v13846_v31, 16 }
 0x22f   : > { %v7776_v22 = vsel %vm2063_vm4, %v7775_v55, %v7774_v49  ;;  %v4960_v15 = vsel %vm11138_vm2, %v4953_v37, %v4958_v26  ;;  %v4969_v11 = vshrl.u32 %v13846_v31, 16  ;;  %v4974_v5 = vshll.u32 %v13847_v7, 16 }
 0x230   : > { %v7778_v44 = vsel %vm2066_vm5, %v7777_v25, %v7776_v22  ;;  %v4968_v30 = vsel %vm11138_vm2, %v4961_v48, %v4966_v16  ;;  %v4977_v2 = vshrl.u32 %v13847_v7, 16  ;;  %v4982_v9 = vshll.u32 %v13848_v27, 16 }
 0x231   : > { %v7780_v53 = vsel %vm2069_vm6, %v7779_v4, %v7778_v44  ;;  %v4976_v1 = vsel %vm11138_vm2, %v4969_v11, %v4974_v5  ;;  %v4985_v58 = vshrl.u32 %v13848_v27, 16  ;;  %v4990_v59 = vshll.u32 %v13849_v10, 16 }
 0x232   : > { %v12375_v21 = vsel %vm2072_vm7, %v7781_v19, %v7780_v53  ;;  %v4984_v46 = vsel %vm11138_vm2, %v4977_v2, %v4982_v9  ;;  %v4993_v12 = vshrl.u32 %v13849_v10, 16  ;;  %v4998_v36 = vshll.u32 %v13850_v39, 16 }
 0x233   : > { %v7813_v51 = vpack.c.b16 %v12375_v21, %v12354_v40  ;;  %v4992_v42 = vsel %vm11138_vm2, %v4985_v58, %v4990_v59  ;;  %v5001_v63 = vshrl.u32 %v13850_v39, 16  ;;  %v5006_v32 = vshll.u32 %v13851_v61, 16  ;;  %v13957_v40 = vld [vmem:[#allocation57_spill] sm:$0xff] }
 0x234   : > { %v5009_v55 = vshrl.u32 %v13851_v61, 16  ;;  %v5000_v38 = vsel %vm11138_vm2, %v4993_v12, %v4998_v36  ;;  %v5014_v17 = vshll.u32 %v12351_v20, 16  ;;  %v7357_v52 = vrot.slane %v4960_v15, %v9127_v8  ;;  %v13855_v12 = vld [vmem:[#allocation197_spill] sm:$0xff]  ;;  %v13858_v61 = vld [vmem:[#allocation198_spill] sm:$0xff] }
 0x235   : > { %8862 = vmatprep.mubr.msk.bf16.mxu0 %vm13852_vm9, %v7813_v51  ;;  %v7371_v0 = vrot.slane %v4968_v30, %v9127_v8  ;;  %v5008_v60 = vsel %vm11138_vm2, %v5001_v63, %v5006_v32  ;;  %v7385_v47 = vrot.slane %v4976_v1, %v9127_v8  ;;  %v7399_v25 = vrot.slane %v4984_v46, %v9127_v8 }
 0x236   : > { %v7413_v56 = vrot.slane %v4992_v42, %v9127_v8  ;;  %v5016_v28 = vsel %vm11138_vm2, %v5009_v55, %v5014_v17  ;;  %v7364_v4 = vrot.slane %v7357_v52, %v9127_v8  ;;  %v7427_v23 = vrot.slane %v5000_v38, %v9127_v8  ;;  %vm13853_vm2 = vmmov %vm13817_vm3  ;;  %v13860_v52 = vld [vmem:[#allocation196_spill] sm:$0xff] }
 0x237   : > { %v7378_v24 = vrot.slane %v7371_v0, %v9127_v8  ;;  %v7392_v19 = vrot.slane %v7385_v47, %v9127_v8  ;;  %v7406_v49 = vrot.slane %v7399_v25, %v9127_v8  ;;  %v7441_v37 = vrot.slane %v5008_v60, %v9127_v8  ;;  %vm13862_vm1 = vmmov %vm13853_vm2  ;;  %v13863_v47 = vld [vmem:[#allocation199_spill] sm:$0xff] }
 0x238   : > { %v7420_v43 = vrot.slane %v7413_v56, %v9127_v8  ;;  %v7434_v6 = vrot.slane %v7427_v23, %v9127_v8  ;;  %v7455_v26 = vrot.slane %v5016_v28, %v9127_v8  ;;  %v7463_v34 = vunpack.c.l.b16 %v7364_v4  ;;  %vm13865_vm3 = vmmov %vm13820_vm8  ;;  %v13866_v4 = vld [vmem:[#allocation200_spill] sm:$0xff] }
 0x239   : > { %v7464_v22 = vunpack.c.l.b16 %v7378_v24  ;;  %v7448_v48 = vrot.slane %v7441_v37, %v9127_v8  ;;  %v7465_v31 = vunpack.c.l.b16 %v7392_v19  ;;  %v7466_v16 = vunpack.c.l.b16 %v7406_v49  ;;  %v13868_v19 = vld [vmem:[#allocation201_spill] sm:$0xff]  ;;  %vm13870_vm8 = vmmov %vm13857_vm0 }
 0x23a   : > { %v7467_v44 = vunpack.c.l.b16 %v7420_v43  ;;  %v7462_v15 = vrot.slane %v7455_v26, %v9127_v8  ;;  %v7468_v11 = vunpack.c.l.b16 %v7434_v6  ;;  %v7669_v5 = vrot.slane %v11948_v14, %v9127_v8  ;;  %vm13881_vm11 = vmmov %vm13862_vm1 }
 0x23b   : > { %v7471_v7 = vrot.slane %v7464_v22, 7  ;;  %v7469_v53 = vunpack.c.l.b16 %v7448_v48  ;;  %v7473_v30 = vrot.slane %v7465_v31, 6  ;;  %v7475_v2 = vrot.slane %v7466_v16, 5  ;;  %vm13887_vm13 = vmmov %vm13865_vm3 }
 0x23c   : > { %v7477_v27 = vrot.slane %v7467_v44, 4  ;;  %v7470_v9 = vunpack.c.l.b16 %v7462_v15  ;;  %v7479_v58 = vrot.slane %v7468_v11, 3  ;;  %v7676_v10 = vrot.slane %v7669_v5, %v9127_v8  ;;  %v13873_v15 = vld [vmem:[#allocation212_spill] sm:$0xff]  ;;  %vm13896_vm15 = vmmov %vm13862_vm1 }
 0x23d   : > { %v7472_v1 = vsel %vm13853_vm2, %v7471_v7, %v7463_v34  ;;  %v7481_v51 = vrot.slane %v7469_v53, 2  ;;  %v7683_v46 = vrot.slane %v11951_v29, %v9127_v8  ;;  %v13856_v39 = vunpack.c.l.b16 %v13855_v12  ;;  %v13871_v34 = vld [vmem:[#allocation202_spill] sm:$0xff]  ;;  %v13882_v12 = vld [vmem:[#allocation215_spill] sm:$0xff]  ;;  %vm13898_vm9 = vmmov %vm13865_vm3 }
 0x23e   : > { %v7474_v59 = vsel %vm13854_vm10, %v7473_v30, %v7472_v1  ;;  %v7483_v42 = vrot.slane %v7470_v9, 1  ;;  %v7697_v63 = vunpack.c.l.b16 %v7676_v10  ;;  %v13859_v32 = vunpack.c.l.b16 %v13858_v61  ;;  %v13875_v30 = vld [vmem:[#allocation213_spill] sm:$0xff]  ;;  %v13877_v9 = vld [vmem:[#allocation214_spill] sm:$0xff]  ;;  %vm13902_vm2 = vmmov %vm13862_vm1 }
 0x23f   : > { %v7783_v36 = vrot.slane %v13856_v39, 7  ;;  %v7476_v14 = vsel %vm13857_vm0, %v7475_v2, %v7474_v59  ;;  %v7690_v17 = vrot.slane %v7683_v46, %v9127_v8  ;;  %v13861_v0 = vunpack.c.l.b16 %v13860_v52  ;;  %v13879_v59 = vld [vmem:[#allocation210_spill] sm:$0xff]  ;;  %vm13904_vm10 = vmmov %vm13857_vm0 }
 0x240   : > { %v7785_v55 = vrot.slane %v13859_v32, 6  ;;  %v7478_v38 = vsel %vm2063_vm4, %v7477_v27, %v7476_v14  ;;  %v13864_v29 = vunpack.c.l.b16 %v13863_v47  ;;  %v13867_v24 = vunpack.c.l.b16 %v13866_v4  ;;  %v13884_v14 = vld [vmem:[#allocation216_spill] sm:$0xff]  ;;  %v13888_v32 = vld [vmem:[#allocation217_spill] sm:$0xff]  ;;  %v13892_v47 = vld [vmem:[#allocation127_spill] sm:$0xff] }
 0x241   : > { %v7784_v60 = vsel %vm13862_vm1, %v7783_v36, %v13861_v0  ;;  %v7480_v56 = vsel %vm2066_vm5, %v7479_v58, %v7478_v38  ;;  %v13869_v49 = vunpack.c.l.b16 %v13868_v19  ;;  %v7698_v6 = vunpack.c.l.b16 %v7690_v17  ;;  %v13891_v0 = vld [vmem:[#allocation125_spill] sm:$0xff]  ;;  %vm13907_vm0 = vmmov %vm13865_vm3 }
 0x242   : > { %v7787_v25 = vrot.slane %v13864_v29, 5  ;;  %v7786_v28 = vsel %vm13865_vm3, %v7785_v55, %v7784_v60  ;;  %v7789_v23 = vrot.slane %v13867_v24, 4  ;;  %v7482_v37 = vsel %vm2069_vm6, %v7481_v51, %v7480_v56  ;;  %vm13911_vm1 = vmmov %vm13870_vm8 }
 0x243   : > { %v7791_v43 = vrot.slane %v13869_v49, 3  ;;  %v13872_v22 = vunpack.c.l.b16 %v13871_v34  ;;  %v7484_v31 = vsel %vm2072_vm7, %v7483_v42, %v7482_v37  ;;  %v7795_v44 = vrot.slane %v7697_v63, 1  ;;  %v13899_v49 = vld [vmem:[#allocation22_spill] sm:$0xff]  ;;  %v13901_v37 = vld [vmem:[#allocation29_spill] sm:$0xff]  ;;  %vm13913_vm3 = vmmov %vm13886_vm12 }
 0x244   : > { %v7788_v26 = vsel %vm13870_vm8, %v7787_v25, %v7786_v28  ;;  %v13874_v11 = vunpack.c.l.b16 %v13873_v15  ;;  %v7488_v5 = vpack.c.b16 %v7484_v31, %v12094_v3  ;;  %v13876_v2 = vunpack.c.l.b16 %v13875_v30  ;;  %v13893_v25 = vld [vmem:[#allocation21_spill] sm:$0xff]  ;;  %v13895_v28 = vld [vmem:[#allocation23_spill] sm:$0xff]  ;;  %v13905_v15 = vld [vmem:[#allocation26_spill] sm:$0xff] }
 0x245   : > { %v7793_v48 = vrot.slane %v13872_v22, 2  ;;  %v7790_v16 = vsel %vm2063_vm4, %v7789_v23, %v7788_v26  ;;  %v13878_v1 = vunpack.c.l.b16 %v13877_v9  ;;  %v13880_v51 = vunpack.c.l.b16 %v13879_v59  ;;  %v13897_v23 = vld [vmem:[#allocation24_spill] sm:$0xff]  ;;  %v13903_v31 = vld [vmem:[#allocation25_spill] sm:$0xff]  ;;  %vm13918_vm8 = vmmov %vm13902_vm2 }
 0x246   : > { %v7797_v7 = vrot.slane %v13874_v11, 7  ;;  %v7792_v53 = vsel %vm2066_vm5, %v7791_v43, %v7790_v16  ;;  %v7799_v27 = vrot.slane %v13876_v2, 6  ;;  %v13883_v39 = vunpack.c.l.b16 %v13882_v12  ;;  %8853 = vmatmul.mubr.msk.bf16.gmra.mxu1 %vm13886_vm12, %v7488_v5  ;;  %v13908_v2 = vld [vmem:[#allocation27_spill] sm:$0xff]  ;;  %vm13924_vm12 = vmmov %vm13913_vm3 }
 0x247   : > { %v7801_v58 = vrot.slane %v13878_v1, 5  ;;  %v7794_v10 = vsel %vm2069_vm6, %v7793_v48, %v7792_v53  ;;  %v13885_v42 = vunpack.c.l.b16 %v13884_v14  ;;  %v13889_v55 = vunpack.c.l.b16 %v13888_v32  ;;  %v13909_v1 = vld [vmem:[#allocation28_spill] sm:$0xff]  ;;  %v13914_v14 = vld [vmem:[#allocation33_spill] sm:$0xff] }
 0x248   : > { %v7798_v46 = vsel %vm13881_vm11, %v7797_v7, %v13880_v51  ;;  %v7803_v36 = vrot.slane %v13883_v39, 4  ;;  %v12465_v63 = vsel %vm2072_vm7, %v7795_v44, %v7794_v10  ;;  %v7809_v17 = vrot.slane %v7698_v6, 1  ;;  %v13906_v7 = vld [vmem:[#allocation30_spill] sm:$0xff]  ;;  %v13910_v10 = vld [vmem:[#allocation31_spill] sm:$0xff]  ;;  %vm13922_vm11 = vmmov %vm13902_vm2 }
 0x249   : > { %v7805_v3 = vrot.slane %v13885_v42, 3  ;;  %v7800_v61 = vsel %vm13887_vm13, %v7799_v27, %v7798_v46  ;;  %v7807_v38 = vrot.slane %v13889_v55, 2  ;;  %v7911_v60 = vrot.slane %v13891_v0, %v9127_v8  ;;  %v13912_v46 = vld [vmem:[#allocation32_spill] sm:$0xff]  ;;  %v13917_v55 = vld [vmem:[#allocation83_spill] sm:$0xff]  ;;  %v13921_v0 = vld [vmem:[#allocation89_spill] sm:$0xff] }
 0x24a   : > { %v7802_v52 = vsel %vm13890_vm14, %v7801_v58, %v7800_v61  ;;  %v7925_v29 = vrot.slane %v13892_v47, %v9127_v8  ;;  %v13894_v56 = vunpack.c.l.b16 %v13893_v25  ;;  %v13900_v43 = vunpack.c.l.b16 %v13899_v49  ;;  %v13915_v61 = vld [vmem:[#allocation81_spill] sm:$0xff]  ;;  %vm13926_vm13 = vmmov %vm13907_vm0  ;;  %v13929_v49 = vld [vmem:[#allocation90_spill] sm:$0xff] }
 0x24b   : > { %v7804_v24 = vsel %vm2063_vm4, %v7803_v36, %v7802_v52  ;;  %v8260_v26 = vpack.c.b16 %v12298_v41, %v12277_v45  ;;  %v7918_v22 = vrot.slane %v7911_v60, %v9127_v8  ;;  %v7939_v45 = vrot.slane %v11517_v18, %v9127_v8  ;;  %vm13928_vm14 = vmmov %vm13911_vm1 }
 0x24c   : > { %v8026_v4 = vsel %vm13896_vm15, %v13895_v28, %v13894_v56  ;;  %v8040_v6 = vsel %vm13902_vm2, %v13901_v37, %v13900_v43  ;;  %v7806_v34 = vsel %vm2066_vm5, %v7805_v3, %v7804_v24  ;;  %v7932_v48 = vrot.slane %v7925_v29, %v9127_v8  ;;  %v13923_v29 = vld [vmem:[#allocation43_spill] sm:$0xff]  ;;  %v13925_v56 = vld [vmem:[#allocation84_spill] sm:$0xff]  ;;  %v13927_v24 = vld [vmem:[#allocation85_spill] sm:$0xff] }
 0x24d   : > { %v8028_v19 = vsel %vm13898_vm9, %v13897_v23, %v8026_v4  ;;  %v7808_v44 = vsel %vm2069_vm6, %v7807_v38, %v7806_v34  ;;  %v8042_v5 = vsel %vm13907_vm0, %v13906_v7, %v8040_v6  ;;  %v8017_v53 = vunpack.c.l.b16 %v7918_v22  ;;  %vm13930_vm15 = vmmov %vm13907_vm0  ;;  %v13931_v34 = vld [vmem:[#allocation86_spill] sm:$0xff] }
 0x24e   : > { %v8030_v16 = vsel %vm13904_vm10, %v13903_v31, %v8028_v19  ;;  %v12501_v41 = vsel %vm2072_vm7, %v7809_v17, %v7808_v44  ;;  %v8018_v30 = vunpack.c.l.b16 %v7932_v48  ;;  %v8044_v59 = vsel %vm13911_vm1, %v13910_v10, %v8042_v5  ;;  %v13919_v17 = vld [vmem:[#allocation82_spill] sm:$0xff]  ;;  %vm13933_vm9 = vmmov %vm13911_vm1  ;;  %v13934_v31 = vld [vmem:[#allocation87_spill] sm:$0xff] }
 0x24f   : > { %v8032_v11 = vsel %vm2063_vm4, %v13905_v15, %v8030_v16  ;;  %v7814_v9 = vpack.c.b16 %v12501_v41, %v12465_v63  ;;  %v7946_v51 = vrot.slane %v7939_v45, %v9127_v8  ;;  %v8037_v18 = vrot.slane %v8017_v53, 1  ;;  %v13935_v44 = vld [vmem:[#allocation92_spill] sm:$0xff]  ;;  %vm13936_vm2 = vmmov %vm13913_vm3  ;;  %v13938_v53 = vld [vmem:[#allocation93_spill] sm:$0xff] }
 0x250   : > { %v8034_v27 = vsel %vm2066_vm5, %v13908_v2, %v8032_v11  ;;  %v8046_v12 = vsel %vm2063_vm4, %v13912_v46, %v8044_v59  ;;  %v8051_v39 = vrot.slane %v8018_v30, 1  ;;  %v7953_v36 = vrot.slane %v11520_v50, %v9127_v8  ;;  %v13937_v5 = vld [vmem:[#allocation88_spill] sm:$0xff]  ;;  %vm13942_vm10 = vmmov %vm13918_vm8  ;;  %v13944_v46 = vld [vmem:[#allocation54_spill] sm:$0xff] }
 0x251   : > { %v8036_v58 = vsel %vm2069_vm6, %v13909_v1, %v8034_v27  ;;  %8863 = vmatmul.mubr.msk.bf16.gmra.mxu0 %vm13913_vm3, %v7814_v9  ;;  %v8048_v42 = vsel %vm2066_vm5, %v13914_v14, %v8046_v12  ;;  %v8019_v3 = vunpack.c.l.b16 %v7946_v51  ;;  %v13916_v32 = vunpack.c.l.b16 %v13915_v61  ;;  %v13939_v27 = vld [vmem:[#allocation51_spill] sm:$0xff]  ;;  %v13941_v1 = vld [vmem:[#allocation53_spill] sm:$0xff]  ;;  %vm13948_vm1 = vmmov %vm13918_vm8 }
 0x252   : > { %v13920_v52 = vunpack.c.l.b16 %v13919_v17  ;;  %v8038_v47 = vsel %vm2072_vm7, %v8037_v18, %v8036_v58  ;;  %v8050_v50 = vsel %vm2069_vm6, %v13923_v29, %v8048_v42  ;;  %8878 = vmatprep.mubr.msk.bf16.mxu0 %vm13924_vm12, %v8260_v26  ;;  %v7960_v25 = vrot.slane %v7953_v36, %v9127_v8  ;;  %v13932_v26 = vld [vmem:[#allocation91_spill] sm:$0xff]  ;;  %vm13949_vm3 = vmmov %vm13936_vm2  ;;  %v13958_v29 = vld [vmem:[#allocation61_spill] sm:$0xff] }
 0x253   : > { %v8054_v38 = vsel %vm13918_vm8, %v13917_v55, %v13916_v32  ;;  %v8052_v4 = vsel %vm2072_vm7, %v8051_v39, %v8050_v50  ;;  %v8065_v19 = vrot.slane %v8019_v3, 1  ;;  %v7967_v11 = vrot.slane %v11802_v33, %v9127_v8  ;;  %v13943_v33 = vld [vmem:[#allocation173_spill] sm:$0xff]  ;;  %v13945_v39 = vld [vmem:[#allocation52_spill] sm:$0xff]  ;;  %v13947_v14 = vld [vmem:[#allocation59_spill] sm:$0xff] }
 0x254   : > { %v8068_v60 = vsel %vm13922_vm11, %v13921_v0, %v13920_v52  ;;  %v8056_v28 = vsel %vm13926_vm13, %v13925_v56, %v8054_v38  ;;  %v8137_v37 = vpack.c.b16 %v8052_v4, %v8038_v47  ;;  %v8020_v6 = vunpack.c.l.b16 %v7960_v25  ;;  %v13950_v38 = vld [vmem:[#allocation55_spill] sm:$0xff]  ;;  %vm13951_vm8 = vmmov %vm13933_vm9  ;;  %v13952_v52 = vld [vmem:[#allocation56_spill] sm:$0xff] }
 0x255   : > { %v8058_v23 = vsel %vm13928_vm14, %v13927_v24, %v8056_v28  ;;  %v8070_v43 = vsel %vm13930_vm15, %v13929_v49, %v8068_v60  ;;  %v7981_v7 = vrot.slane %v11807_v13, %v9127_v8  ;;  %v13940_v9 = vunpack.c.l.b16 %v13939_v27  ;;  %v13953_v60 = vld [vmem:[#allocation60_spill] sm:$0xff]  ;;  %vm13954_vm11 = vmmov %vm13907_vm0  ;;  %v13960_v56 = vld [vmem:[#allocation58_spill] sm:$0xff] }
 0x256   : > { %v8060_v22 = vsel %vm2063_vm4, %v13931_v34, %v8058_v23  ;;  %v8072_v48 = vsel %vm13933_vm9, %v13932_v26, %v8070_v43  ;;  %8868 = vmatprep.mubr.msk.bf16.mxu1 %vm13936_vm2, %v8137_v37  ;;  %v8079_v2 = vrot.slane %v8020_v6, 1  ;;  %v7974_v13 = vrot.slane %v7967_v11, %v9127_v8  ;;  %vm13955_vm12 = vmmov %vm13936_vm2  ;;  %v13961_v4 = vld [vmem:[#allocation62_spill] sm:$0xff]  ;;  %v13963_v43 = vld [vmem:[#allocation111_spill] sm:$0xff] }
 0x257   : > { %v8062_v16 = vsel %vm2066_vm5, %v13934_v31, %v8060_v22  ;;  %v8074_v15 = vsel %vm2063_vm4, %v13935_v44, %v8072_v48  ;;  %v8082_v58 = vsel %vm13942_vm10, %v13941_v1, %v13940_v9  ;;  %v7988_v51 = vrot.slane %v7981_v7, %v9127_v8  ;;  %vm13956_vm13 = vmmov %vm13936_vm2  ;;  %v13965_v34 = vld [vmem:[#allocation112_spill] sm:$0xff]  ;;  %v13967_v48 = vld [vmem:[#allocation70_spill] sm:$0xff] }
 0x258   : > { %v8064_v45 = vsel %vm2069_vm6, %v13937_v5, %v8062_v16  ;;  %v8076_v30 = vsel %vm2066_vm5, %v13938_v53, %v8074_v15  ;;  %v8084_v12 = vsel %vm13907_vm0, %v13944_v46, %v8082_v58  ;;  %v13946_v36 = vunpack.c.l.b16 %v13945_v39  ;;  %vm13959_vm14 = vmmov %vm13951_vm8  ;;  %v13968_v15 = vld [vmem:[#allocation113_spill] sm:$0xff]  ;;  %v13975_v1 = vld [vmem:[#allocation115_spill] sm:$0xff] }
 0x259   : > { %v8066_v10 = vsel %vm2072_vm7, %v8065_v19, %v8064_v45  ;;  %v8078_v59 = vsel %vm2069_vm6, %v13943_v33, %v8076_v30  ;;  %v8262_v3 = vpack.c.b16 %v12465_v63, %v12375_v21  ;;  %8879 = vmatmul.mubr.msk.bf16.vlgmr.msra.gmra.mxu0 %vm13949_vm3, %v8261_v62  ;;  %v8021_v32 = vunpack.c.l.b16 %v7974_v13  ;;  %v13962_v19 = vld [vmem:[#allocation63_spill] sm:$0xff]  ;;  %v13970_v45 = vld [vmem:[#allocation110_spill] sm:$0xff]  ;;  %vm13972_vm15 = vmmov %vm13948_vm1 }
 0x25a   : > { %v8080_v18 = vsel %vm2072_vm7, %v8079_v2, %v8078_v59  ;;  %v8096_v42 = vsel %vm13948_vm1, %v13947_v14, %v13946_v36  ;;  %v8022_v55 = vunpack.c.l.b16 %v7988_v51  ;;  %v8086_v17 = vsel %vm13951_vm8, %v13950_v38, %v8084_v12  ;;  %v13973_v2 = vld [vmem:[#allocation114_spill] sm:$0xff]  ;;  %vm13977_vm9 = vmmov %vm13907_vm0  ;;  %v13978_v13 = vld [vmem:[#allocation116_spill] sm:$0xff] }
 0x25b   : > { %v8138_v61 = vpack.c.b16 %v8080_v18, %v8066_v10  ;;  %v8088_v0 = vsel %vm2063_vm4, %v13952_v52, %v8086_v17  ;;  %v8098_v47 = vsel %vm13954_vm11, %v13953_v60, %v8096_v42  ;;  %8882 = vmatprep.mubr.msk.bf16.mxu0 %vm13955_vm12, %v8262_v3  ;;  %v7995_v21 = vrot.slane %v12065_v57, %v9127_v8  ;;  %vm13980_vm2 = vmmov %vm13951_vm8  ;;  %v13981_v39 = vld [vmem:[#allocation118_spill] sm:$0xff]  ;;  %v13983_v42 = vld [vmem:[#allocation119_spill] sm:$0xff] }
 0x25c   : > { %v8009_v35 = vrot.slane %v12070_v54, %v9127_v8  ;;  %v8090_v62 = vsel %vm2066_vm5, %v13957_v40, %v8088_v0  ;;  %v8093_v63 = vrot.slane %v8021_v32, 1  ;;  %v8100_v50 = vsel %vm13959_vm14, %v13958_v29, %v8098_v47  ;;  %v13985_v32 = vld [vmem:[#allocation120_spill] sm:$0xff]  ;;  %vm13987_vm10 = vmmov %vm13949_vm3  ;;  %v13988_v52 = vld [vmem:[#allocation121_spill] sm:$0xff] }
 0x25d   : > { %8869 = vmatmul.mubr.msk.bf16.vlgmr.msra.gmra.mxu1 %vm13956_vm13, %v8138_v61  ;;  %v8107_v25 = vrot.slane %v8022_v55, 1  ;;  %v8092_v28 = vsel %vm2069_vm6, %v13960_v56, %v8090_v62  ;;  %v8102_v24 = vsel %vm2063_vm4, %v13961_v4, %v8100_v50  ;;  %v8002_v57 = vrot.slane %v7995_v21, %v9127_v8  ;;  %v13990_v47 = vld [vmem:[#allocation122_spill] sm:$0xff]  ;;  %v13992_v40 = vld [vmem:[#allocation123_spill] sm:$0xff]  ;;  %v13994_v50 = vld [vmem:[#allocation117_spill] sm:$0xff] }
 0x25e   : > { %v8016_v54 = vrot.slane %v8009_v35, %v9127_v8  ;;  %v8094_v23 = vsel %vm2072_vm7, %v8093_v63, %v8092_v28  ;;  %v8104_v49 = vsel %vm2066_vm5, %v13962_v19, %v8102_v24  ;;  %v13964_v37 = vunpack.c.l.b16 %v13963_v43  ;;  %vm13996_vm0 = vmmov %vm13948_vm1 }
 0x25f   : > { %v13966_v22 = vunpack.c.l.b16 %v13965_v34  ;;  %v8106_v31 = vsel %vm2069_vm6, %v13967_v48, %v8104_v49  ;;  %v8023_v16 = vunpack.c.l.b16 %v8002_v57  ;;  %v13969_v11 = vunpack.c.l.b16 %v13968_v15  ;;  %vm13997_vm1 = vmmov %vm13977_vm9  ;;  %v14000_v49 = vld [vmem:[#allocation228_spill] sm:$0xff] }
 0x260   : > { %v8109_v6 = vrot.slane %v13964_v37, 7  ;;  %v8024_v44 = vunpack.c.l.b16 %v8016_v54  ;;  %v8108_v5 = vsel %vm2072_vm7, %v8107_v25, %v8106_v31  ;;  %v13971_v53 = vunpack.c.l.b16 %v13970_v45  ;;  %v13998_v54 = vld [vmem:[#allocation227_spill] sm:$0xff]  ;;  %vm14002_vm3 = vmmov %vm13980_vm2 }
 0x261   : > { %v8111_v26 = vrot.slane %v13966_v22, 6  ;;  %v8113_v7 = vrot.slane %v13969_v11, 5  ;;  %v13974_v27 = vunpack.c.l.b16 %v13973_v2  ;;  %v13976_v58 = vunpack.c.l.b16 %v13975_v1  ;;  %vm14007_vm8 = vmmov %vm13996_vm0  ;;  %v14008_v11 = vld [vmem:[#allocation230_spill] sm:$0xff]  ;;  %v14010_v45 = vld [vmem:[#allocation231_spill] sm:$0xff] }
 0x262   : > { %v8110_v30 = vsel %vm13972_vm15, %v8109_v6, %v13971_v53  ;;  %v8139_v33 = vpack.c.b16 %v8108_v5, %v8094_v23  ;;  %v13979_v51 = vunpack.c.l.b16 %v13978_v13  ;;  %v8121_v46 = vrot.slane %v8023_v16, 1  ;;  %v14005_v16 = vld [vmem:[#allocation226_spill] sm:$0xff]  ;;  %vm14012_vm11 = vmmov %vm13997_vm1 }
 0x263   : > { %v8115_v9 = vrot.slane %v13974_v27, 4  ;;  %v8117_v10 = vrot.slane %v13976_v58, 3  ;;  %v8112_v59 = vsel %vm13977_vm9, %v8111_v26, %v8110_v30  ;;  %v13982_v36 = vunpack.c.l.b16 %v13981_v39  ;;  %v14003_v26 = vld [vmem:[#allocation229_spill] sm:$0xff]  ;;  %vm14015_vm12 = vmmov %vm13980_vm2 }
 0x264   : > { %v8119_v18 = vrot.slane %v13979_v51, 2  ;;  %v8114_v12 = vsel %vm13980_vm2, %v8113_v7, %v8112_v59  ;;  %v13984_v3 = vunpack.c.l.b16 %v13983_v42  ;;  %v13986_v55 = vunpack.c.l.b16 %v13985_v32  ;;  %8872 = vmatprep.mubr.msk.bf16.mxu1 %vm13987_vm10, %v8139_v33  ;;  %vm14016_vm13 = vmmov %vm13987_vm10 }
 0x265   : > { %v8123_v14 = vrot.slane %v13982_v36, 7  ;;  %v8116_v17 = vsel %vm2063_vm4, %v8115_v9, %v8114_v12  ;;  %v13989_v0 = vunpack.c.l.b16 %v13988_v52  ;;  %v13991_v21 = vunpack.c.l.b16 %v13990_v47  ;;  %v14013_v9 = vld [vmem:[#allocation232_spill] sm:$0xff]  ;;  %vm14017_vm14 = vmmov %vm13987_vm10 }
 0x266   : > { %v8125_v61 = vrot.slane %v13984_v3, 6  ;;  %v8127_v38 = vrot.slane %v13986_v55, 5  ;;  %v13993_v62 = vunpack.c.l.b16 %v13992_v40  ;;  %v8118_v29 = vsel %vm2066_vm5, %v8117_v10, %v8116_v17  ;;  %v8800_v3 = vpop.f32.mrf.mxu0 }
 0x267   : > { %v8129_v60 = vrot.slane %v13989_v0, 4  ;;  %v8131_v35 = vrot.slane %v13991_v21, 3  ;;  %v13995_v25 = vunpack.c.l.b16 %v13994_v50  ;;  %v8135_v28 = vrot.slane %v8024_v44, 1 }
 0x268   : > { %v8133_v63 = vrot.slane %v13993_v62, 2  ;;  %v8237_v4 = vrot.slane %v12351_v20, %v9127_v8  ;;  %v8120_v24 = vsel %vm2069_vm6, %v8119_v18, %v8118_v29  ;;  %v13999_v23 = vunpack.c.l.b16 %v13998_v54  ;;  %v2227_v32 = vpop.f32.mrf.mxu0 }
 0x269   : > { %v8124_v56 = vsel %vm13996_vm0, %v8123_v14, %v13995_v25  ;;  %v14001_v43 = vunpack.c.l.b16 %v14000_v49  ;;  %v8122_v6 = vsel %vm2072_vm7, %v8121_v46, %v8120_v24  ;;  %v14004_v48 = vunpack.c.l.b16 %v14003_v26  ;;  %v12676_v14 = vpop.f32.mrf.mxu1 }
 0x26a   : > { %v8126_v57 = vsel %vm13997_vm1, %v8125_v61, %v8124_v56  ;;  %v8246_v19 = vrot.slane %v13999_v23, 7  ;;  %v8244_v22 = vrot.slane %v8237_v4, %v9127_v8  ;;  %v14006_v44 = vunpack.c.l.b16 %v14005_v16 }
 0x26b   : > { %v8248_v37 = vrot.slane %v14001_v43, 6  ;;  %v8128_v34 = vsel %vm14002_vm3, %v8127_v38, %v8126_v57  ;;  %v8250_v31 = vrot.slane %v14004_v48, 5  ;;  %v14009_v7 = vunpack.c.l.b16 %v14008_v11  ;;  %v12678_v42 = vpop.f32.mrf.mxu1  ;;  %v8801_v38 = vpop.f32.mrf.mxu0 }
 0x26c   : > { %v8130_v20 = vsel %vm2063_vm4, %v8129_v60, %v8128_v34  ;;  %v8247_v15 = vsel %vm14007_vm8, %v8246_v19, %v14006_v44  ;;  %v14011_v53 = vunpack.c.l.b16 %v14010_v45  ;;  %v8245_v27 = vunpack.c.l.b16 %v8244_v22 }
 0x26d   : > { %v8252_v5 = vrot.slane %v14009_v7, 4  ;;  %v8132_v2 = vsel %vm2066_vm5, %v8131_v35, %v8130_v20  ;;  %v8249_v8 = vsel %vm14012_vm11, %v8248_v37, %v8247_v15  ;;  %v14014_v1 = vunpack.c.l.b16 %v14013_v9  ;;  %v12680_v61 = vpop.f32.mrf.mxu1  ;;  %v2230_v52 = vpop.f32.mrf.mxu0 }
 0x26e   : > { %v8254_v30 = vrot.slane %v14011_v53, 3  ;;  %v8134_v10 = vsel %vm2069_vm6, %v8133_v63, %v8132_v2  ;;  %v8251_v33 = vsel %vm14015_vm12, %v8250_v31, %v8249_v8  ;;  %v8258_v51 = vrot.slane %v8245_v27, 1 }
 0x26f   : > { %v8256_v58 = vrot.slane %v14014_v1, 2  ;;  %v8136_v59 = vsel %vm2072_vm7, %v8135_v28, %v8134_v10  ;;  %v8253_v13 = vsel %vm2063_vm4, %v8252_v5, %v8251_v33  ;;  %v12682_v55 = vpop.f32.mrf.mxu1  ;;  %v8820_v60 = vpop.f32.mrf.mxu0 }
 0x270   : > { %v8140_v18 = vpack.c.b16 %v8136_v59, %v8122_v6  ;;  %v8255_v46 = vsel %vm2066_vm5, %v8254_v30, %v8253_v13 }
 0x271   : > { %v8257_v12 = vsel %vm2069_vm6, %v8256_v58, %v8255_v46  ;;  %v8810_v17 = vpop.f32.mrf.mxu1  ;;  %v3603_v21 = vpop.f32.mrf.mxu0 }
 0x272   : > { %8873 = vmatmul.mubr.msk.bf16.gmra.mxu1 %vm14016_vm13, %v8140_v18  ;;  %v8259_v39 = vsel %vm2072_vm7, %v8258_v51, %v8257_v12  ;;  %v3392_v30 = vadd.f32 %v8810_v17, %v8800_v3 }
 0x273   : > { %v8263_v36 = vpack.c.b16 %v8259_v39, %v12501_v41  ;;  %v3383_v0 = vpop.f32.mrf.mxu1  ;;  %v8821_v35 = vpop.f32.mrf.mxu0 }
 0x274   : > { %v3384_v27 = vadd.f32 %v3383_v0, %v2227_v32  ;;  %v3636_v9 = vadd.f32 %v8820_v60, %v3392_v30 }
 0x275   : > { %8883 = vmatmul.mubr.msk.bf16.gmra.mxu0 %vm14017_vm14, %v8263_v36  ;;  %v8811_v47 = vpop.f32.mrf.mxu1  ;;  %v3606_v62 = vpop.f32.mrf.mxu0 }
 0x276   : > { %v3395_v1 = vadd.f32 %v8811_v47, %v8801_v38  ;;  %v3634_v10 = vadd.f32 %v3603_v21, %v3384_v27 }
 0x277   : > { %v3386_v41 = vpop.f32.mrf.mxu1  ;;  %v12686_v29 = vpop.f32.mrf.mxu0 }
 0x278   : > { %v3387_v33 = vadd.f32 %v3386_v41, %v2230_v52  ;;  %v3637_v51 = vadd.f32 %v8821_v35, %v3395_v1 }
 0x279   : > { %v8814_v40 = vpop.f32.mrf.mxu1  ;;  %v12690_v25 = vpop.f32.mrf.mxu0 }
 0x27a   : > { %v3635_v39 = vadd.f32 %v3606_v62, %v3387_v33  ;;  %v3408_v30 = vadd.f32 %v8814_v40, %v12676_v14 }
 0x27b   : > { %v12684_v63 = vpop.f32.mrf.mxu1  ;;  %v12694_v28 = vpop.f32.mrf.mxu0 }
 0x27d   : > { %v12688_v50 = vpop.f32.mrf.mxu1  ;;  %v12696_v24 = vpop.f32.mrf.mxu0 }
 0x27e   : > { %v3411_v14 = vadd.f32 %v12688_v50, %v12680_v61 }
 0x27f   : > { %v12692_v56 = vpop.f32.mrf.mxu1  ;;  %v8840_v54 = vpop.f32.mrf.mxu0 }
 0x281   : > { %v8830_v4 = vpop.f32.mrf.mxu1  ;;  %v7310_v19 = vpop.f32.mrf.mxu0 }
 0x282   : > { %v6177_v59 = vadd.f32 %v8830_v4, %v3636_v9 }
 0x283   : > { %v6144_v57 = vpop.f32.mrf.mxu1  ;;  %v8841_v43 = vpop.f32.mrf.mxu0 }
 0x284   : > { %v6175_v18 = vadd.f32 %v6144_v57, %v3634_v10  ;;  %v7343_v36 = vadd.f32 %v8840_v54, %v6177_v59 }
 0x285   : > { %v8831_v23 = vpop.f32.mrf.mxu1  ;;  %v7313_v6 = vpop.f32.mrf.mxu0 }
 0x286   : > { %v6178_v3 = vadd.f32 %v8831_v23, %v3637_v51  ;;  %v7341_v17 = vadd.f32 %v7310_v19, %v6175_v18  ;;  %v3400_v19 = vadd.f32 %v12684_v63, %v12678_v42 }
 0x287   : > { %v6147_v49 = vpop.f32.mrf.mxu1 }
 0x288   : > { %v6176_v38 = vadd.f32 %v6147_v49, %v3635_v39  ;;  %v7344_v47 = vadd.f32 %v8841_v43, %v6178_v3  ;;  %v12736_v49 = vld [vmem:[%s12841_s2] ss:$0 sm:$0xff]  ;;  %v3638_v1 = vadd.f32 %v12690_v25, %v3400_v19 }
 0x28a   : > { %v7342_v35 = vadd.f32 %v7313_v6, %v6176_v38 }
 0x2b4   : > { %v12698_v37 = vpop.f32.mrf.mxu1 }
 0x2b6   : > { %v12700_v34 = vpop.f32.mrf.mxu1 }
 0x2b7   : > { %v6179_v51 = vadd.f32 %v12700_v34, %v3638_v1 }
 0x2b8   : > { %v12704_v26 = vpop.f32.mrf.mxu1 }
 0x2ba   : > { %v12708_v31 = vpop.f32.mrf.mxu1 }
 0x2ce   : > { %v8850_v16 = vpop.f32.mrf.mxu1 }
 0x2cf   : > { %v7571_v0 = vadd.f32 %v8850_v16, %v7343_v36 }
 0x2d0   : > { %v7538_v15 = vpop.f32.mrf.mxu1 }
 0x2d1   : > { %v7569_v21 = vadd.f32 %v7538_v15, %v7341_v17 }
 0x2d2   : > { %v8851_v7 = vpop.f32.mrf.mxu1 }
 0x2d3   : > { %v7572_v57 = vadd.f32 %v8851_v7, %v7344_v47 }
 0x2d4   : > { %v12702_v22 = vpop.f32.mrf.mxu0  ;;  %v7541_v45 = vpop.f32.mrf.mxu1 }
 0x2d5   : > { %v7570_v27 = vadd.f32 %v7541_v45, %v7342_v35 }
 0x2d6   : > { %v12706_v48 = vpop.f32.mrf.mxu0 }
 0x2d8   : > { %v12710_v20 = vpop.f32.mrf.mxu0 }
 0x2da   : > { %v12712_v44 = vpop.f32.mrf.mxu0 }
 0x2e6   : > { %v8860_v11 = vpop.f32.mrf.mxu0 }
 0x2e7   : > { %v7897_v4 = vadd.f32 %v8860_v11, %v7571_v0  ;;  %v3640_v11 = vadd.f32 %v12686_v29, %v3408_v30  ;;  %v7345_v0 = vadd.f32 %v12706_v48, %v6179_v51 }
 0x2e8   : > { %v7864_v5 = vpop.f32.mrf.mxu0 }
 0x2e9   : > { %v7895_v23 = vadd.f32 %v7864_v5, %v7569_v21  ;;  %v6181_v10 = vadd.f32 %v12698_v37, %v3640_v11 }
 0x2ea   : > { %v8861_v53 = vpop.f32.mrf.mxu0 }
 0x2eb   : > { %v7898_v16 = vadd.f32 %v8861_v53, %v7572_v57  ;;  %v3403_v53 = vadd.f32 %v12692_v56, %v12682_v55  ;;  %v7347_v37 = vadd.f32 %v12702_v22, %v6181_v10 }
 0x2ec   : > { %v7867_v8 = vpop.f32.mrf.mxu0 }
 0x2ed   : > { %v7896_v5 = vadd.f32 %v7867_v8, %v7570_v27  ;;  %v3641_v8 = vadd.f32 %v12694_v28, %v3411_v14  ;;  %v3639_v56 = vadd.f32 %v12696_v24, %v3403_v53 }
 0x2ef   : > { %v6182_v3 = vadd.f32 %v12704_v26, %v3641_v8  ;;  %v6180_v47 = vadd.f32 %v12708_v31, %v3639_v56 }
 0x2f1   : > { %v7348_v22 = vadd.f32 %v12710_v20, %v6182_v3 }
 0x306   : > { %v12714_v2 = vpop.f32.mrf.mxu1 }
 0x307   : > { %v7575_v21 = vadd.f32 %v12714_v2, %v7347_v37 }
 0x308   : > { %v12716_v58 = vpop.f32.mrf.mxu1 }
 0x309   : > { %v7573_v26 = vadd.f32 %v12716_v58, %v7345_v0 }
 0x30a   : > { %v12722_v12 = vpop.f32.mrf.mxu1 }
 0x30b   : > { %v7576_v31 = vadd.f32 %v12722_v12, %v7348_v22 }
 0x30c   : > { %v12726_v60 = vpop.f32.mrf.mxu1 }
 0x311   : > { %v12718_v13 = vpop.f32.mrf.mxu0 }
 0x312   : > { %v7901_v48 = vadd.f32 %v12718_v13, %v7575_v21 }
 0x313   : > { %v12720_v46 = vpop.f32.mrf.mxu0 }
 0x315   : > { %v12724_v32 = vpop.f32.mrf.mxu0 }
 0x317   : > { %v12728_v52 = vpop.f32.mrf.mxu0 }
 0x319   : > { %v8880_v41 = vpop.f32.mrf.mxu0 }
 0x31b   : > { %v8313_v54 = vpop.f32.mrf.mxu0 }
 0x31d   : > { %v8870_v62 = vpop.f32.mrf.mxu1  ;;  %v8881_v7 = vpop.f32.mrf.mxu0 }
 0x31e   : > { %v8223_v9 = vadd.f32 %v8870_v62, %v7897_v4 }
 0x31f   : > { %v8190_v43 = vpop.f32.mrf.mxu1  ;;  %v8316_v18 = vpop.f32.mrf.mxu0 }
 0x320   : > { %v8346_v6 = vadd.f32 %v8880_v41, %v8223_v9  ;;  %v8221_v15 = vadd.f32 %v8190_v43, %v7895_v23  ;;  %v7346_v23 = vadd.f32 %v12712_v44, %v6180_v47  ;;  %v7899_v9 = vadd.f32 %v12720_v46, %v7573_v26 }
 0x321   : > { %v8871_v40 = vpop.f32.mrf.mxu1 }
 0x322   : > { %v8361_v42 = vadd.f32 %v12736_v49, %v8346_v6  ;;  %v8344_v63 = vadd.f32 %v8313_v54, %v8221_v15  ;;  %v8224_v45 = vadd.f32 %v8871_v40, %v7898_v16  ;;  %v7574_v19 = vadd.f32 %v12726_v60, %v7346_v23 }
 0x323   : > { %v8193_v33 = vpop.f32.mrf.mxu1  ;;  %v7902_v16 = vadd.f32 %v12724_v32, %v7576_v31 }
 0x324   : > { %v8369_v29 = vadd.f32 3.0, %v8361_v42  ;;  %v8359_v61 = vadd.f32 %v12736_v49, %v8344_v63  ;;  %v8347_v50 = vadd.f32 %v8881_v7, %v8224_v45  ;;  %v8222_v59 = vadd.f32 %v8193_v33, %v7896_v5 }
 0x325   : > { %v7900_v7 = vadd.f32 %v12728_v52, %v7574_v19 }
 0x326   : > { %v8377_v39 = vmax.f32 %v8369_v29, 0.0  ;;  %v8367_v25 = vadd.f32 3.0, %v8359_v61  ;;  %v8362_v36 = vadd.f32 %v12736_v49, %v8347_v50  ;;  %v8345_v55 = vadd.f32 %v8316_v18, %v8222_v59 }
 0x328   : > { %v8385_v17 = vmin.f32 %v8377_v39, 6.0  ;;  %v8375_v38 = vmax.f32 %v8367_v25, 0.0  ;;  %v8370_v28 = vadd.f32 3.0, %v8362_v36  ;;  %v8360_v34 = vadd.f32 %v12736_v49, %v8345_v55 }
 0x32a   : > { %v8393_v41 = vmul.f32 %v8385_v17, %v8361_v42  ;;  %v8383_v35 = vmin.f32 %v8375_v38, 6.0  ;;  %v8378_v24 = vmax.f32 %v8370_v28, 0.0  ;;  %v8368_v4 = vadd.f32 3.0, %v8360_v34 }
 0x32c   : > { %v8401_v57 = vmul.f32 0.16666667, %v8393_v41  ;;  %v8391_v30 = vmul.f32 %v8383_v35, %v8359_v61  ;;  %v8386_v62 = vmin.f32 %v8378_v24, 6.0  ;;  %v8376_v54 = vmax.f32 %v8368_v4, 0.0 }
 0x32e   : > { %8409 = vst [vmem:[%s12765_s11 + $0x10] sm:$0xff] %v8401_v57  ;;  %v8399_v2 = vmul.f32 0.16666667, %v8391_v30  ;;  %v8394_v20 = vmul.f32 %v8386_v62, %v8362_v36  ;;  %v8384_v27 = vmin.f32 %v8376_v54, 6.0 }
 0x330   : > { %8407 = vst [vmem:[%s12765_s11] sm:$0xff] %v8399_v2  ;;  %v8402_v13 = vmul.f32 0.16666667, %v8394_v20  ;;  %v8392_v43 = vmul.f32 %v8384_v27, %v8360_v34 }
 0x332   : > { %v8874_v58 = vpop.f32.mrf.mxu1  ;;  %8410 = vst [vmem:[%s12765_s11 + $0x18] sm:$0xff] %v8402_v13  ;;  %v8400_v11 = vmul.f32 0.16666667, %v8392_v43 }
 0x333   : > { %v8227_v44 = vadd.f32 %v8874_v58, %v7901_v48 }
 0x334   : > { %v8206_v12 = vpop.f32.mrf.mxu1  ;;  %8408 = vst [vmem:[%s12765_s11 + $0x8] sm:$0xff] %v8400_v11 }
 0x335   : > { %v8884_v6 = vpop.f32.mrf.mxu0  ;;  %v8225_v15 = vadd.f32 %v8206_v12, %v7899_v9 }
 0x336   : > { %v8350_v14 = vadd.f32 %v8884_v6, %v8227_v44  ;;  %v8875_v40 = vpop.f32.mrf.mxu1 }
 0x337   : > { %v8329_v5 = vpop.f32.mrf.mxu0  ;;  %v8228_v46 = vadd.f32 %v8875_v40, %v7902_v16 }
 0x338   : > { %v8365_v60 = vadd.f32 %v12736_v49, %v8350_v14  ;;  %v8348_v42 = vadd.f32 %v8329_v5, %v8225_v15  ;;  %v8209_v63 = vpop.f32.mrf.mxu1 }
 0x339   : > { %v8885_v45 = vpop.f32.mrf.mxu0  ;;  %v8226_v1 = vadd.f32 %v8209_v63, %v7900_v7 }
 0x33a   : > { %v8373_v53 = vadd.f32 3.0, %v8365_v60  ;;  %v8363_v32 = vadd.f32 %v12736_v49, %v8348_v42  ;;  %v8351_v10 = vadd.f32 %v8885_v45, %v8228_v46 }
 0x33b   : > { %v8332_v33 = vpop.f32.mrf.mxu0 }
 0x33c   : > { %v8381_v29 = vmax.f32 %v8373_v53, 0.0  ;;  %v8371_v61 = vadd.f32 3.0, %v8363_v32  ;;  %v8366_v50 = vadd.f32 %v12736_v49, %v8351_v10  ;;  %v8349_v52 = vadd.f32 %v8332_v33, %v8226_v1 }
 0x33e   : > { %v8389_v59 = vmin.f32 %v8381_v29, 6.0  ;;  %v8379_v8 = vmax.f32 %v8371_v61, 0.0  ;;  %v8374_v51 = vadd.f32 3.0, %v8366_v50  ;;  %v8364_v18 = vadd.f32 %v12736_v49, %v8349_v52 }
 0x340   : > { %v8397_v39 = vmul.f32 %v8389_v59, %v8365_v60  ;;  %v8387_v25 = vmin.f32 %v8379_v8, 6.0  ;;  %v8382_v36 = vmax.f32 %v8374_v51, 0.0  ;;  %v8372_v55 = vadd.f32 3.0, %v8364_v18 }
 0x342   : > { %v8405_v56 = vmul.f32 0.16666667, %v8397_v39  ;;  %v8395_v37 = vmul.f32 %v8387_v25, %v8363_v32  ;;  %v8390_v3 = vmin.f32 %v8382_v36, 6.0  ;;  %v8380_v17 = vmax.f32 %v8372_v55, 0.0 }
 0x344   : > { %8413 = vst [vmem:[%s12765_s11 + $0x30] sm:$0xff] %v8405_v56  ;;  %v8403_v38 = vmul.f32 0.16666667, %v8395_v37  ;;  %v8398_v28 = vmul.f32 %v8390_v3, %v8366_v50  ;;  %v8388_v34 = vmin.f32 %v8380_v17, 6.0 }
 0x346   : > { %8411 = vst [vmem:[%s12765_s11 + $0x20] sm:$0xff] %v8403_v38  ;;  %v8406_v49 = vmul.f32 0.16666667, %v8398_v28  ;;  %v8396_v0 = vmul.f32 %v8388_v34, %v8364_v18 }
 0x348   : > { %8414 = vst [vmem:[%s12765_s11 + $0x38] sm:$0xff] %v8406_v49  ;;  %v8404_v47 = vmul.f32 0.16666667, %v8396_v0 }
 0x34a   : > { %8412 = vst [vmem:[%s12765_s11 + $0x28] sm:$0xff] %v8404_v47 }
 0x34b   : > { %8971 = shalt.err (!%p8968_p5)
}
 0x34c   : > { %s8972_s4 = scalar_lea.hbm %s12786_s26, 1024  ;;  %s8976_s7 = scalar_lea.hbm %s12842_s3, 2048 }
 0x34d   : > { %p8973_p6 = scmp.ne.s32.totalorder %s12786_s26, %s8972_s4  ;;  %p8977_p10 = scmp.lt.s32.totalorder %s12786_s26, %s12842_s3 }
 0x34e   : > { %p8978_p11 = scmp.lt.s32.totalorder %s8976_s7, %s8972_s4 }
 0x34f   : > { %p8974_p7 = pnand %p8973_p6, %p9100_p4 }
 0x350   : > { %p8979_p12 = por %p8978_p11, %p8977_p10 }
 0x351   : > { %p8975_p9 = pneg %p8974_p7 }
 0x353   : > { %p8980_p13 = pnand %p8979_p12, %p8975_p9 }
 0x355   : > { %8983 = shalt.err (!%p8980_p13)
}
 0x356   : > { %s9038_s10 = smov 128   ;;  %s9039_s11 = smov 8  }
 0x357   : > { %8899 = dma.vmem_to_hbm [thread:$0]  (%p9100_p4), %s12788_s19, 1024, %s12786_s26, %s12794_s27, %s9038_s10, %s9038_s10, %s9039_s11  }
 0x358 PF: > { %p8905_p0 = scmp.ge.s32.totalorder %s9034_s17, 2  ;;  %s8446_s18 = sand.u32 1, %s9014_s12  }
 0x359   : > { %s8447_s21 = scalar_lea.sflag [#allocation3], %s8446_s18 }
 0x35a   : > { %p8902_p1 = pnand %p8905_p0, %p9107_p8 }
 0x35c   : > { %p8903_p2 = pneg %p8902_p1 }
 0x35e   : > { %9009 = dma.done.wait (%p8903_p2), %s8447_s21, 1024  }
 0x35f   : > { %9011 = vsyncadd (%p8903_p2), %s8447_s21, 4294966272  ;;  %s16_s17 = sadd.s32 1, %s9034_s17   ;;  %s14018_s12 = smov %s9018_s13 }
 0x360   : > { %p13_p3 = scmp.ge.s32.totalorder %s16_s17, 4   ;;  %s14019_s13 = smov %s9022_s14 }
 0x361   : > { %s14020_s14 = smov %s9113_s25  ;;  %s14021_s15 = smov %s9030_s16 }
 0x362   : > { %s14022_s16 = smov %s14024_s20  ;;  %15 = sbr.rel (!%p13_p3) target bundleno = 4 (0x4), region = 76 }
 0x367   :  { %8452 = vsyncpa [#allocation3], 1 }
 0x368   :  { %8454 = vsyncpa [#allocation3 + $0x1], 1 }

</bundles_post_ra>
